<compile_context>
chip_gen: v5e
topology: v5e:2x2
jax: 0.10.0
libtpu: 0.0.40
codegen_flags: <defaults>
</compile_context>

<pallas_src>
import functools

import jax
import jax.numpy as jnp
from jax import lax
from jax.experimental import pallas as pl
from jax.experimental.pallas import tpu as pltpu


def _sgns_fused_kernel(in_lbl_ref, ctx_lbl_ref, gram_hi_ref, gram_lo_ref,
                       loss_ref, *, num_pos):
    """One batch tile (TB on the lane axis).

    Kernel-visible shapes:
      in_lbl_ref : [1, TB] int32   center-word ids (lane-dense)
      ctx_lbl_ref: [C, TB] int32   pos ++ neg context ids (lane-dense)
      gram_*_ref : [V, V ] bf16    hi/lo split of Gram = out_tab @ in_tab.T
      loss_ref   : [1, TB] f32     per-example loss
    """
    vocab = gram_hi_ref.shape[0]
    tb = in_lbl_ref.shape[1]
    ctx = ctx_lbl_ref.shape[0]
    zero = jnp.float32(0.0)

    # Vocab ids on the sublane axis, batch on the lane axis.
    iota_v = lax.broadcasted_iota(jnp.int32, (vocab, tb), 0)          # [V, TB]

    # --- MXU column-gather of the Gram matrix ------------------------------
    # scores[v, b] = in_tab[in_lbl[b]] · out_tab[v] = Gram[v, in_lbl[b]]
    # One-hot is exact in bf16; the hi+lo bf16 matmuls recover f32 accuracy.
    onehot_in = (iota_v == in_lbl_ref[...]).astype(jnp.bfloat16)      # [V, TB]
    scores = (
        jnp.dot(gram_hi_ref[...], onehot_in, preferred_element_type=jnp.float32)
        + jnp.dot(gram_lo_ref[...], onehot_in, preferred_element_type=jnp.float32)
    )                                                                  # [V, TB]

    # --- context select: only one [V, TB] mask live per context position ---
    acc = jnp.zeros((1, tb), jnp.float32)
    for c in range(ctx):                      # static unroll, trace-time signs
        lbl_c = ctx_lbl_ref[pl.ds(c, 1), :]                           # [1, TB]
        dot_c = jnp.sum(jnp.where(iota_v == lbl_c, scores, zero),
                        axis=0, keepdims=True)                        # [1, TB]
        z = dot_c if c < num_pos else -dot_c
        # numerically stable logsigmoid (matches F.logsigmoid)
        acc = acc + (jnp.minimum(z, zero) - jnp.log1p(jnp.exp(-jnp.abs(z))))

    loss_ref[...] = -acc                                               # lane-dense


def _pick_batch_tile(batch, max_tile=512):
    """Largest multiple-of-8 divisor of `batch`, capped at batch//2 and
    preferring an even number of grid steps (keeps both v7x TCs busy)."""
    if batch < 16:
        return batch
    cap = min(max_tile, batch // 2)
    best_any = best_even = None
    t = 8
    while t <= cap:
        if batch % t == 0:
            best_any = t
            if (batch // t) % 2 == 0:
                best_even = t
        t += 8
    if best_even is not None:
        return best_even
    if best_any is not None:
        return best_any
    return batch


def sgns_loss_pallas(in_table, out_table, input_labels, pos_labels, neg_labels,
                     *, batch_tile=None):
    """in_table/out_table: [V, D]; labels: [B], [B, P], [B, N] -> loss [B]."""
    batch = input_labels.shape[0]
    num_pos = pos_labels.shape[1]
    vocab, _ = in_table.shape
    ctx = num_pos + neg_labels.shape[1]

    tb = batch_tile if batch_tile is not None else _pick_batch_tile(batch)
    assert batch % tb == 0, "batch must be divisible by the batch tile"
    num_tiles = batch // tb

    # Tiny [V, V] Gram matrix (≈4 KiB for a char vocab), computed once per
    # forward in the wrapper; exact f32 contraction, then bf16 hi/lo split so
    # the in-kernel MXU gather stays on the native bf16 path at f32 accuracy.
    gram = jnp.einsum("vd,ud->vu", out_table, in_table,
                      precision=jax.lax.Precision.HIGHEST)             # [V, V]
    gram_hi = gram.astype(jnp.bfloat16)
    gram_lo = (gram - gram_hi.astype(jnp.float32)).astype(jnp.bfloat16)

    # Lane-dense label layout: batch on the last (lane) axis.
    in_lbl = input_labels.reshape(1, batch).astype(jnp.int32)          # [1, B]
    ctx_lbl = jnp.concatenate(
        [pos_labels.astype(jnp.int32), neg_labels.astype(jnp.int32)],
        axis=1).T                                                      # [C, B]

    kernel = functools.partial(_sgns_fused_kernel, num_pos=num_pos)

    out = pl.pallas_call(
        kernel,
        out_shape=jax.ShapeDtypeStruct((1, batch), jnp.float32),
        grid=(num_tiles,),
        in_specs=[
            pl.BlockSpec((1, tb), lambda i: (0, i)),            # center ids
            pl.BlockSpec((ctx, tb), lambda i: (0, i)),          # pos ++ neg ids
            pl.BlockSpec((vocab, vocab), lambda i: (0, 0)),     # Gram hi (resident)
            pl.BlockSpec((vocab, vocab), lambda i: (0, 0)),     # Gram lo (resident)
        ],
        out_specs=pl.BlockSpec((1, tb), lambda i: (0, i)),
        compiler_params=pltpu.CompilerParams(
            dimension_semantics=("parallel",),
            vmem_limit_bytes=32 * 1024 * 1024,
        ),
    )(in_lbl, ctx_lbl, gram_hi, gram_lo)
    return out.reshape(batch)


class EmbeddingModelPallas:
    """JAX/Pallas port of the PyTorch EmbeddingModel (skip-gram neg sampling)."""

    def __init__(self, vocab_size, embed_size, key):
        self.vocab_size = vocab_size
        self.embed_size = embed_size
        k_in, k_out = jax.random.split(key)
        # nn.Embedding default init: N(0, 1)
        self.in_embed = jax.random.normal(
            k_in, (vocab_size, embed_size), dtype=jnp.float32)
        self.out_embed = jax.random.normal(
            k_out, (vocab_size, embed_size), dtype=jnp.float32)

    def forward(self, input_labels, pos_labels, neg_labels):
        return sgns_loss_pallas(self.in_embed, self.out_embed,
                                input_labels, pos_labels, neg_labels)

    def input_embedding(self):
        return self.in_embed


def _reference_loss(in_table, out_table, input_labels, pos_labels, neg_labels):
    """Pure-JAX reference mirroring the PyTorch forward."""
    in_e = jnp.take(in_table, input_labels, axis=0)          # [B, D]
    pos_e = jnp.take(out_table, pos_labels, axis=0)          # [B, P, D]
    neg_e = jnp.take(out_table, neg_labels, axis=0)          # [B, N, D]
    pos_dot = jnp.sum(pos_e * in_e[:, None, :], axis=-1)     # [B, P]
    neg_dot = jnp.sum(neg_e * (-in_e)[:, None, :], axis=-1)  # [B, N]
    logsig = lambda x: jnp.minimum(x, 0.0) - jnp.log1p(jnp.exp(-jnp.abs(x)))
    return -(jnp.sum(logsig(pos_dot), axis=1) + jnp.sum(logsig(neg_dot), axis=1))


if __name__ == "__main__":
    key = jax.random.PRNGKey(0)
    k_model, k_c, k_p, k_n = jax.random.split(key, 4)

    vocab_size = 32          # chars_size + 1 (synthetic SMILES char vocab)
    embed_size = 16
    batch = 256              # -> batch tile 128, grid=(2,), "parallel"
    window2 = 6              # window_size * 2
    K = 5                    # negatives per positive
    neg_count = window2 * K  # 30

    model = EmbeddingModelPallas(vocab_size, embed_size, k_model)

    input_labels = jax.random.randint(k_c, (batch,), 0, vocab_size, dtype=jnp.int32)
    pos_labels = jax.random.randint(k_p, (batch, window2), 0, vocab_size, dtype=jnp.int32)
    neg_labels = jax.random.randint(k_n, (batch, neg_count), 0, vocab_size, dtype=jnp.int32)

    loss = model.forward(input_labels, pos_labels, neg_labels)
    loss = jax.block_until_ready(loss)

    ref = _reference_loss(model.in_embed, model.out_embed,
                          input_labels, pos_labels, neg_labels)
    assert loss.shape == (batch,)
    max_err = float(jnp.max(jnp.abs(loss - ref)))
    assert jnp.allclose(loss, ref, atol=1e-4, rtol=1e-4), max_err

    print("KERNEL_OK")
</pallas_src>

<mosaic_0001>
module attributes {stable_mosaic.version = 11 : i64} {
  func.func @_sgns_fused_kernel(%arg0: i32, %arg1: memref<1x128xi32, #tpu.memory_space<vmem>>, %arg2: memref<36x128xi32, #tpu.memory_space<vmem>>, %arg3: memref<32x32xbf16, #tpu.memory_space<vmem>>, %arg4: memref<32x32xbf16, #tpu.memory_space<vmem>>, %arg5: memref<1x128xf32, #tpu.memory_space<vmem>>) attributes {dimension_semantics = [#tpu.dimension_semantics<parallel>], iteration_bounds = array<i64: 2>, scalar_prefetch = 0 : i64, scratch_operands = 0 : i64, tpu.core_type = #tpu.core_type<tc>, window_params = [{transform_indices = @transform_0, window_bounds = array<i64: 1, 128>}, {transform_indices = @transform_1, window_bounds = array<i64: 36, 128>}, {pipeline_mode = #tpu.pipeline_mode<synchronous>, transform_indices = @transform_2, window_bounds = array<i64: 32, 32>}, {pipeline_mode = #tpu.pipeline_mode<synchronous>, transform_indices = @transform_3, window_bounds = array<i64: 32, 32>}, {transform_indices = @transform_4, window_bounds = array<i64: 1, 128>}]} {
    %0 = tpu.iota {dimensions = array<i32: 0>} : vector<32x128xi32>
    %c0 = arith.constant 0 : index
    %c0_0 = arith.constant 0 : index
    %1 = vector.load %arg1[%c0, %c0_0] : memref<1x128xi32, #tpu.memory_space<vmem>>, vector<1x128xi32>
    %2 = vector.broadcast %1 : vector<1x128xi32> to vector<32x128xi32>
    %3 = arith.cmpi eq, %0, %2 : vector<32x128xi32>
    %4 = arith.extui %3 : vector<32x128xi1> to vector<32x128xi32>
    %5 = arith.sitofp %4 : vector<32x128xi32> to vector<32x128xf32>
    %6 = arith.truncf %5 : vector<32x128xf32> to vector<32x128xbf16>
    %c0_1 = arith.constant 0 : index
    %c0_2 = arith.constant 0 : index
    %7 = vector.load %arg3[%c0_1, %c0_2] : memref<32x32xbf16, #tpu.memory_space<vmem>>, vector<32x32xbf16>
    %cst = arith.constant dense<0.000000e+00> : vector<32x128xf32>
    %8 = tpu.matmul %7, %6, %cst {dimension_numbers = #tpu.dot_dimension_numbers<[1], [0], [0], [1], [0, 0, 1, 1], [], []>} : vector<32x32xbf16>, vector<32x128xbf16>, vector<32x128xf32> -> vector<32x128xf32>
    %c0_3 = arith.constant 0 : index
    %c0_4 = arith.constant 0 : index
    %9 = vector.load %arg4[%c0_3, %c0_4] : memref<32x32xbf16, #tpu.memory_space<vmem>>, vector<32x32xbf16>
    %cst_5 = arith.constant dense<0.000000e+00> : vector<32x128xf32>
    %10 = tpu.matmul %9, %6, %cst_5 {dimension_numbers = #tpu.dot_dimension_numbers<[1], [0], [0], [1], [0, 0, 1, 1], [], []>} : vector<32x32xbf16>, vector<32x128xbf16>, vector<32x128xf32> -> vector<32x128xf32>
    %11 = arith.addf %8, %10 : vector<32x128xf32>
    %cst_6 = arith.constant 0.000000e+00 : f32
    %12 = vector.broadcast %cst_6 : f32 to vector<1x128xf32>
    %c0_7 = arith.constant 0 : index
    %c0_8 = arith.constant 0 : index
    %13 = vector.load %arg2[%c0_7, %c0_8] : memref<36x128xi32, #tpu.memory_space<vmem>>, vector<1x128xi32>
    %14 = vector.broadcast %13 : vector<1x128xi32> to vector<32x128xi32>
    %15 = arith.cmpi eq, %0, %14 : vector<32x128xi32>
    %cst_9 = arith.constant 0.000000e+00 : f32
    %16 = vector.broadcast %cst_9 : f32 to vector<32x128xf32>
    %17 = arith.select %15, %11, %16 : vector<32x128xi1>, vector<32x128xf32>
    %cst_10 = arith.constant dense<0.000000e+00> : vector<128xf32>
    %18 = vector.multi_reduction <add>, %17, %cst_10 [0] : vector<32x128xf32> to vector<128xf32>
    %19 = vector.shape_cast %18 : vector<128xf32> to vector<1x128xf32>
    %cst_11 = arith.constant 0.000000e+00 : f32
    %20 = vector.broadcast %cst_11 : f32 to vector<1x128xf32>
    %21 = arith.minimumf %19, %20 : vector<1x128xf32>
    %22 = math.absf %19 : vector<1x128xf32>
    %cst_12 = arith.constant 0.000000e+00 : f32
    %23 = vector.broadcast %cst_12 : f32 to vector<1x128xf32>
    %24 = arith.subf %23, %22 : vector<1x128xf32>
    %25 = math.exp %24 : vector<1x128xf32>
    %26 = math.log1p %25 : vector<1x128xf32>
    %27 = arith.subf %21, %26 : vector<1x128xf32>
    %28 = arith.addf %12, %27 : vector<1x128xf32>
    %c1 = arith.constant 1 : index
    %c0_13 = arith.constant 0 : index
    %29 = vector.load %arg2[%c1, %c0_13] : memref<36x128xi32, #tpu.memory_space<vmem>>, vector<1x128xi32>
    %30 = vector.broadcast %29 : vector<1x128xi32> to vector<32x128xi32>
    %31 = arith.cmpi eq, %0, %30 : vector<32x128xi32>
    %cst_14 = arith.constant 0.000000e+00 : f32
    %32 = vector.broadcast %cst_14 : f32 to vector<32x128xf32>
    %33 = arith.select %31, %11, %32 : vector<32x128xi1>, vector<32x128xf32>
    %cst_15 = arith.constant dense<0.000000e+00> : vector<128xf32>
    %34 = vector.multi_reduction <add>, %33, %cst_15 [0] : vector<32x128xf32> to vector<128xf32>
    %35 = vector.shape_cast %34 : vector<128xf32> to vector<1x128xf32>
    %cst_16 = arith.constant 0.000000e+00 : f32
    %36 = vector.broadcast %cst_16 : f32 to vector<1x128xf32>
    %37 = arith.minimumf %35, %36 : vector<1x128xf32>
    %38 = math.absf %35 : vector<1x128xf32>
    %cst_17 = arith.constant 0.000000e+00 : f32
    %39 = vector.broadcast %cst_17 : f32 to vector<1x128xf32>
    %40 = arith.subf %39, %38 : vector<1x128xf32>
    %41 = math.exp %40 : vector<1x128xf32>
    %42 = math.log1p %41 : vector<1x128xf32>
    %43 = arith.subf %37, %42 : vector<1x128xf32>
    %44 = arith.addf %28, %43 : vector<1x128xf32>
    %c2 = arith.constant 2 : index
    %c0_18 = arith.constant 0 : index
    %45 = vector.load %arg2[%c2, %c0_18] : memref<36x128xi32, #tpu.memory_space<vmem>>, vector<1x128xi32>
    %46 = vector.broadcast %45 : vector<1x128xi32> to vector<32x128xi32>
    %47 = arith.cmpi eq, %0, %46 : vector<32x128xi32>
    %cst_19 = arith.constant 0.000000e+00 : f32
    %48 = vector.broadcast %cst_19 : f32 to vector<32x128xf32>
    %49 = arith.select %47, %11, %48 : vector<32x128xi1>, vector<32x128xf32>
    %cst_20 = arith.constant dense<0.000000e+00> : vector<128xf32>
    %50 = vector.multi_reduction <add>, %49, %cst_20 [0] : vector<32x128xf32> to vector<128xf32>
    %51 = vector.shape_cast %50 : vector<128xf32> to vector<1x128xf32>
    %cst_21 = arith.constant 0.000000e+00 : f32
    %52 = vector.broadcast %cst_21 : f32 to vector<1x128xf32>
    %53 = arith.minimumf %51, %52 : vector<1x128xf32>
    %54 = math.absf %51 : vector<1x128xf32>
    %cst_22 = arith.constant 0.000000e+00 : f32
    %55 = vector.broadcast %cst_22 : f32 to vector<1x128xf32>
    %56 = arith.subf %55, %54 : vector<1x128xf32>
    %57 = math.exp %56 : vector<1x128xf32>
    %58 = math.log1p %57 : vector<1x128xf32>
    %59 = arith.subf %53, %58 : vector<1x128xf32>
    %60 = arith.addf %44, %59 : vector<1x128xf32>
    %c3 = arith.constant 3 : index
    %c0_23 = arith.constant 0 : index
    %61 = vector.load %arg2[%c3, %c0_23] : memref<36x128xi32, #tpu.memory_space<vmem>>, vector<1x128xi32>
    %62 = vector.broadcast %61 : vector<1x128xi32> to vector<32x128xi32>
    %63 = arith.cmpi eq, %0, %62 : vector<32x128xi32>
    %cst_24 = arith.constant 0.000000e+00 : f32
    %64 = vector.broadcast %cst_24 : f32 to vector<32x128xf32>
    %65 = arith.select %63, %11, %64 : vector<32x128xi1>, vector<32x128xf32>
    %cst_25 = arith.constant dense<0.000000e+00> : vector<128xf32>
    %66 = vector.multi_reduction <add>, %65, %cst_25 [0] : vector<32x128xf32> to vector<128xf32>
    %67 = vector.shape_cast %66 : vector<128xf32> to vector<1x128xf32>
    %cst_26 = arith.constant 0.000000e+00 : f32
    %68 = vector.broadcast %cst_26 : f32 to vector<1x128xf32>
    %69 = arith.minimumf %67, %68 : vector<1x128xf32>
    %70 = math.absf %67 : vector<1x128xf32>
    %cst_27 = arith.constant 0.000000e+00 : f32
    %71 = vector.broadcast %cst_27 : f32 to vector<1x128xf32>
    %72 = arith.subf %71, %70 : vector<1x128xf32>
    %73 = math.exp %72 : vector<1x128xf32>
    %74 = math.log1p %73 : vector<1x128xf32>
    %75 = arith.subf %69, %74 : vector<1x128xf32>
    %76 = arith.addf %60, %75 : vector<1x128xf32>
    %c4 = arith.constant 4 : index
    %c0_28 = arith.constant 0 : index
    %77 = vector.load %arg2[%c4, %c0_28] : memref<36x128xi32, #tpu.memory_space<vmem>>, vector<1x128xi32>
    %78 = vector.broadcast %77 : vector<1x128xi32> to vector<32x128xi32>
    %79 = arith.cmpi eq, %0, %78 : vector<32x128xi32>
    %cst_29 = arith.constant 0.000000e+00 : f32
    %80 = vector.broadcast %cst_29 : f32 to vector<32x128xf32>
    %81 = arith.select %79, %11, %80 : vector<32x128xi1>, vector<32x128xf32>
    %cst_30 = arith.constant dense<0.000000e+00> : vector<128xf32>
    %82 = vector.multi_reduction <add>, %81, %cst_30 [0] : vector<32x128xf32> to vector<128xf32>
    %83 = vector.shape_cast %82 : vector<128xf32> to vector<1x128xf32>
    %cst_31 = arith.constant 0.000000e+00 : f32
    %84 = vector.broadcast %cst_31 : f32 to vector<1x128xf32>
    %85 = arith.minimumf %83, %84 : vector<1x128xf32>
    %86 = math.absf %83 : vector<1x128xf32>
    %cst_32 = arith.constant 0.000000e+00 : f32
    %87 = vector.broadcast %cst_32 : f32 to vector<1x128xf32>
    %88 = arith.subf %87, %86 : vector<1x128xf32>
    %89 = math.exp %88 : vector<1x128xf32>
    %90 = math.log1p %89 : vector<1x128xf32>
    %91 = arith.subf %85, %90 : vector<1x128xf32>
    %92 = arith.addf %76, %91 : vector<1x128xf32>
    %c5 = arith.constant 5 : index
    %c0_33 = arith.constant 0 : index
    %93 = vector.load %arg2[%c5, %c0_33] : memref<36x128xi32, #tpu.memory_space<vmem>>, vector<1x128xi32>
    %94 = vector.broadcast %93 : vector<1x128xi32> to vector<32x128xi32>
    %95 = arith.cmpi eq, %0, %94 : vector<32x128xi32>
    %cst_34 = arith.constant 0.000000e+00 : f32
    %96 = vector.broadcast %cst_34 : f32 to vector<32x128xf32>
    %97 = arith.select %95, %11, %96 : vector<32x128xi1>, vector<32x128xf32>
    %cst_35 = arith.constant dense<0.000000e+00> : vector<128xf32>
    %98 = vector.multi_reduction <add>, %97, %cst_35 [0] : vector<32x128xf32> to vector<128xf32>
    %99 = vector.shape_cast %98 : vector<128xf32> to vector<1x128xf32>
    %cst_36 = arith.constant 0.000000e+00 : f32
    %100 = vector.broadcast %cst_36 : f32 to vector<1x128xf32>
    %101 = arith.minimumf %99, %100 : vector<1x128xf32>
    %102 = math.absf %99 : vector<1x128xf32>
    %cst_37 = arith.constant 0.000000e+00 : f32
    %103 = vector.broadcast %cst_37 : f32 to vector<1x128xf32>
    %104 = arith.subf %103, %102 : vector<1x128xf32>
    %105 = math.exp %104 : vector<1x128xf32>
    %106 = math.log1p %105 : vector<1x128xf32>
    %107 = arith.subf %101, %106 : vector<1x128xf32>
    %108 = arith.addf %92, %107 : vector<1x128xf32>
    %c6 = arith.constant 6 : index
    %c0_38 = arith.constant 0 : index
    %109 = vector.load %arg2[%c6, %c0_38] : memref<36x128xi32, #tpu.memory_space<vmem>>, vector<1x128xi32>
    %110 = vector.broadcast %109 : vector<1x128xi32> to vector<32x128xi32>
    %111 = arith.cmpi eq, %0, %110 : vector<32x128xi32>
    %cst_39 = arith.constant 0.000000e+00 : f32
    %112 = vector.broadcast %cst_39 : f32 to vector<32x128xf32>
    %113 = arith.select %111, %11, %112 : vector<32x128xi1>, vector<32x128xf32>
    %cst_40 = arith.constant dense<0.000000e+00> : vector<128xf32>
    %114 = vector.multi_reduction <add>, %113, %cst_40 [0] : vector<32x128xf32> to vector<128xf32>
    %115 = vector.shape_cast %114 : vector<128xf32> to vector<1x128xf32>
    %cst_41 = arith.constant 0.000000e+00 : f32
    %116 = vector.broadcast %cst_41 : f32 to vector<1x128xf32>
    %117 = arith.subf %116, %115 : vector<1x128xf32>
    %cst_42 = arith.constant 0.000000e+00 : f32
    %118 = vector.broadcast %cst_42 : f32 to vector<1x128xf32>
    %119 = arith.minimumf %117, %118 : vector<1x128xf32>
    %120 = math.absf %117 : vector<1x128xf32>
    %cst_43 = arith.constant 0.000000e+00 : f32
    %121 = vector.broadcast %cst_43 : f32 to vector<1x128xf32>
    %122 = arith.subf %121, %120 : vector<1x128xf32>
    %123 = math.exp %122 : vector<1x128xf32>
    %124 = math.log1p %123 : vector<1x128xf32>
    %125 = arith.subf %119, %124 : vector<1x128xf32>
    %126 = arith.addf %108, %125 : vector<1x128xf32>
    %c7 = arith.constant 7 : index
    %c0_44 = arith.constant 0 : index
    %127 = vector.load %arg2[%c7, %c0_44] : memref<36x128xi32, #tpu.memory_space<vmem>>, vector<1x128xi32>
    %128 = vector.broadcast %127 : vector<1x128xi32> to vector<32x128xi32>
    %129 = arith.cmpi eq, %0, %128 : vector<32x128xi32>
    %cst_45 = arith.constant 0.000000e+00 : f32
    %130 = vector.broadcast %cst_45 : f32 to vector<32x128xf32>
    %131 = arith.select %129, %11, %130 : vector<32x128xi1>, vector<32x128xf32>
    %cst_46 = arith.constant dense<0.000000e+00> : vector<128xf32>
    %132 = vector.multi_reduction <add>, %131, %cst_46 [0] : vector<32x128xf32> to vector<128xf32>
    %133 = vector.shape_cast %132 : vector<128xf32> to vector<1x128xf32>
    %cst_47 = arith.constant 0.000000e+00 : f32
    %134 = vector.broadcast %cst_47 : f32 to vector<1x128xf32>
    %135 = arith.subf %134, %133 : vector<1x128xf32>
    %cst_48 = arith.constant 0.000000e+00 : f32
    %136 = vector.broadcast %cst_48 : f32 to vector<1x128xf32>
    %137 = arith.minimumf %135, %136 : vector<1x128xf32>
    %138 = math.absf %135 : vector<1x128xf32>
    %cst_49 = arith.constant 0.000000e+00 : f32
    %139 = vector.broadcast %cst_49 : f32 to vector<1x128xf32>
    %140 = arith.subf %139, %138 : vector<1x128xf32>
    %141 = math.exp %140 : vector<1x128xf32>
    %142 = math.log1p %141 : vector<1x128xf32>
    %143 = arith.subf %137, %142 : vector<1x128xf32>
    %144 = arith.addf %126, %143 : vector<1x128xf32>
    %c8 = arith.constant 8 : index
    %c0_50 = arith.constant 0 : index
    %145 = vector.load %arg2[%c8, %c0_50] : memref<36x128xi32, #tpu.memory_space<vmem>>, vector<1x128xi32>
    %146 = vector.broadcast %145 : vector<1x128xi32> to vector<32x128xi32>
    %147 = arith.cmpi eq, %0, %146 : vector<32x128xi32>
    %cst_51 = arith.constant 0.000000e+00 : f32
    %148 = vector.broadcast %cst_51 : f32 to vector<32x128xf32>
    %149 = arith.select %147, %11, %148 : vector<32x128xi1>, vector<32x128xf32>
    %cst_52 = arith.constant dense<0.000000e+00> : vector<128xf32>
    %150 = vector.multi_reduction <add>, %149, %cst_52 [0] : vector<32x128xf32> to vector<128xf32>
    %151 = vector.shape_cast %150 : vector<128xf32> to vector<1x128xf32>
    %cst_53 = arith.constant 0.000000e+00 : f32
    %152 = vector.broadcast %cst_53 : f32 to vector<1x128xf32>
    %153 = arith.subf %152, %151 : vector<1x128xf32>
    %cst_54 = arith.constant 0.000000e+00 : f32
    %154 = vector.broadcast %cst_54 : f32 to vector<1x128xf32>
    %155 = arith.minimumf %153, %154 : vector<1x128xf32>
    %156 = math.absf %153 : vector<1x128xf32>
    %cst_55 = arith.constant 0.000000e+00 : f32
    %157 = vector.broadcast %cst_55 : f32 to vector<1x128xf32>
    %158 = arith.subf %157, %156 : vector<1x128xf32>
    %159 = math.exp %158 : vector<1x128xf32>
    %160 = math.log1p %159 : vector<1x128xf32>
    %161 = arith.subf %155, %160 : vector<1x128xf32>
    %162 = arith.addf %144, %161 : vector<1x128xf32>
    %c9 = arith.constant 9 : index
    %c0_56 = arith.constant 0 : index
    %163 = vector.load %arg2[%c9, %c0_56] : memref<36x128xi32, #tpu.memory_space<vmem>>, vector<1x128xi32>
    %164 = vector.broadcast %163 : vector<1x128xi32> to vector<32x128xi32>
    %165 = arith.cmpi eq, %0, %164 : vector<32x128xi32>
    %cst_57 = arith.constant 0.000000e+00 : f32
    %166 = vector.broadcast %cst_57 : f32 to vector<32x128xf32>
    %167 = arith.select %165, %11, %166 : vector<32x128xi1>, vector<32x128xf32>
    %cst_58 = arith.constant dense<0.000000e+00> : vector<128xf32>
    %168 = vector.multi_reduction <add>, %167, %cst_58 [0] : vector<32x128xf32> to vector<128xf32>
    %169 = vector.shape_cast %168 : vector<128xf32> to vector<1x128xf32>
    %cst_59 = arith.constant 0.000000e+00 : f32
    %170 = vector.broadcast %cst_59 : f32 to vector<1x128xf32>
    %171 = arith.subf %170, %169 : vector<1x128xf32>
    %cst_60 = arith.constant 0.000000e+00 : f32
    %172 = vector.broadcast %cst_60 : f32 to vector<1x128xf32>
    %173 = arith.minimumf %171, %172 : vector<1x128xf32>
    %174 = math.absf %171 : vector<1x128xf32>
    %cst_61 = arith.constant 0.000000e+00 : f32
    %175 = vector.broadcast %cst_61 : f32 to vector<1x128xf32>
    %176 = arith.subf %175, %174 : vector<1x128xf32>
    %177 = math.exp %176 : vector<1x128xf32>
    %178 = math.log1p %177 : vector<1x128xf32>
    %179 = arith.subf %173, %178 : vector<1x128xf32>
    %180 = arith.addf %162, %179 : vector<1x128xf32>
    %c10 = arith.constant 10 : index
    %c0_62 = arith.constant 0 : index
    %181 = vector.load %arg2[%c10, %c0_62] : memref<36x128xi32, #tpu.memory_space<vmem>>, vector<1x128xi32>
    %182 = vector.broadcast %181 : vector<1x128xi32> to vector<32x128xi32>
    %183 = arith.cmpi eq, %0, %182 : vector<32x128xi32>
    %cst_63 = arith.constant 0.000000e+00 : f32
    %184 = vector.broadcast %cst_63 : f32 to vector<32x128xf32>
    %185 = arith.select %183, %11, %184 : vector<32x128xi1>, vector<32x128xf32>
    %cst_64 = arith.constant dense<0.000000e+00> : vector<128xf32>
    %186 = vector.multi_reduction <add>, %185, %cst_64 [0] : vector<32x128xf32> to vector<128xf32>
    %187 = vector.shape_cast %186 : vector<128xf32> to vector<1x128xf32>
    %cst_65 = arith.constant 0.000000e+00 : f32
    %188 = vector.broadcast %cst_65 : f32 to vector<1x128xf32>
    %189 = arith.subf %188, %187 : vector<1x128xf32>
    %cst_66 = arith.constant 0.000000e+00 : f32
    %190 = vector.broadcast %cst_66 : f32 to vector<1x128xf32>
    %191 = arith.minimumf %189, %190 : vector<1x128xf32>
    %192 = math.absf %189 : vector<1x128xf32>
    %cst_67 = arith.constant 0.000000e+00 : f32
    %193 = vector.broadcast %cst_67 : f32 to vector<1x128xf32>
    %194 = arith.subf %193, %192 : vector<1x128xf32>
    %195 = math.exp %194 : vector<1x128xf32>
    %196 = math.log1p %195 : vector<1x128xf32>
    %197 = arith.subf %191, %196 : vector<1x128xf32>
    %198 = arith.addf %180, %197 : vector<1x128xf32>
    %c11 = arith.constant 11 : index
    %c0_68 = arith.constant 0 : index
    %199 = vector.load %arg2[%c11, %c0_68] : memref<36x128xi32, #tpu.memory_space<vmem>>, vector<1x128xi32>
    %200 = vector.broadcast %199 : vector<1x128xi32> to vector<32x128xi32>
    %201 = arith.cmpi eq, %0, %200 : vector<32x128xi32>
    %cst_69 = arith.constant 0.000000e+00 : f32
    %202 = vector.broadcast %cst_69 : f32 to vector<32x128xf32>
    %203 = arith.select %201, %11, %202 : vector<32x128xi1>, vector<32x128xf32>
    %cst_70 = arith.constant dense<0.000000e+00> : vector<128xf32>
    %204 = vector.multi_reduction <add>, %203, %cst_70 [0] : vector<32x128xf32> to vector<128xf32>
    %205 = vector.shape_cast %204 : vector<128xf32> to vector<1x128xf32>
    %cst_71 = arith.constant 0.000000e+00 : f32
    %206 = vector.broadcast %cst_71 : f32 to vector<1x128xf32>
    %207 = arith.subf %206, %205 : vector<1x128xf32>
    %cst_72 = arith.constant 0.000000e+00 : f32
    %208 = vector.broadcast %cst_72 : f32 to vector<1x128xf32>
    %209 = arith.minimumf %207, %208 : vector<1x128xf32>
    %210 = math.absf %207 : vector<1x128xf32>
    %cst_73 = arith.constant 0.000000e+00 : f32
    %211 = vector.broadcast %cst_73 : f32 to vector<1x128xf32>
    %212 = arith.subf %211, %210 : vector<1x128xf32>
    %213 = math.exp %212 : vector<1x128xf32>
    %214 = math.log1p %213 : vector<1x128xf32>
    %215 = arith.subf %209, %214 : vector<1x128xf32>
    %216 = arith.addf %198, %215 : vector<1x128xf32>
    %c12 = arith.constant 12 : index
    %c0_74 = arith.constant 0 : index
    %217 = vector.load %arg2[%c12, %c0_74] : memref<36x128xi32, #tpu.memory_space<vmem>>, vector<1x128xi32>
    %218 = vector.broadcast %217 : vector<1x128xi32> to vector<32x128xi32>
    %219 = arith.cmpi eq, %0, %218 : vector<32x128xi32>
    %cst_75 = arith.constant 0.000000e+00 : f32
    %220 = vector.broadcast %cst_75 : f32 to vector<32x128xf32>
    %221 = arith.select %219, %11, %220 : vector<32x128xi1>, vector<32x128xf32>
    %cst_76 = arith.constant dense<0.000000e+00> : vector<128xf32>
    %222 = vector.multi_reduction <add>, %221, %cst_76 [0] : vector<32x128xf32> to vector<128xf32>
    %223 = vector.shape_cast %222 : vector<128xf32> to vector<1x128xf32>
    %cst_77 = arith.constant 0.000000e+00 : f32
    %224 = vector.broadcast %cst_77 : f32 to vector<1x128xf32>
    %225 = arith.subf %224, %223 : vector<1x128xf32>
    %cst_78 = arith.constant 0.000000e+00 : f32
    %226 = vector.broadcast %cst_78 : f32 to vector<1x128xf32>
    %227 = arith.minimumf %225, %226 : vector<1x128xf32>
    %228 = math.absf %225 : vector<1x128xf32>
    %cst_79 = arith.constant 0.000000e+00 : f32
    %229 = vector.broadcast %cst_79 : f32 to vector<1x128xf32>
    %230 = arith.subf %229, %228 : vector<1x128xf32>
    %231 = math.exp %230 : vector<1x128xf32>
    %232 = math.log1p %231 : vector<1x128xf32>
    %233 = arith.subf %227, %232 : vector<1x128xf32>
    %234 = arith.addf %216, %233 : vector<1x128xf32>
    %c13 = arith.constant 13 : index
    %c0_80 = arith.constant 0 : index
    %235 = vector.load %arg2[%c13, %c0_80] : memref<36x128xi32, #tpu.memory_space<vmem>>, vector<1x128xi32>
    %236 = vector.broadcast %235 : vector<1x128xi32> to vector<32x128xi32>
    %237 = arith.cmpi eq, %0, %236 : vector<32x128xi32>
    %cst_81 = arith.constant 0.000000e+00 : f32
    %238 = vector.broadcast %cst_81 : f32 to vector<32x128xf32>
    %239 = arith.select %237, %11, %238 : vector<32x128xi1>, vector<32x128xf32>
    %cst_82 = arith.constant dense<0.000000e+00> : vector<128xf32>
    %240 = vector.multi_reduction <add>, %239, %cst_82 [0] : vector<32x128xf32> to vector<128xf32>
    %241 = vector.shape_cast %240 : vector<128xf32> to vector<1x128xf32>
    %cst_83 = arith.constant 0.000000e+00 : f32
    %242 = vector.broadcast %cst_83 : f32 to vector<1x128xf32>
    %243 = arith.subf %242, %241 : vector<1x128xf32>
    %cst_84 = arith.constant 0.000000e+00 : f32
    %244 = vector.broadcast %cst_84 : f32 to vector<1x128xf32>
    %245 = arith.minimumf %243, %244 : vector<1x128xf32>
    %246 = math.absf %243 : vector<1x128xf32>
    %cst_85 = arith.constant 0.000000e+00 : f32
    %247 = vector.broadcast %cst_85 : f32 to vector<1x128xf32>
    %248 = arith.subf %247, %246 : vector<1x128xf32>
    %249 = math.exp %248 : vector<1x128xf32>
    %250 = math.log1p %249 : vector<1x128xf32>
    %251 = arith.subf %245, %250 : vector<1x128xf32>
    %252 = arith.addf %234, %251 : vector<1x128xf32>
    %c14 = arith.constant 14 : index
    %c0_86 = arith.constant 0 : index
    %253 = vector.load %arg2[%c14, %c0_86] : memref<36x128xi32, #tpu.memory_space<vmem>>, vector<1x128xi32>
    %254 = vector.broadcast %253 : vector<1x128xi32> to vector<32x128xi32>
    %255 = arith.cmpi eq, %0, %254 : vector<32x128xi32>
    %cst_87 = arith.constant 0.000000e+00 : f32
    %256 = vector.broadcast %cst_87 : f32 to vector<32x128xf32>
    %257 = arith.select %255, %11, %256 : vector<32x128xi1>, vector<32x128xf32>
    %cst_88 = arith.constant dense<0.000000e+00> : vector<128xf32>
    %258 = vector.multi_reduction <add>, %257, %cst_88 [0] : vector<32x128xf32> to vector<128xf32>
    %259 = vector.shape_cast %258 : vector<128xf32> to vector<1x128xf32>
    %cst_89 = arith.constant 0.000000e+00 : f32
    %260 = vector.broadcast %cst_89 : f32 to vector<1x128xf32>
    %261 = arith.subf %260, %259 : vector<1x128xf32>
    %cst_90 = arith.constant 0.000000e+00 : f32
    %262 = vector.broadcast %cst_90 : f32 to vector<1x128xf32>
    %263 = arith.minimumf %261, %262 : vector<1x128xf32>
    %264 = math.absf %261 : vector<1x128xf32>
    %cst_91 = arith.constant 0.000000e+00 : f32
    %265 = vector.broadcast %cst_91 : f32 to vector<1x128xf32>
    %266 = arith.subf %265, %264 : vector<1x128xf32>
    %267 = math.exp %266 : vector<1x128xf32>
    %268 = math.log1p %267 : vector<1x128xf32>
    %269 = arith.subf %263, %268 : vector<1x128xf32>
    %270 = arith.addf %252, %269 : vector<1x128xf32>
    %c15 = arith.constant 15 : index
    %c0_92 = arith.constant 0 : index
    %271 = vector.load %arg2[%c15, %c0_92] : memref<36x128xi32, #tpu.memory_space<vmem>>, vector<1x128xi32>
    %272 = vector.broadcast %271 : vector<1x128xi32> to vector<32x128xi32>
    %273 = arith.cmpi eq, %0, %272 : vector<32x128xi32>
    %cst_93 = arith.constant 0.000000e+00 : f32
    %274 = vector.broadcast %cst_93 : f32 to vector<32x128xf32>
    %275 = arith.select %273, %11, %274 : vector<32x128xi1>, vector<32x128xf32>
    %cst_94 = arith.constant dense<0.000000e+00> : vector<128xf32>
    %276 = vector.multi_reduction <add>, %275, %cst_94 [0] : vector<32x128xf32> to vector<128xf32>
    %277 = vector.shape_cast %276 : vector<128xf32> to vector<1x128xf32>
    %cst_95 = arith.constant 0.000000e+00 : f32
    %278 = vector.broadcast %cst_95 : f32 to vector<1x128xf32>
    %279 = arith.subf %278, %277 : vector<1x128xf32>
    %cst_96 = arith.constant 0.000000e+00 : f32
    %280 = vector.broadcast %cst_96 : f32 to vector<1x128xf32>
    %281 = arith.minimumf %279, %280 : vector<1x128xf32>
    %282 = math.absf %279 : vector<1x128xf32>
    %cst_97 = arith.constant 0.000000e+00 : f32
    %283 = vector.broadcast %cst_97 : f32 to vector<1x128xf32>
    %284 = arith.subf %283, %282 : vector<1x128xf32>
    %285 = math.exp %284 : vector<1x128xf32>
    %286 = math.log1p %285 : vector<1x128xf32>
    %287 = arith.subf %281, %286 : vector<1x128xf32>
    %288 = arith.addf %270, %287 : vector<1x128xf32>
    %c16 = arith.constant 16 : index
    %c0_98 = arith.constant 0 : index
    %289 = vector.load %arg2[%c16, %c0_98] : memref<36x128xi32, #tpu.memory_space<vmem>>, vector<1x128xi32>
    %290 = vector.broadcast %289 : vector<1x128xi32> to vector<32x128xi32>
    %291 = arith.cmpi eq, %0, %290 : vector<32x128xi32>
    %cst_99 = arith.constant 0.000000e+00 : f32
    %292 = vector.broadcast %cst_99 : f32 to vector<32x128xf32>
    %293 = arith.select %291, %11, %292 : vector<32x128xi1>, vector<32x128xf32>
    %cst_100 = arith.constant dense<0.000000e+00> : vector<128xf32>
    %294 = vector.multi_reduction <add>, %293, %cst_100 [0] : vector<32x128xf32> to vector<128xf32>
    %295 = vector.shape_cast %294 : vector<128xf32> to vector<1x128xf32>
    %cst_101 = arith.constant 0.000000e+00 : f32
    %296 = vector.broadcast %cst_101 : f32 to vector<1x128xf32>
    %297 = arith.subf %296, %295 : vector<1x128xf32>
    %cst_102 = arith.constant 0.000000e+00 : f32
    %298 = vector.broadcast %cst_102 : f32 to vector<1x128xf32>
    %299 = arith.minimumf %297, %298 : vector<1x128xf32>
    %300 = math.absf %297 : vector<1x128xf32>
    %cst_103 = arith.constant 0.000000e+00 : f32
    %301 = vector.broadcast %cst_103 : f32 to vector<1x128xf32>
    %302 = arith.subf %301, %300 : vector<1x128xf32>
    %303 = math.exp %302 : vector<1x128xf32>
    %304 = math.log1p %303 : vector<1x128xf32>
    %305 = arith.subf %299, %304 : vector<1x128xf32>
    %306 = arith.addf %288, %305 : vector<1x128xf32>
    %c17 = arith.constant 17 : index
    %c0_104 = arith.constant 0 : index
    %307 = vector.load %arg2[%c17, %c0_104] : memref<36x128xi32, #tpu.memory_space<vmem>>, vector<1x128xi32>
    %308 = vector.broadcast %307 : vector<1x128xi32> to vector<32x128xi32>
    %309 = arith.cmpi eq, %0, %308 : vector<32x128xi32>
    %cst_105 = arith.constant 0.000000e+00 : f32
    %310 = vector.broadcast %cst_105 : f32 to vector<32x128xf32>
    %311 = arith.select %309, %11, %310 : vector<32x128xi1>, vector<32x128xf32>
    %cst_106 = arith.constant dense<0.000000e+00> : vector<128xf32>
    %312 = vector.multi_reduction <add>, %311, %cst_106 [0] : vector<32x128xf32> to vector<128xf32>
    %313 = vector.shape_cast %312 : vector<128xf32> to vector<1x128xf32>
    %cst_107 = arith.constant 0.000000e+00 : f32
    %314 = vector.broadcast %cst_107 : f32 to vector<1x128xf32>
    %315 = arith.subf %314, %313 : vector<1x128xf32>
    %cst_108 = arith.constant 0.000000e+00 : f32
    %316 = vector.broadcast %cst_108 : f32 to vector<1x128xf32>
    %317 = arith.minimumf %315, %316 : vector<1x128xf32>
    %318 = math.absf %315 : vector<1x128xf32>
    %cst_109 = arith.constant 0.000000e+00 : f32
    %319 = vector.broadcast %cst_109 : f32 to vector<1x128xf32>
    %320 = arith.subf %319, %318 : vector<1x128xf32>
    %321 = math.exp %320 : vector<1x128xf32>
    %322 = math.log1p %321 : vector<1x128xf32>
    %323 = arith.subf %317, %322 : vector<1x128xf32>
    %324 = arith.addf %306, %323 : vector<1x128xf32>
    %c18 = arith.constant 18 : index
    %c0_110 = arith.constant 0 : index
    %325 = vector.load %arg2[%c18, %c0_110] : memref<36x128xi32, #tpu.memory_space<vmem>>, vector<1x128xi32>
    %326 = vector.broadcast %325 : vector<1x128xi32> to vector<32x128xi32>
    %327 = arith.cmpi eq, %0, %326 : vector<32x128xi32>
    %cst_111 = arith.constant 0.000000e+00 : f32
    %328 = vector.broadcast %cst_111 : f32 to vector<32x128xf32>
    %329 = arith.select %327, %11, %328 : vector<32x128xi1>, vector<32x128xf32>
    %cst_112 = arith.constant dense<0.000000e+00> : vector<128xf32>
    %330 = vector.multi_reduction <add>, %329, %cst_112 [0] : vector<32x128xf32> to vector<128xf32>
    %331 = vector.shape_cast %330 : vector<128xf32> to vector<1x128xf32>
    %cst_113 = arith.constant 0.000000e+00 : f32
    %332 = vector.broadcast %cst_113 : f32 to vector<1x128xf32>
    %333 = arith.subf %332, %331 : vector<1x128xf32>
    %cst_114 = arith.constant 0.000000e+00 : f32
    %334 = vector.broadcast %cst_114 : f32 to vector<1x128xf32>
    %335 = arith.minimumf %333, %334 : vector<1x128xf32>
    %336 = math.absf %333 : vector<1x128xf32>
    %cst_115 = arith.constant 0.000000e+00 : f32
    %337 = vector.broadcast %cst_115 : f32 to vector<1x128xf32>
    %338 = arith.subf %337, %336 : vector<1x128xf32>
    %339 = math.exp %338 : vector<1x128xf32>
    %340 = math.log1p %339 : vector<1x128xf32>
    %341 = arith.subf %335, %340 : vector<1x128xf32>
    %342 = arith.addf %324, %341 : vector<1x128xf32>
    %c19 = arith.constant 19 : index
    %c0_116 = arith.constant 0 : index
    %343 = vector.load %arg2[%c19, %c0_116] : memref<36x128xi32, #tpu.memory_space<vmem>>, vector<1x128xi32>
    %344 = vector.broadcast %343 : vector<1x128xi32> to vector<32x128xi32>
    %345 = arith.cmpi eq, %0, %344 : vector<32x128xi32>
    %cst_117 = arith.constant 0.000000e+00 : f32
    %346 = vector.broadcast %cst_117 : f32 to vector<32x128xf32>
    %347 = arith.select %345, %11, %346 : vector<32x128xi1>, vector<32x128xf32>
    %cst_118 = arith.constant dense<0.000000e+00> : vector<128xf32>
    %348 = vector.multi_reduction <add>, %347, %cst_118 [0] : vector<32x128xf32> to vector<128xf32>
    %349 = vector.shape_cast %348 : vector<128xf32> to vector<1x128xf32>
    %cst_119 = arith.constant 0.000000e+00 : f32
    %350 = vector.broadcast %cst_119 : f32 to vector<1x128xf32>
    %351 = arith.subf %350, %349 : vector<1x128xf32>
    %cst_120 = arith.constant 0.000000e+00 : f32
    %352 = vector.broadcast %cst_120 : f32 to vector<1x128xf32>
    %353 = arith.minimumf %351, %352 : vector<1x128xf32>
    %354 = math.absf %351 : vector<1x128xf32>
    %cst_121 = arith.constant 0.000000e+00 : f32
    %355 = vector.broadcast %cst_121 : f32 to vector<1x128xf32>
    %356 = arith.subf %355, %354 : vector<1x128xf32>
    %357 = math.exp %356 : vector<1x128xf32>
    %358 = math.log1p %357 : vector<1x128xf32>
    %359 = arith.subf %353, %358 : vector<1x128xf32>
    %360 = arith.addf %342, %359 : vector<1x128xf32>
    %c20 = arith.constant 20 : index
    %c0_122 = arith.constant 0 : index
    %361 = vector.load %arg2[%c20, %c0_122] : memref<36x128xi32, #tpu.memory_space<vmem>>, vector<1x128xi32>
    %362 = vector.broadcast %361 : vector<1x128xi32> to vector<32x128xi32>
    %363 = arith.cmpi eq, %0, %362 : vector<32x128xi32>
    %cst_123 = arith.constant 0.000000e+00 : f32
    %364 = vector.broadcast %cst_123 : f32 to vector<32x128xf32>
    %365 = arith.select %363, %11, %364 : vector<32x128xi1>, vector<32x128xf32>
    %cst_124 = arith.constant dense<0.000000e+00> : vector<128xf32>
    %366 = vector.multi_reduction <add>, %365, %cst_124 [0] : vector<32x128xf32> to vector<128xf32>
    %367 = vector.shape_cast %366 : vector<128xf32> to vector<1x128xf32>
    %cst_125 = arith.constant 0.000000e+00 : f32
    %368 = vector.broadcast %cst_125 : f32 to vector<1x128xf32>
    %369 = arith.subf %368, %367 : vector<1x128xf32>
    %cst_126 = arith.constant 0.000000e+00 : f32
    %370 = vector.broadcast %cst_126 : f32 to vector<1x128xf32>
    %371 = arith.minimumf %369, %370 : vector<1x128xf32>
    %372 = math.absf %369 : vector<1x128xf32>
    %cst_127 = arith.constant 0.000000e+00 : f32
    %373 = vector.broadcast %cst_127 : f32 to vector<1x128xf32>
    %374 = arith.subf %373, %372 : vector<1x128xf32>
    %375 = math.exp %374 : vector<1x128xf32>
    %376 = math.log1p %375 : vector<1x128xf32>
    %377 = arith.subf %371, %376 : vector<1x128xf32>
    %378 = arith.addf %360, %377 : vector<1x128xf32>
    %c21 = arith.constant 21 : index
    %c0_128 = arith.constant 0 : index
    %379 = vector.load %arg2[%c21, %c0_128] : memref<36x128xi32, #tpu.memory_space<vmem>>, vector<1x128xi32>
    %380 = vector.broadcast %379 : vector<1x128xi32> to vector<32x128xi32>
    %381 = arith.cmpi eq, %0, %380 : vector<32x128xi32>
    %cst_129 = arith.constant 0.000000e+00 : f32
    %382 = vector.broadcast %cst_129 : f32 to vector<32x128xf32>
    %383 = arith.select %381, %11, %382 : vector<32x128xi1>, vector<32x128xf32>
    %cst_130 = arith.constant dense<0.000000e+00> : vector<128xf32>
    %384 = vector.multi_reduction <add>, %383, %cst_130 [0] : vector<32x128xf32> to vector<128xf32>
    %385 = vector.shape_cast %384 : vector<128xf32> to vector<1x128xf32>
    %cst_131 = arith.constant 0.000000e+00 : f32
    %386 = vector.broadcast %cst_131 : f32 to vector<1x128xf32>
    %387 = arith.subf %386, %385 : vector<1x128xf32>
    %cst_132 = arith.constant 0.000000e+00 : f32
    %388 = vector.broadcast %cst_132 : f32 to vector<1x128xf32>
    %389 = arith.minimumf %387, %388 : vector<1x128xf32>
    %390 = math.absf %387 : vector<1x128xf32>
    %cst_133 = arith.constant 0.000000e+00 : f32
    %391 = vector.broadcast %cst_133 : f32 to vector<1x128xf32>
    %392 = arith.subf %391, %390 : vector<1x128xf32>
    %393 = math.exp %392 : vector<1x128xf32>
    %394 = math.log1p %393 : vector<1x128xf32>
    %395 = arith.subf %389, %394 : vector<1x128xf32>
    %396 = arith.addf %378, %395 : vector<1x128xf32>
    %c22 = arith.constant 22 : index
    %c0_134 = arith.constant 0 : index
    %397 = vector.load %arg2[%c22, %c0_134] : memref<36x128xi32, #tpu.memory_space<vmem>>, vector<1x128xi32>
    %398 = vector.broadcast %397 : vector<1x128xi32> to vector<32x128xi32>
    %399 = arith.cmpi eq, %0, %398 : vector<32x128xi32>
    %cst_135 = arith.constant 0.000000e+00 : f32
    %400 = vector.broadcast %cst_135 : f32 to vector<32x128xf32>
    %401 = arith.select %399, %11, %400 : vector<32x128xi1>, vector<32x128xf32>
    %cst_136 = arith.constant dense<0.000000e+00> : vector<128xf32>
    %402 = vector.multi_reduction <add>, %401, %cst_136 [0] : vector<32x128xf32> to vector<128xf32>
    %403 = vector.shape_cast %402 : vector<128xf32> to vector<1x128xf32>
    %cst_137 = arith.constant 0.000000e+00 : f32
    %404 = vector.broadcast %cst_137 : f32 to vector<1x128xf32>
    %405 = arith.subf %404, %403 : vector<1x128xf32>
    %cst_138 = arith.constant 0.000000e+00 : f32
    %406 = vector.broadcast %cst_138 : f32 to vector<1x128xf32>
    %407 = arith.minimumf %405, %406 : vector<1x128xf32>
    %408 = math.absf %405 : vector<1x128xf32>
    %cst_139 = arith.constant 0.000000e+00 : f32
    %409 = vector.broadcast %cst_139 : f32 to vector<1x128xf32>
    %410 = arith.subf %409, %408 : vector<1x128xf32>
    %411 = math.exp %410 : vector<1x128xf32>
    %412 = math.log1p %411 : vector<1x128xf32>
    %413 = arith.subf %407, %412 : vector<1x128xf32>
    %414 = arith.addf %396, %413 : vector<1x128xf32>
    %c23 = arith.constant 23 : index
    %c0_140 = arith.constant 0 : index
    %415 = vector.load %arg2[%c23, %c0_140] : memref<36x128xi32, #tpu.memory_space<vmem>>, vector<1x128xi32>
    %416 = vector.broadcast %415 : vector<1x128xi32> to vector<32x128xi32>
    %417 = arith.cmpi eq, %0, %416 : vector<32x128xi32>
    %cst_141 = arith.constant 0.000000e+00 : f32
    %418 = vector.broadcast %cst_141 : f32 to vector<32x128xf32>
    %419 = arith.select %417, %11, %418 : vector<32x128xi1>, vector<32x128xf32>
    %cst_142 = arith.constant dense<0.000000e+00> : vector<128xf32>
    %420 = vector.multi_reduction <add>, %419, %cst_142 [0] : vector<32x128xf32> to vector<128xf32>
    %421 = vector.shape_cast %420 : vector<128xf32> to vector<1x128xf32>
    %cst_143 = arith.constant 0.000000e+00 : f32
    %422 = vector.broadcast %cst_143 : f32 to vector<1x128xf32>
    %423 = arith.subf %422, %421 : vector<1x128xf32>
    %cst_144 = arith.constant 0.000000e+00 : f32
    %424 = vector.broadcast %cst_144 : f32 to vector<1x128xf32>
    %425 = arith.minimumf %423, %424 : vector<1x128xf32>
    %426 = math.absf %423 : vector<1x128xf32>
    %cst_145 = arith.constant 0.000000e+00 : f32
    %427 = vector.broadcast %cst_145 : f32 to vector<1x128xf32>
    %428 = arith.subf %427, %426 : vector<1x128xf32>
    %429 = math.exp %428 : vector<1x128xf32>
    %430 = math.log1p %429 : vector<1x128xf32>
    %431 = arith.subf %425, %430 : vector<1x128xf32>
    %432 = arith.addf %414, %431 : vector<1x128xf32>
    %c24 = arith.constant 24 : index
    %c0_146 = arith.constant 0 : index
    %433 = vector.load %arg2[%c24, %c0_146] : memref<36x128xi32, #tpu.memory_space<vmem>>, vector<1x128xi32>
    %434 = vector.broadcast %433 : vector<1x128xi32> to vector<32x128xi32>
    %435 = arith.cmpi eq, %0, %434 : vector<32x128xi32>
    %cst_147 = arith.constant 0.000000e+00 : f32
    %436 = vector.broadcast %cst_147 : f32 to vector<32x128xf32>
    %437 = arith.select %435, %11, %436 : vector<32x128xi1>, vector<32x128xf32>
    %cst_148 = arith.constant dense<0.000000e+00> : vector<128xf32>
    %438 = vector.multi_reduction <add>, %437, %cst_148 [0] : vector<32x128xf32> to vector<128xf32>
    %439 = vector.shape_cast %438 : vector<128xf32> to vector<1x128xf32>
    %cst_149 = arith.constant 0.000000e+00 : f32
    %440 = vector.broadcast %cst_149 : f32 to vector<1x128xf32>
    %441 = arith.subf %440, %439 : vector<1x128xf32>
    %cst_150 = arith.constant 0.000000e+00 : f32
    %442 = vector.broadcast %cst_150 : f32 to vector<1x128xf32>
    %443 = arith.minimumf %441, %442 : vector<1x128xf32>
    %444 = math.absf %441 : vector<1x128xf32>
    %cst_151 = arith.constant 0.000000e+00 : f32
    %445 = vector.broadcast %cst_151 : f32 to vector<1x128xf32>
    %446 = arith.subf %445, %444 : vector<1x128xf32>
    %447 = math.exp %446 : vector<1x128xf32>
    %448 = math.log1p %447 : vector<1x128xf32>
    %449 = arith.subf %443, %448 : vector<1x128xf32>
    %450 = arith.addf %432, %449 : vector<1x128xf32>
    %c25 = arith.constant 25 : index
    %c0_152 = arith.constant 0 : index
    %451 = vector.load %arg2[%c25, %c0_152] : memref<36x128xi32, #tpu.memory_space<vmem>>, vector<1x128xi32>
    %452 = vector.broadcast %451 : vector<1x128xi32> to vector<32x128xi32>
    %453 = arith.cmpi eq, %0, %452 : vector<32x128xi32>
    %cst_153 = arith.constant 0.000000e+00 : f32
    %454 = vector.broadcast %cst_153 : f32 to vector<32x128xf32>
    %455 = arith.select %453, %11, %454 : vector<32x128xi1>, vector<32x128xf32>
    %cst_154 = arith.constant dense<0.000000e+00> : vector<128xf32>
    %456 = vector.multi_reduction <add>, %455, %cst_154 [0] : vector<32x128xf32> to vector<128xf32>
    %457 = vector.shape_cast %456 : vector<128xf32> to vector<1x128xf32>
    %cst_155 = arith.constant 0.000000e+00 : f32
    %458 = vector.broadcast %cst_155 : f32 to vector<1x128xf32>
    %459 = arith.subf %458, %457 : vector<1x128xf32>
    %cst_156 = arith.constant 0.000000e+00 : f32
    %460 = vector.broadcast %cst_156 : f32 to vector<1x128xf32>
    %461 = arith.minimumf %459, %460 : vector<1x128xf32>
    %462 = math.absf %459 : vector<1x128xf32>
    %cst_157 = arith.constant 0.000000e+00 : f32
    %463 = vector.broadcast %cst_157 : f32 to vector<1x128xf32>
    %464 = arith.subf %463, %462 : vector<1x128xf32>
    %465 = math.exp %464 : vector<1x128xf32>
    %466 = math.log1p %465 : vector<1x128xf32>
    %467 = arith.subf %461, %466 : vector<1x128xf32>
    %468 = arith.addf %450, %467 : vector<1x128xf32>
    %c26 = arith.constant 26 : index
    %c0_158 = arith.constant 0 : index
    %469 = vector.load %arg2[%c26, %c0_158] : memref<36x128xi32, #tpu.memory_space<vmem>>, vector<1x128xi32>
    %470 = vector.broadcast %469 : vector<1x128xi32> to vector<32x128xi32>
    %471 = arith.cmpi eq, %0, %470 : vector<32x128xi32>
    %cst_159 = arith.constant 0.000000e+00 : f32
    %472 = vector.broadcast %cst_159 : f32 to vector<32x128xf32>
    %473 = arith.select %471, %11, %472 : vector<32x128xi1>, vector<32x128xf32>
    %cst_160 = arith.constant dense<0.000000e+00> : vector<128xf32>
    %474 = vector.multi_reduction <add>, %473, %cst_160 [0] : vector<32x128xf32> to vector<128xf32>
    %475 = vector.shape_cast %474 : vector<128xf32> to vector<1x128xf32>
    %cst_161 = arith.constant 0.000000e+00 : f32
    %476 = vector.broadcast %cst_161 : f32 to vector<1x128xf32>
    %477 = arith.subf %476, %475 : vector<1x128xf32>
    %cst_162 = arith.constant 0.000000e+00 : f32
    %478 = vector.broadcast %cst_162 : f32 to vector<1x128xf32>
    %479 = arith.minimumf %477, %478 : vector<1x128xf32>
    %480 = math.absf %477 : vector<1x128xf32>
    %cst_163 = arith.constant 0.000000e+00 : f32
    %481 = vector.broadcast %cst_163 : f32 to vector<1x128xf32>
    %482 = arith.subf %481, %480 : vector<1x128xf32>
    %483 = math.exp %482 : vector<1x128xf32>
    %484 = math.log1p %483 : vector<1x128xf32>
    %485 = arith.subf %479, %484 : vector<1x128xf32>
    %486 = arith.addf %468, %485 : vector<1x128xf32>
    %c27 = arith.constant 27 : index
    %c0_164 = arith.constant 0 : index
    %487 = vector.load %arg2[%c27, %c0_164] : memref<36x128xi32, #tpu.memory_space<vmem>>, vector<1x128xi32>
    %488 = vector.broadcast %487 : vector<1x128xi32> to vector<32x128xi32>
    %489 = arith.cmpi eq, %0, %488 : vector<32x128xi32>
    %cst_165 = arith.constant 0.000000e+00 : f32
    %490 = vector.broadcast %cst_165 : f32 to vector<32x128xf32>
    %491 = arith.select %489, %11, %490 : vector<32x128xi1>, vector<32x128xf32>
    %cst_166 = arith.constant dense<0.000000e+00> : vector<128xf32>
    %492 = vector.multi_reduction <add>, %491, %cst_166 [0] : vector<32x128xf32> to vector<128xf32>
    %493 = vector.shape_cast %492 : vector<128xf32> to vector<1x128xf32>
    %cst_167 = arith.constant 0.000000e+00 : f32
    %494 = vector.broadcast %cst_167 : f32 to vector<1x128xf32>
    %495 = arith.subf %494, %493 : vector<1x128xf32>
    %cst_168 = arith.constant 0.000000e+00 : f32
    %496 = vector.broadcast %cst_168 : f32 to vector<1x128xf32>
    %497 = arith.minimumf %495, %496 : vector<1x128xf32>
    %498 = math.absf %495 : vector<1x128xf32>
    %cst_169 = arith.constant 0.000000e+00 : f32
    %499 = vector.broadcast %cst_169 : f32 to vector<1x128xf32>
    %500 = arith.subf %499, %498 : vector<1x128xf32>
    %501 = math.exp %500 : vector<1x128xf32>
    %502 = math.log1p %501 : vector<1x128xf32>
    %503 = arith.subf %497, %502 : vector<1x128xf32>
    %504 = arith.addf %486, %503 : vector<1x128xf32>
    %c28 = arith.constant 28 : index
    %c0_170 = arith.constant 0 : index
    %505 = vector.load %arg2[%c28, %c0_170] : memref<36x128xi32, #tpu.memory_space<vmem>>, vector<1x128xi32>
    %506 = vector.broadcast %505 : vector<1x128xi32> to vector<32x128xi32>
    %507 = arith.cmpi eq, %0, %506 : vector<32x128xi32>
    %cst_171 = arith.constant 0.000000e+00 : f32
    %508 = vector.broadcast %cst_171 : f32 to vector<32x128xf32>
    %509 = arith.select %507, %11, %508 : vector<32x128xi1>, vector<32x128xf32>
    %cst_172 = arith.constant dense<0.000000e+00> : vector<128xf32>
    %510 = vector.multi_reduction <add>, %509, %cst_172 [0] : vector<32x128xf32> to vector<128xf32>
    %511 = vector.shape_cast %510 : vector<128xf32> to vector<1x128xf32>
    %cst_173 = arith.constant 0.000000e+00 : f32
    %512 = vector.broadcast %cst_173 : f32 to vector<1x128xf32>
    %513 = arith.subf %512, %511 : vector<1x128xf32>
    %cst_174 = arith.constant 0.000000e+00 : f32
    %514 = vector.broadcast %cst_174 : f32 to vector<1x128xf32>
    %515 = arith.minimumf %513, %514 : vector<1x128xf32>
    %516 = math.absf %513 : vector<1x128xf32>
    %cst_175 = arith.constant 0.000000e+00 : f32
    %517 = vector.broadcast %cst_175 : f32 to vector<1x128xf32>
    %518 = arith.subf %517, %516 : vector<1x128xf32>
    %519 = math.exp %518 : vector<1x128xf32>
    %520 = math.log1p %519 : vector<1x128xf32>
    %521 = arith.subf %515, %520 : vector<1x128xf32>
    %522 = arith.addf %504, %521 : vector<1x128xf32>
    %c29 = arith.constant 29 : index
    %c0_176 = arith.constant 0 : index
    %523 = vector.load %arg2[%c29, %c0_176] : memref<36x128xi32, #tpu.memory_space<vmem>>, vector<1x128xi32>
    %524 = vector.broadcast %523 : vector<1x128xi32> to vector<32x128xi32>
    %525 = arith.cmpi eq, %0, %524 : vector<32x128xi32>
    %cst_177 = arith.constant 0.000000e+00 : f32
    %526 = vector.broadcast %cst_177 : f32 to vector<32x128xf32>
    %527 = arith.select %525, %11, %526 : vector<32x128xi1>, vector<32x128xf32>
    %cst_178 = arith.constant dense<0.000000e+00> : vector<128xf32>
    %528 = vector.multi_reduction <add>, %527, %cst_178 [0] : vector<32x128xf32> to vector<128xf32>
    %529 = vector.shape_cast %528 : vector<128xf32> to vector<1x128xf32>
    %cst_179 = arith.constant 0.000000e+00 : f32
    %530 = vector.broadcast %cst_179 : f32 to vector<1x128xf32>
    %531 = arith.subf %530, %529 : vector<1x128xf32>
    %cst_180 = arith.constant 0.000000e+00 : f32
    %532 = vector.broadcast %cst_180 : f32 to vector<1x128xf32>
    %533 = arith.minimumf %531, %532 : vector<1x128xf32>
    %534 = math.absf %531 : vector<1x128xf32>
    %cst_181 = arith.constant 0.000000e+00 : f32
    %535 = vector.broadcast %cst_181 : f32 to vector<1x128xf32>
    %536 = arith.subf %535, %534 : vector<1x128xf32>
    %537 = math.exp %536 : vector<1x128xf32>
    %538 = math.log1p %537 : vector<1x128xf32>
    %539 = arith.subf %533, %538 : vector<1x128xf32>
    %540 = arith.addf %522, %539 : vector<1x128xf32>
    %c30 = arith.constant 30 : index
    %c0_182 = arith.constant 0 : index
    %541 = vector.load %arg2[%c30, %c0_182] : memref<36x128xi32, #tpu.memory_space<vmem>>, vector<1x128xi32>
    %542 = vector.broadcast %541 : vector<1x128xi32> to vector<32x128xi32>
    %543 = arith.cmpi eq, %0, %542 : vector<32x128xi32>
    %cst_183 = arith.constant 0.000000e+00 : f32
    %544 = vector.broadcast %cst_183 : f32 to vector<32x128xf32>
    %545 = arith.select %543, %11, %544 : vector<32x128xi1>, vector<32x128xf32>
    %cst_184 = arith.constant dense<0.000000e+00> : vector<128xf32>
    %546 = vector.multi_reduction <add>, %545, %cst_184 [0] : vector<32x128xf32> to vector<128xf32>
    %547 = vector.shape_cast %546 : vector<128xf32> to vector<1x128xf32>
    %cst_185 = arith.constant 0.000000e+00 : f32
    %548 = vector.broadcast %cst_185 : f32 to vector<1x128xf32>
    %549 = arith.subf %548, %547 : vector<1x128xf32>
    %cst_186 = arith.constant 0.000000e+00 : f32
    %550 = vector.broadcast %cst_186 : f32 to vector<1x128xf32>
    %551 = arith.minimumf %549, %550 : vector<1x128xf32>
    %552 = math.absf %549 : vector<1x128xf32>
    %cst_187 = arith.constant 0.000000e+00 : f32
    %553 = vector.broadcast %cst_187 : f32 to vector<1x128xf32>
    %554 = arith.subf %553, %552 : vector<1x128xf32>
    %555 = math.exp %554 : vector<1x128xf32>
    %556 = math.log1p %555 : vector<1x128xf32>
    %557 = arith.subf %551, %556 : vector<1x128xf32>
    %558 = arith.addf %540, %557 : vector<1x128xf32>
    %c31 = arith.constant 31 : index
    %c0_188 = arith.constant 0 : index
    %559 = vector.load %arg2[%c31, %c0_188] : memref<36x128xi32, #tpu.memory_space<vmem>>, vector<1x128xi32>
    %560 = vector.broadcast %559 : vector<1x128xi32> to vector<32x128xi32>
    %561 = arith.cmpi eq, %0, %560 : vector<32x128xi32>
    %cst_189 = arith.constant 0.000000e+00 : f32
    %562 = vector.broadcast %cst_189 : f32 to vector<32x128xf32>
    %563 = arith.select %561, %11, %562 : vector<32x128xi1>, vector<32x128xf32>
    %cst_190 = arith.constant dense<0.000000e+00> : vector<128xf32>
    %564 = vector.multi_reduction <add>, %563, %cst_190 [0] : vector<32x128xf32> to vector<128xf32>
    %565 = vector.shape_cast %564 : vector<128xf32> to vector<1x128xf32>
    %cst_191 = arith.constant 0.000000e+00 : f32
    %566 = vector.broadcast %cst_191 : f32 to vector<1x128xf32>
    %567 = arith.subf %566, %565 : vector<1x128xf32>
    %cst_192 = arith.constant 0.000000e+00 : f32
    %568 = vector.broadcast %cst_192 : f32 to vector<1x128xf32>
    %569 = arith.minimumf %567, %568 : vector<1x128xf32>
    %570 = math.absf %567 : vector<1x128xf32>
    %cst_193 = arith.constant 0.000000e+00 : f32
    %571 = vector.broadcast %cst_193 : f32 to vector<1x128xf32>
    %572 = arith.subf %571, %570 : vector<1x128xf32>
    %573 = math.exp %572 : vector<1x128xf32>
    %574 = math.log1p %573 : vector<1x128xf32>
    %575 = arith.subf %569, %574 : vector<1x128xf32>
    %576 = arith.addf %558, %575 : vector<1x128xf32>
    %c32 = arith.constant 32 : index
    %c0_194 = arith.constant 0 : index
    %577 = vector.load %arg2[%c32, %c0_194] : memref<36x128xi32, #tpu.memory_space<vmem>>, vector<1x128xi32>
    %578 = vector.broadcast %577 : vector<1x128xi32> to vector<32x128xi32>
    %579 = arith.cmpi eq, %0, %578 : vector<32x128xi32>
    %cst_195 = arith.constant 0.000000e+00 : f32
    %580 = vector.broadcast %cst_195 : f32 to vector<32x128xf32>
    %581 = arith.select %579, %11, %580 : vector<32x128xi1>, vector<32x128xf32>
    %cst_196 = arith.constant dense<0.000000e+00> : vector<128xf32>
    %582 = vector.multi_reduction <add>, %581, %cst_196 [0] : vector<32x128xf32> to vector<128xf32>
    %583 = vector.shape_cast %582 : vector<128xf32> to vector<1x128xf32>
    %cst_197 = arith.constant 0.000000e+00 : f32
    %584 = vector.broadcast %cst_197 : f32 to vector<1x128xf32>
    %585 = arith.subf %584, %583 : vector<1x128xf32>
    %cst_198 = arith.constant 0.000000e+00 : f32
    %586 = vector.broadcast %cst_198 : f32 to vector<1x128xf32>
    %587 = arith.minimumf %585, %586 : vector<1x128xf32>
    %588 = math.absf %585 : vector<1x128xf32>
    %cst_199 = arith.constant 0.000000e+00 : f32
    %589 = vector.broadcast %cst_199 : f32 to vector<1x128xf32>
    %590 = arith.subf %589, %588 : vector<1x128xf32>
    %591 = math.exp %590 : vector<1x128xf32>
    %592 = math.log1p %591 : vector<1x128xf32>
    %593 = arith.subf %587, %592 : vector<1x128xf32>
    %594 = arith.addf %576, %593 : vector<1x128xf32>
    %c33 = arith.constant 33 : index
    %c0_200 = arith.constant 0 : index
    %595 = vector.load %arg2[%c33, %c0_200] : memref<36x128xi32, #tpu.memory_space<vmem>>, vector<1x128xi32>
    %596 = vector.broadcast %595 : vector<1x128xi32> to vector<32x128xi32>
    %597 = arith.cmpi eq, %0, %596 : vector<32x128xi32>
    %cst_201 = arith.constant 0.000000e+00 : f32
    %598 = vector.broadcast %cst_201 : f32 to vector<32x128xf32>
    %599 = arith.select %597, %11, %598 : vector<32x128xi1>, vector<32x128xf32>
    %cst_202 = arith.constant dense<0.000000e+00> : vector<128xf32>
    %600 = vector.multi_reduction <add>, %599, %cst_202 [0] : vector<32x128xf32> to vector<128xf32>
    %601 = vector.shape_cast %600 : vector<128xf32> to vector<1x128xf32>
    %cst_203 = arith.constant 0.000000e+00 : f32
    %602 = vector.broadcast %cst_203 : f32 to vector<1x128xf32>
    %603 = arith.subf %602, %601 : vector<1x128xf32>
    %cst_204 = arith.constant 0.000000e+00 : f32
    %604 = vector.broadcast %cst_204 : f32 to vector<1x128xf32>
    %605 = arith.minimumf %603, %604 : vector<1x128xf32>
    %606 = math.absf %603 : vector<1x128xf32>
    %cst_205 = arith.constant 0.000000e+00 : f32
    %607 = vector.broadcast %cst_205 : f32 to vector<1x128xf32>
    %608 = arith.subf %607, %606 : vector<1x128xf32>
    %609 = math.exp %608 : vector<1x128xf32>
    %610 = math.log1p %609 : vector<1x128xf32>
    %611 = arith.subf %605, %610 : vector<1x128xf32>
    %612 = arith.addf %594, %611 : vector<1x128xf32>
    %c34 = arith.constant 34 : index
    %c0_206 = arith.constant 0 : index
    %613 = vector.load %arg2[%c34, %c0_206] : memref<36x128xi32, #tpu.memory_space<vmem>>, vector<1x128xi32>
    %614 = vector.broadcast %613 : vector<1x128xi32> to vector<32x128xi32>
    %615 = arith.cmpi eq, %0, %614 : vector<32x128xi32>
    %cst_207 = arith.constant 0.000000e+00 : f32
    %616 = vector.broadcast %cst_207 : f32 to vector<32x128xf32>
    %617 = arith.select %615, %11, %616 : vector<32x128xi1>, vector<32x128xf32>
    %cst_208 = arith.constant dense<0.000000e+00> : vector<128xf32>
    %618 = vector.multi_reduction <add>, %617, %cst_208 [0] : vector<32x128xf32> to vector<128xf32>
    %619 = vector.shape_cast %618 : vector<128xf32> to vector<1x128xf32>
    %cst_209 = arith.constant 0.000000e+00 : f32
    %620 = vector.broadcast %cst_209 : f32 to vector<1x128xf32>
    %621 = arith.subf %620, %619 : vector<1x128xf32>
    %cst_210 = arith.constant 0.000000e+00 : f32
    %622 = vector.broadcast %cst_210 : f32 to vector<1x128xf32>
    %623 = arith.minimumf %621, %622 : vector<1x128xf32>
    %624 = math.absf %621 : vector<1x128xf32>
    %cst_211 = arith.constant 0.000000e+00 : f32
    %625 = vector.broadcast %cst_211 : f32 to vector<1x128xf32>
    %626 = arith.subf %625, %624 : vector<1x128xf32>
    %627 = math.exp %626 : vector<1x128xf32>
    %628 = math.log1p %627 : vector<1x128xf32>
    %629 = arith.subf %623, %628 : vector<1x128xf32>
    %630 = arith.addf %612, %629 : vector<1x128xf32>
    %c35 = arith.constant 35 : index
    %c0_212 = arith.constant 0 : index
    %631 = vector.load %arg2[%c35, %c0_212] : memref<36x128xi32, #tpu.memory_space<vmem>>, vector<1x128xi32>
    %632 = vector.broadcast %631 : vector<1x128xi32> to vector<32x128xi32>
    %633 = arith.cmpi eq, %0, %632 : vector<32x128xi32>
    %cst_213 = arith.constant 0.000000e+00 : f32
    %634 = vector.broadcast %cst_213 : f32 to vector<32x128xf32>
    %635 = arith.select %633, %11, %634 : vector<32x128xi1>, vector<32x128xf32>
    %cst_214 = arith.constant dense<0.000000e+00> : vector<128xf32>
    %636 = vector.multi_reduction <add>, %635, %cst_214 [0] : vector<32x128xf32> to vector<128xf32>
    %637 = vector.shape_cast %636 : vector<128xf32> to vector<1x128xf32>
    %cst_215 = arith.constant 0.000000e+00 : f32
    %638 = vector.broadcast %cst_215 : f32 to vector<1x128xf32>
    %639 = arith.subf %638, %637 : vector<1x128xf32>
    %cst_216 = arith.constant 0.000000e+00 : f32
    %640 = vector.broadcast %cst_216 : f32 to vector<1x128xf32>
    %641 = arith.minimumf %639, %640 : vector<1x128xf32>
    %642 = math.absf %639 : vector<1x128xf32>
    %cst_217 = arith.constant 0.000000e+00 : f32
    %643 = vector.broadcast %cst_217 : f32 to vector<1x128xf32>
    %644 = arith.subf %643, %642 : vector<1x128xf32>
    %645 = math.exp %644 : vector<1x128xf32>
    %646 = math.log1p %645 : vector<1x128xf32>
    %647 = arith.subf %641, %646 : vector<1x128xf32>
    %648 = arith.addf %630, %647 : vector<1x128xf32>
    %cst_218 = arith.constant 0.000000e+00 : f32
    %649 = vector.broadcast %cst_218 : f32 to vector<1x128xf32>
    %650 = arith.subf %649, %648 : vector<1x128xf32>
    %c0_219 = arith.constant 0 : index
    %c0_220 = arith.constant 0 : index
    %651 = vector.load %arg5[%c0_219, %c0_220] : memref<1x128xf32, #tpu.memory_space<vmem>>, vector<1x128xf32>
    tpu.vector_store %arg5[%c0_219, %c0_220], %650 {strides = array<i32>} : memref<1x128xf32, #tpu.memory_space<vmem>>, vector<1x128xf32>,
    return
  }
  func.func @transform_0(%arg0: i32) -> (i32, i32) {
    %c0_i32 = arith.constant 0 : i32
    %c0_i32_0 = arith.constant 0 : i32
    return %c0_i32, %arg0 : i32, i32
  }
  func.func @transform_1(%arg0: i32) -> (i32, i32) {
    %c0_i32 = arith.constant 0 : i32
    %c0_i32_0 = arith.constant 0 : i32
    return %c0_i32, %arg0 : i32, i32
  }
  func.func @transform_2(%arg0: i32) -> (i32, i32) {
    %c0_i32 = arith.constant 0 : i32
    %c0_i32_0 = arith.constant 0 : i32
    %c0_i32_1 = arith.constant 0 : i32
    return %c0_i32, %c0_i32_0 : i32, i32
  }
  func.func @transform_3(%arg0: i32) -> (i32, i32) {
    %c0_i32 = arith.constant 0 : i32
    %c0_i32_0 = arith.constant 0 : i32
    %c0_i32_1 = arith.constant 0 : i32
    return %c0_i32, %c0_i32_0 : i32, i32
  }
  func.func @transform_4(%arg0: i32) -> (i32, i32) {
    %c0_i32 = arith.constant 0 : i32
    %c0_i32_0 = arith.constant 0 : i32
    return %c0_i32, %arg0 : i32, i32
  }
}

</mosaic_0001>

<bundles_post_ra>
// kernel: tpu_custom_call.1
= control target key start
LH: loop header
LB: loop body
LE: loop exit
PB: predicated region body
PF: predicated region fallthrough
CT: control target
= control target key end

     0   :  { %s3671_s0 = inlined_call_operand.hbm [shape: s32[1,256], index: 0, kind: input, shape index: {}]   ;;  %s3672_s1 = inlined_call_operand.hbm [shape: s32[36,256], index: 1, kind: input, shape index: {}]   ;;  %s3673_s2 = inlined_call_operand.hbm [shape: bf16[32,32], index: 2, kind: input, shape index: {}]   ;;  %s3674_s3 = inlined_call_operand.hbm [shape: bf16[32,32], index: 3, kind: input, shape index: {}]   ;;  %s3675_s4 = inlined_call_operand.hbm [shape: f32[1,256], index: 4, kind: output, shape index: {}]  }
   0x1   :  { %3676 = sst [smem:[#allocation17_spill]] %s3673_s2 }
   0x2   :  { %3677 = sst [smem:[#allocation18_spill]] %s3674_s3 }
   0x3   :  { %9 = vsyncpa [#allocation3], 0 }
   0x4   :  { %11 = vsyncpa [#allocation3 + $0x1], 0 }
   0x5   :  { %12 = vsyncpa [#allocation6], 0 }
   0x6   :  { %14 = vsyncpa [#allocation6 + $0x1], 0 }
   0x7   :  { %15 = vsyncpa [#allocation9], 0 }
   0x8   :  { %16 = vsyncpa [#allocation4], 0 }
   0x9   :  { %18 = vsyncpa [#allocation4 + $0x1], 0  ;;  %s2339_s15 = smov 0   ;;  %s2341_s16 = smov 0  }
   0xa   :  { %s2343_s17 = smov 0   ;;  %s2345_s18 = smov 0  }
   0xb LB: > { %s3678_s2 = sld [smem:[#allocation17_spill]]  ;;  %s2363_s22 = sadd.s32 4294967295, %s2304_s18   ;;  %s2304_s18 = sphi %s2345_s18, %s3762_s18   ;;  %s2300_s17 = sphi %s2343_s17, %s3761_s17   ;;  %s2296_s16 = sphi %s2341_s16, %s3760_s16   ;;  %s2292_s15 = sphi %s2339_s15, %s3759_s15  }
   0xc   : > { %p1795_p0 = scmp.ge.s32.totalorder %s2304_s18, 1  ;;  %p45_p1 = scmp.eq.s32.totalorder %s2363_s22, 0 }
   0xd   : > { %p149_p2 = scmp.lt.s32.totalorder %s2304_s18, 3  ;;  %s2306_s24 = smov [#allocation7]  }
   0xe   : > { %s162_s25 = sshll.u32 %s2306_s24, 4  ;;  %s3680_s3 = sld [smem:[#allocation18_spill]]  ;;  %s163_s25 = int_to_ptr.vmem [resolvable:$true] %s162_s25 }
   0xf   : > { %p2368_p3 = pnand %p1795_p0, %p149_p2  ;;  %s2307_s29 = smov [#allocation8]  }
  0x10   : > { %s176_s30 = sshll.u32 %s2307_s29, 4  ;;  %s2308_s5 = smov 64   ;;  %s177_s30 = int_to_ptr.vmem [resolvable:$true] %s176_s30 }
  0x11   : > { %s160_s21 = sshll.u32 %s3678_s2, 4  ;;  %p1861_p4 = pneg %p2368_p3  ;;  %s161_s21 = int_to_ptr.hbm [resolvable:$true] %s160_s21 }
  0x12   : > { %s2309_s6 = smov 4   ;;  %s1794_s7 = sadd.s32 4294967294, %s2304_s18  }
  0x13   : > { %p1862_p6 = pnand %p1861_p4, %p45_p1  ;;  %s2382_s8 = sadd.s32 1, %s2304_s18  }
  0x14   : > { %s174_s28 = sshll.u32 %s3680_s3, 4  ;;  %s28_s9 = ssub.s32 %s2304_s18, %s2382_s8  ;;  %s175_s28 = int_to_ptr.hbm [resolvable:$true] %s174_s28 }
  0x15   : > { %1864 = dma.hbm_to_vmem [thread:$0]  (!%p1862_p6), %s161_s21, 256, %s163_s25, [#allocation6], %s2308_s5, %s2308_s5, %s2309_s6  }
  0x16   : > { %1867 = dma.hbm_to_vmem [thread:$0]  (!%p1862_p6), %s175_s28, 256, %s177_s30, [#allocation9], %s2308_s5, %s2308_s5, %s2309_s6  }
  0x17   : > { %s31_s10 = sadd.s32 1, %s2300_s17  ;;  %p29_p7 = scmp.eq.s32.totalorder %s28_s9, 0 }
  0x18   : > { %p38_p8 = scmp.ne.s32.totalorder %s2300_s17, %s2296_s16  ;;  %p39_p9 = scmp.eq.s32.totalorder %s2304_s18, 0 }
  0x19   : > { %p44_p10 = scmp.ne.s32.totalorder %s2296_s16, %s2292_s15  ;;  %p136_p13 = scmp.eq.s32.totalorder %s2363_s22, 1 }
  0x1a   : > { %s2393_s11 = scalar_select %p29_p7, %s2300_s17, %s31_s10  }
  0x1b   : > { %p2395_p11 = por %p39_p9, %p38_p8  ;;  %p2401_p12 = por %p45_p1, %p44_p10 }
  0x1c   : > { %3681 = sst [smem:[#allocation16_spill]] %s2393_s11  ;;  %p142_p0 = scmp.eq.s32.totalorder %s1794_s7, 1 }
  0x1d   : > { %p1881_p2 = scmp.lt.s32.totalorder %s2304_s18, 2  ;;  %s190_s14 = sand.u32 1, %s2300_s17  }
  0x1e   : > { %p2408_p4 = por %p136_p13, %p38_p8  ;;  %p2412_p6 = por %p142_p0, %p44_p10 }
  0x1f   : > { %s196_s25 = scalar_lea.hbm %s3671_s0, %s2304_s18  ;;  %s193_s26 = scalar_lea.vmem [#allocation2], %s190_s14 }
  0x20   : > { %s200_s27 = sshll.u32 %s193_s26, 4  ;;  %s198_s28 = sshll.u32 %s196_s25, 4  ;;  %s201_s27 = int_to_ptr.vmem [resolvable:$true] %s200_s27  ;;  %s199_s28 = int_to_ptr.hbm [resolvable:$true] %s198_s28 }
  0x21   : > { %p2422_p7 = pnand %p1881_p2, %p2395_p11  ;;  %s1845_s30 = smul.u32 40, %s190_s14 }
  0x22   : > { %s207_s5 = sand.u32 1, %s2304_s18   ;;  %s191_s6 = scalar_lea.sflag [#allocation3], %s190_s14 }
  0x23   : > { %s2166_s7 = sshra.s32 %s199_s28, 4  ;;  %p2170_p9 = pneg %p2422_p7  ;;  %s2167_s7 = int_to_ptr.hbm [resolvable:$true] %s2166_s7 }
  0x24   : > { %s2168_s9 = scalar_lea.hbm %s2167_s7, 1  ;;  %s2173_s21 = scalar_lea.hbm %s3671_s0, 2 }
  0x25   : > { %p2169_p8 = scmp.ne.s32.totalorder %s2167_s7, %s2168_s9  ;;  %p2174_p11 = scmp.lt.s32.totalorder %s2167_s7, %s3671_s0 }
  0x26   : > { %p2175_p0 = scmp.lt.s32.totalorder %s2173_s21, %s2168_s9 }
  0x27   : > { %p2171_p10 = pnand %p2170_p9, %p2169_p8 }
  0x28   : > { %p2176_p2 = por %p2175_p0, %p2174_p11 }
  0x29   : > { %p2172_p13 = pneg %p2171_p10 }
  0x2b   : > { %p2177_p5 = pnand %p2176_p2, %p2172_p13 }
  0x2d   : > { %2180 = shalt.err (!%p2177_p5)
}
  0x2e   : > { %1871 = dma.hbm_to_vmem [thread:$0]  (!%p2422_p7), %s199_s28, 16, %s201_s27, %s191_s6  }
  0x2f   : > { %s1799_s14 = sshll.u32 %s2304_s18, 3  ;;  %s211_s26 = scalar_lea.vmem [#allocation5], %s1845_s30 }
  0x30   : > { %s218_s2 = sshll.u32 %s211_s26, 4  ;;  %s215_s10 = scalar_lea.hbm %s3672_s1, %s1799_s14  ;;  %s219_s2 = int_to_ptr.vmem [resolvable:$true] %s218_s2 }
  0x31   : > { %s216_s12 = sshll.u32 %s215_s10, 4  ;;  %s208_s7 = scalar_lea.sflag [#allocation6], %s207_s5  ;;  %s217_s12 = int_to_ptr.hbm [resolvable:$true] %s216_s12 }
  0x32   : > { %s2196_s9 = sshra.s32 %s217_s12, 4  ;;  %s2203_s30 = scalar_lea.hbm %s3672_s1, 80  ;;  %s2197_s9 = int_to_ptr.hbm [resolvable:$true] %s2196_s9 }
  0x33   : > { %s2198_s21 = scalar_lea.hbm %s2197_s9, 40  ;;  %p2204_p13 = scmp.lt.s32.totalorder %s2197_s9, %s3672_s1 }
  0x34   : > { %p2199_p5 = scmp.ne.s32.totalorder %s2197_s9, %s2198_s21  ;;  %p2205_p11 = scmp.lt.s32.totalorder %s2203_s30, %s2198_s21 }
  0x36   : > { %p2201_p8 = pnand %p2199_p5, %p2170_p9  ;;  %p2206_p0 = por %p2205_p11, %p2204_p13 }
  0x38   : > { %p2202_p10 = pneg %p2201_p8 }
  0x3a   : > { %p2207_p2 = pnand %p2206_p0, %p2202_p10 }
  0x3c   : > { %2210 = shalt.err (!%p2207_p2)
}
  0x3d   : > { %s2310_s3 = smov 256   ;;  %s2311_s11 = smov 128  }
  0x3e   : > { %s2312_s5 = smov 8   ;;  %230 = sbr.rel (%p2368_p3) target bundleno = 543 (0x21f), region = 36 }
  0x3f   : > { %1874 = dma.hbm_to_vmem [thread:$0]  (!%p2422_p7), %s217_s12, 640, %s219_s2, %s208_s7, %s2310_s3, %s2311_s11, %s2312_s5  }
  0x40   : > { %s2458_s25 = sand.u32 (!%p2368_p3), 1, %s2296_s16  }
  0x41   : > { %s233_s14 = scalar_lea.sflag (!%p2368_p3), [#allocation3], %s2458_s25  ;;  %s235_s26 = scalar_lea.vmem (!%p2368_p3), [#allocation2], %s2458_s25 }
  0x43   : > { %2271 = dma.done.wait (%p2401_p12), %s233_s14, 16  }
  0x44   : > { %2273 = vsyncadd (%p2401_p12), %s233_s14, 4294967280  ;;  %s241_s2 = sand.u32 1, %s2363_s22   ;;  %s1846_s29 = smul.u32 40, %s2458_s25 }
  0x45   : > { %s242_s23 = scalar_lea.sflag [#allocation6], %s241_s2 }
  0x46   : > { %s2468_s10 = scalar_lea.vmem [#allocation5], %s1846_s29 }
  0x47   : > { %2275 = dma.done.wait (%p2401_p12), %s242_s23, 640  }
  0x48   : > { %2277 = vsyncadd (%p2401_p12), %s242_s23, 4294966656 }
  0x49   : > { %2279 = dma.done.wait (%p45_p1), [#allocation6], 256  }
  0x4a   : > { %2281 = vsyncadd (%p45_p1), [#allocation6], 4294967040 }
  0x4b   : > { %2283 = dma.done.wait (%p45_p1), [#allocation9], 256  }
  0x4c   : > { %2285 = vsyncadd (%p45_p1), [#allocation9], 4294967040  ;;  %v285_v0 = vlaneseq  ;;  %v1925_v5 = vld [vmem:[%s235_s26] ss:$0 sm:$0xff]  ;;  %v2313_v6 = vmov 1.0|1.0   ;;  %s1686_s7 = scalar_lea.hbm %s3675_s4, %s2363_s22 }
  0x4d   : > { %vm324_vm6 = vcmask 261120   ;;  %v1839_v7 = vld [vmem:[#allocation8] sm:$0xff]  ;;  %v1840_v8 = vld [vmem:[#allocation8 + $0x8] sm:$0xff]  ;;  %v1837_v9 = vld [vmem:[#allocation7] sm:$0xff]  ;;  %s283_s9 = scalar_lea.vmem [#allocation10], %s2458_s25  ;;  %s1690_s27 = sshll.u32 %s1686_s7, 4  ;;  %s1691_s27 = int_to_ptr.hbm [resolvable:$true] %s1690_s27 }
  0x4e   : > { %v2482_v1 = vshrl.u32 %v285_v0, 7  ;;  %v1838_v10 = vld [vmem:[#allocation7 + $0x8] sm:$0xff]  ;;  %v2498_v11 = vld [vmem:[%s2468_s10] ss:$0 sm:$0xff]  ;;  %v2501_v13 = vld [vmem:[%s2468_s10 + $0x1] ss:$0 sm:$0xff] }
  0x4f   : > { %v2504_v14 = vld [vmem:[%s2468_s10 + $0x2] ss:$0 sm:$0xff]  ;;  %v2507_v16 = vld [vmem:[%s2468_s10 + $0x3] ss:$0 sm:$0xff]  ;;  %v2510_v17 = vld [vmem:[%s2468_s10 + $0x4] ss:$0 sm:$0xff] }
  0x50   : > { %v2485_v2 = vadd.s32 16, %v2482_v1  ;;  %v2488_v3 = vadd.s32 24, %v2482_v1  ;;  %v2491_v4 = vadd.s32 8, %v2482_v1  ;;  %vm292_vm2 = vcmp.eq.s32.totalorder %v2482_v1, %v1925_v5  ;;  %v2513_v18 = vld [vmem:[%s2468_s10 + $0x5] ss:$0 sm:$0xff]  ;;  %s1688_s21 = sshll.u32 %s283_s9, 4  ;;  %s1689_s21 = int_to_ptr.vmem [resolvable:$true] %s1688_s21 }
  0x51   : > { %vm387_vm7 = vcmp.eq.s32.totalorder %v2482_v1, %v2498_v11  ;;  %v2518_v19 = vld [vmem:[%s2468_s10 + $0x6] ss:$0 sm:$0xff]  ;;  %vm422_vm9 = vcmp.eq.s32.totalorder %v2482_v1, %v2501_v13  ;;  %vm457_vm11 = vcmp.eq.s32.totalorder %v2482_v1, %v2504_v14  ;;  %vm492_vm14 = vcmp.eq.s32.totalorder %v2482_v1, %v2507_v16  ;;  %s1678_s28 = scalar_lea.sflag [#allocation4], %s2458_s25  ;;  %s2240_s30 = sshra.s32 %s1691_s27, 4  ;;  %s2241_s30 = int_to_ptr.hbm [resolvable:$true] %s2240_s30 }
  0x52   : > { %vm294_vm0 = vcmp.eq.s32.totalorder %v2485_v2, %v1925_v5  ;;  %vm295_vm1 = vcmp.eq.s32.totalorder %v2488_v3, %v1925_v5  ;;  %vm293_vm3 = vcmp.eq.s32.totalorder %v2491_v4, %v1925_v5  ;;  %vm388_vm12 = vcmp.eq.s32.totalorder %v2491_v4, %v2498_v11  ;;  %s2242_s6 = scalar_lea.hbm %s2241_s30, 1  ;;  %s2246_s3 = scalar_lea.hbm %s3675_s4, 2 }
  0x53   : > { %vm1815_vm4 = vmpackc.low %vm295_vm1, %vm294_vm0  ;;  %vm527_vm15 = vcmp.eq.s32.totalorder %v2482_v1, %v2510_v17  ;;  %vm423_vm0 = vcmp.eq.s32.totalorder %v2491_v4, %v2501_v13  ;;  %vm458_vm1 = vcmp.eq.s32.totalorder %v2491_v4, %v2504_v14  ;;  %vm460_vm8 = vcmp.eq.s32.totalorder %v2488_v3, %v2504_v14  ;;  %p2243_p1 = scmp.ne.s32.totalorder %s2241_s30, %s2242_s6  ;;  %p2247_p7 = scmp.lt.s32.totalorder %s2241_s30, %s3675_s4 }
  0x54   : > { %1816 = vmatpush.bf16.msk.msra.mxu0 %vm1815_vm4, %v2313_v6  ;;  %1841 = vmatpush.bf16.msk.msra.mxu2 %vm1815_vm4, %v2313_v6  ;;  %vm1817_vm5 = vmpackc.low %vm293_vm3, %vm292_vm2  ;;  %vm493_vm3 = vcmp.eq.s32.totalorder %v2491_v4, %v2507_v16  ;;  %vm528_vm2 = vcmp.eq.s32.totalorder %v2491_v4, %v2510_v17  ;;  %vm564_vm13 = vcmp.eq.s32.totalorder %v2485_v2, %v2513_v18  ;;  %p2248_p9 = scmp.lt.s32.totalorder %s2246_s3, %s2242_s6 }
  0x55   : > { %1830 = vmatpush.bf16.msk.msra.mxu1 %vm1815_vm4, %v2313_v6  ;;  %1843 = vmatpush.bf16.msk.msra.mxu3 %vm1815_vm4, %v2313_v6  ;;  %vm598_vm10 = vcmp.eq.s32.totalorder %v2491_v4, %v2518_v19  ;;  %vm565_vm4 = vcmp.eq.s32.totalorder %v2488_v3, %v2513_v18  ;;  %p2244_p3 = pnand %p2243_p1, %p2408_p4 }
  0x56   : > { %p2249_p5 = por %p2248_p9, %p2247_p7 }
  0x57   : > { %p2245_p12 = pneg %p2244_p3 }
  0x58   : > { %1818 = vmatpush.bf16.msk.msra.mxu0 %vm1817_vm5, %v2313_v6  ;;  %1842 = vmatpush.bf16.msk.msra.mxu2 %vm1817_vm5, %v2313_v6 }
  0x59   : > { %1832 = vmatpush.bf16.msk.msra.mxu1 %vm1817_vm5, %v2313_v6  ;;  %1844 = vmatpush.bf16.msk.msra.mxu3 %vm1817_vm5, %v2313_v6  ;;  %vm495_vm5 = vcmp.eq.s32.totalorder %v2488_v3, %v2507_v16  ;;  %p2250_p8 = pnand %p2249_p5, %p2245_p12 }
  0x5b   : > { %1819 = vmatmul.msk.bf16.vlgmr.msra.gmra.mxu0 %vm324_vm6, %v1839_v7  ;;  %1820 = vmatmul.msk.bf16.vlgmr.msra.gmra.mxu2 %vm324_vm6, %v1840_v8 }
  0x5c   : > { %1833 = vmatmul.msk.bf16.vlgmr.msra.gmra.mxu1 %vm324_vm6, %v1837_v9  ;;  %1834 = vmatmul.msk.bf16.vlgmr.msra.gmra.mxu3 %vm324_vm6, %v1838_v10  ;;  %vm563_vm6 = vcmp.eq.s32.totalorder %v2491_v4, %v2513_v18 }
  0xd8   : > { %v340_v12 = vpop.f32.mrf.mxu0 }
  0xd9   : > { %v375_v15 = vpop.f32.mrf.mxu1 }
  0xda   : > { %v2536_v20 = vadd.f32 %v375_v15, %v340_v12 }
  0xdc   : > { %v391_v27 = vsel %vm387_vm7, %v2536_v20, 0.0  ;;  %v426_v28 = vsel %vm422_vm9, %v2536_v20, 0.0  ;;  %v461_v29 = vsel %vm457_vm11, %v2536_v20, 0.0  ;;  %v496_v30 = vsel %vm492_vm14, %v2536_v20, 0.0 }
  0xdd   : > { %v531_v31 = vsel %vm527_vm15, %v2536_v20, 0.0  ;;  %vm599_vm7 = vcmp.eq.s32.totalorder %v2485_v2, %v2518_v19  ;;  %vm600_vm9 = vcmp.eq.s32.totalorder %v2488_v3, %v2518_v19  ;;  %vm3687_vm11 = vcmp.eq.s32.totalorder %v2482_v1, %v2513_v18 }
  0xde   : > { %v345_v21 = vpop.f32.mrf.mxu2  ;;  %v566_v39 = vsel %vm3687_vm11, %v2536_v20, 0.0  ;;  %vm3689_vm14 = vcmp.eq.s32.totalorder %v2482_v1, %v2518_v19  ;;  %vm3690_vm15 = vcmp.eq.s32.totalorder %v2485_v2, %v2501_v13 }
  0xdf   : > { %v380_v22 = vpop.f32.mrf.mxu3  ;;  %v601_v44 = vsel %vm3689_vm14, %v2536_v20, 0.0 }
  0xe0   : > { %v342_v23 = vpop.f32.mrf.mxu0  ;;  %v2570_v25 = vadd.f32 %v380_v22, %v345_v21 }
  0xe1   : > { %v377_v24 = vpop.f32.mrf.mxu1 }
  0xe2   : > { %v2572_v26 = vadd.f32 %v377_v24, %v342_v23  ;;  %v428_v46 = vsel %vm3690_vm15, %v2570_v25, 0.0  ;;  %v568_v8 = vsel %vm564_vm13, %v2570_v25, 0.0  ;;  %v603_v21 = vsel %vm599_vm7, %v2570_v25, 0.0  ;;  %v1933_v23 = vld [vmem:[%s2468_s10 + $0x7] ss:$0 sm:$0xff] }
  0xe3   : > { %vm633_vm13 = vcmp.eq.s32.totalorder %v2482_v1, %v1933_v23 }
  0xe4   : > { %v392_v32 = vsel %vm388_vm12, %v2572_v26, 0.0  ;;  %v427_v33 = vsel %vm423_vm0, %v2572_v26, 0.0  ;;  %v462_v34 = vsel %vm458_vm1, %v2572_v26, 0.0  ;;  %v497_v35 = vsel %vm493_vm3, %v2572_v26, 0.0 }
  0xe5   : > { %v395_v36 = vadd.f32 %v392_v32, %v391_v27  ;;  %v430_v37 = vadd.f32 %v427_v33, %v426_v28  ;;  %v465_v38 = vadd.f32 %v462_v34, %v461_v29  ;;  %vm3688_vm12 = vcmp.eq.s32.totalorder %v2485_v2, %v2498_v11 }
  0xe6   : > { %v347_v40 = vpop.f32.mrf.mxu2  ;;  %v393_v41 = vsel %vm3688_vm12, %v2570_v25, 0.0  ;;  %v532_v42 = vsel %vm528_vm2, %v2572_v26, 0.0  ;;  %v567_v43 = vsel %vm563_vm6, %v2572_v26, 0.0  ;;  %vm3691_vm0 = vcmp.eq.s32.totalorder %v2485_v2, %v2504_v14 }
  0xe7   : > { %v382_v45 = vpop.f32.mrf.mxu3  ;;  %v463_v47 = vsel %vm3691_vm0, %v2570_v25, 0.0  ;;  %vm3692_vm1 = vcmp.eq.s32.totalorder %v2485_v2, %v2507_v16  ;;  %v500_v49 = vadd.f32 %v497_v35, %v496_v30  ;;  %vm3693_vm2 = vcmp.eq.s32.totalorder %v2485_v2, %v2510_v17 }
  0xe8   : > { %v498_v48 = vsel %vm3692_vm1, %v2570_v25, 0.0  ;;  %v2648_v50 = vadd.f32 %v382_v45, %v347_v40  ;;  %v533_v51 = vsel %vm3693_vm2, %v2570_v25, 0.0  ;;  %v535_v52 = vadd.f32 %v532_v42, %v531_v31 }
  0xe9   : > { %v602_v53 = vsel %vm598_vm10, %v2572_v26, 0.0  ;;  %v396_v54 = vadd.f32 %v395_v36, %v393_v41  ;;  %v431_v55 = vadd.f32 %v430_v37, %v428_v46  ;;  %v466_v56 = vadd.f32 %v465_v38, %v463_v47 }
  0xea   : > { %v570_v57 = vadd.f32 %v567_v43, %v566_v39  ;;  %vm3694_vm3 = vcmp.eq.s32.totalorder %v2488_v3, %v2498_v11  ;;  %vm3695_vm6 = vcmp.eq.s32.totalorder %v2488_v3, %v2501_v13  ;;  %v464_v60 = vsel %vm460_vm8, %v2648_v50, 0.0 }
  0xeb   : > { %v394_v58 = vsel %vm3694_vm3, %v2648_v50, 0.0  ;;  %v429_v59 = vsel %vm3695_vm6, %v2648_v50, 0.0  ;;  %v499_v61 = vsel %vm495_vm5, %v2648_v50, 0.0  ;;  %v467_v0 = vadd.f32 %v466_v56, %v464_v60 }
  0xec   : > { %v397_v62 = vadd.f32 %v396_v54, %v394_v58  ;;  %v432_v63 = vadd.f32 %v431_v55, %v429_v59  ;;  %v501_v5 = vadd.f32 %v500_v49, %v498_v48  ;;  %vm3696_vm10 = vcmp.eq.s32.totalorder %v2488_v3, %v2510_v17 }
  0xed   : > { %v534_v6 = vsel %vm3696_vm10, %v2648_v50, 0.0  ;;  %v536_v7 = vadd.f32 %v535_v52, %v533_v51  ;;  %v605_v9 = vadd.f32 %v602_v53, %v601_v44  ;;  %v569_v13 = vsel %vm565_vm4, %v2648_v50, 0.0 }
  0xee   : > { %v398_v10 = vrot.slane %v397_v62, 4  ;;  %v433_v11 = vrot.slane %v432_v63, 4  ;;  %v502_v12 = vadd.f32 %v501_v5, %v499_v61  ;;  %v571_v15 = vadd.f32 %v570_v57, %v568_v8 }
  0xef   : > { %v537_v14 = vadd.f32 %v536_v7, %v534_v6  ;;  %v468_v17 = vrot.slane %v467_v0, 4  ;;  %v604_v22 = vsel %vm600_vm9, %v2648_v50, 0.0  ;;  %v606_v28 = vadd.f32 %v605_v9, %v603_v21  ;;  %v1934_v6 = vld [vmem:[%s2468_s10 + $0x8] ss:$0 sm:$0xff] }
  0xf0   : > { %v399_v16 = vadd.f32 %v398_v10, %v397_v62  ;;  %v434_v24 = vadd.f32 %v433_v11, %v432_v63  ;;  %v572_v27 = vadd.f32 %v571_v15, %v569_v13  ;;  %v503_v29 = vrot.slane %v502_v12, 4 }
  0xf1   : > { %vm634_vm8 = vcmp.eq.s32.totalorder %v2491_v4, %v1933_v23  ;;  %v538_v30 = vrot.slane %v537_v14, 4  ;;  %v607_v31 = vadd.f32 %v606_v28, %v604_v22  ;;  %v469_v32 = vadd.f32 %v468_v17, %v467_v0 }
  0xf2   : > { %v400_v18 = vrot.slane %v399_v16, 2  ;;  %v435_v34 = vrot.slane %v434_v24, 2  ;;  %v573_v35 = vrot.slane %v572_v27, 4  ;;  %v638_v36 = vsel %vm634_vm8, %v2572_v26, 0.0 }
  0xf3   : > { %v504_v19 = vadd.f32 %v503_v29, %v502_v12  ;;  %v539_v37 = vadd.f32 %v538_v30, %v537_v14  ;;  %v608_v38 = vrot.slane %v607_v31, 4  ;;  %v637_v39 = vsel %vm633_vm13, %v2536_v20, 0.0 }
  0xf4   : > { %v401_v33 = vadd.f32 %v400_v18, %v399_v16  ;;  %v470_v40 = vrot.slane %v469_v32, 2  ;;  %vm635_vm4 = vcmp.eq.s32.totalorder %v2485_v2, %v1933_v23  ;;  %vm636_vm5 = vcmp.eq.s32.totalorder %v2488_v3, %v1933_v23 }
  0xf5   : > { %v641_v41 = vadd.f32 %v638_v36, %v637_v39  ;;  %v436_v43 = vadd.f32 %v435_v34, %v434_v24  ;;  %v574_v44 = vadd.f32 %v573_v35, %v572_v27  ;;  %v505_v45 = vrot.slane %v504_v19, 2 }
  0xf6   : > { %v402_v42 = vrot.slane %v401_v33, 1  ;;  %v540_v46 = vrot.slane %v539_v37, 2  ;;  %v609_v47 = vadd.f32 %v608_v38, %v607_v31  ;;  %v639_v48 = vsel %vm635_vm4, %v2570_v25, 0.0 }
  0xf7   : > { %v640_v49 = vsel %vm636_vm5, %v2648_v50, 0.0  ;;  %v471_v51 = vadd.f32 %v470_v40, %v469_v32  ;;  %v642_v52 = vadd.f32 %v641_v41, %v639_v48  ;;  %v437_v54 = vrot.slane %v436_v43, 1 }
  0xf8   : > { %v2703_v53 = vadd.f32 %v402_v42, %v401_v33  ;;  %v575_v55 = vrot.slane %v574_v44, 2  ;;  %v506_v56 = vadd.f32 %v505_v45, %v504_v19  ;;  %v541_v58 = vadd.f32 %v540_v46, %v539_v37 }
  0xf9   : > { %v643_v57 = vadd.f32 %v642_v52, %v640_v49  ;;  %v610_v59 = vrot.slane %v609_v47, 2  ;;  %v472_v60 = vrot.slane %v471_v51, 1  ;;  %v2706_v62 = vadd.f32 %v437_v54, %v436_v43  ;;  %v1935_v43 = vld [vmem:[%s2468_s10 + $0x9] ss:$0 sm:$0xff] }
  0xfa   : > { %v405_v61 = vand.u32 2147483647, %v2703_v53  ;;  %v576_v63 = vadd.f32 %v575_v55, %v574_v44  ;;  %v507_v0 = vrot.slane %v506_v56, 1  ;;  %v542_v7 = vrot.slane %v541_v58, 1 }
  0xfb   : > { %v644_v5 = vrot.slane %v643_v57, 4  ;;  %v611_v8 = vadd.f32 %v610_v59, %v609_v47  ;;  %v2709_v9 = vadd.f32 %v472_v60, %v471_v51  ;;  %vm670_vm7 = vcmp.eq.s32.totalorder %v2491_v4, %v1934_v6 }
  0xfc   : > { %v406_v10 = vsub.f32 0.0, %v405_v61  ;;  %v440_v11 = vand.u32 2147483647, %v2706_v62  ;;  %v577_v12 = vrot.slane %v576_v63, 1  ;;  %v2713_v13 = vadd.f32 %v507_v0, %v506_v56 }
  0xfd   : > { %v645_v14 = vadd.f32 %v644_v5, %v643_v57  ;;  %vm669_vm9 = vcmp.eq.s32.totalorder %v2482_v1, %v1934_v6  ;;  %v2716_v15 = vadd.f32 %v542_v7, %v541_v58  ;;  %v612_v16 = vrot.slane %v611_v8, 1 }
  0xfe   : > { %v674_v17 = vsel %vm670_vm7, %v2572_v26, 0.0  ;;  %v475_v21 = vand.u32 2147483647, %v2709_v9  ;;  %vm671_vm11 = vcmp.eq.s32.totalorder %v2485_v2, %v1934_v6  ;;  %v407_v22 = vmul.f32 1.442695, %v406_v10 }
  0xff   : > { %v441_v23 = vsub.f32 0.0, %v440_v11  ;;  %v2721_v24 = vadd.f32 %v577_v12, %v576_v63  ;;  %v673_v27 = vsel %vm669_vm9, %v2536_v20, 0.0  ;;  %v510_v28 = vand.u32 2147483647, %v2713_v13  ;;  %v1936_v10 = vld [vmem:[%s2468_s10 + $0xa] ss:$0 sm:$0xff] }
 0x100   : > { %v646_v18 = vrot.slane %v645_v14, 2  ;;  %vm672_vm12 = vcmp.eq.s32.totalorder %v2488_v3, %v1934_v6  ;;  %v677_v29 = vadd.f32 %v674_v17, %v673_v27  ;;  %v545_v30 = vand.u32 2147483647, %v2716_v15 }
 0x101   : > { %v613_v31 = vadd.f32 %v612_v16, %v611_v8  ;;  %v476_v32 = vsub.f32 0.0, %v475_v21  ;;  %v675_v33 = vsel %vm671_vm11, %v2570_v25, 0.0  ;;  %1962 = vpow2.f32 %v407_v22 }
 0x102   : > { %v442_v34 = vmul.f32 1.442695, %v441_v23  ;;  %v580_v35 = vand.u32 2147483647, %v2721_v24  ;;  %v676_v36 = vsel %vm672_vm12, %v2648_v50, 0.0  ;;  %v511_v19 = vsub.f32 0.0, %v510_v28 }
 0x103   : > { %v647_v37 = vadd.f32 %v646_v18, %v645_v14  ;;  %v678_v38 = vadd.f32 %v677_v29, %v675_v33  ;;  %v546_v39 = vsub.f32 0.0, %v545_v30  ;;  %v614_v40 = vsub.f32 0.0, %v613_v31 }
 0x104   : > { %v477_v41 = vmul.f32 1.442695, %v476_v32  ;;  %1964 = vpow2.f32 %v442_v34  ;;  %v581_v44 = vsub.f32 0.0, %v580_v35  ;;  %v512_v45 = vmul.f32 1.442695, %v511_v19 }
 0x105   : > { %v679_v42 = vadd.f32 %v678_v38, %v676_v36  ;;  %v648_v46 = vrot.slane %v647_v37, 1  ;;  %vm706_vm14 = vcmp.eq.s32.totalorder %v2491_v4, %v1935_v43  ;;  %v404_v48 = vmin.f32 %v2703_v53, 0.0 }
 0x106   : > { %v547_v49 = vmul.f32 1.442695, %v546_v39  ;;  %v616_v51 = vand.u32 2147483647, %v614_v40  ;;  %v439_v52 = vmin.f32 %v2706_v62, 0.0  ;;  %1966 = vpow2.f32 %v477_v41 }
 0x107   : > { %v2732_v47 = vpop.eup %1962  ;;  %v680_v54 = vrot.slane %v679_v42, 4  ;;  %vm705_vm15 = vcmp.eq.s32.totalorder %v2482_v1, %v1935_v43  ;;  %v474_v55 = vmin.f32 %v2709_v9, 0.0  ;;  %v509_v56 = vmin.f32 %v2713_v13, 0.0 }
 0x108   : > { %v582_v57 = vmul.f32 1.442695, %v581_v44  ;;  %v710_v58 = vsel %vm706_vm14, %v2572_v26, 0.0  ;;  %v412_v59 = vmul.f32 -0.5, %v2732_v47  ;;  %1968 = vpow2.f32 %v512_v45 }
 0x109   : > { %v2741_v60 = vadd.f32 %v648_v46, %v647_v37  ;;  %v681_v61 = vadd.f32 %v680_v54, %v679_v42  ;;  %v544_v0 = vmin.f32 %v2716_v15, 0.0  ;;  %1970 = vpow2.f32 %v547_v49  ;;  %v1937_v42 = vld [vmem:[%s2468_s10 + $0xb] ss:$0 sm:$0xff] }
 0x10a   : > { %v1965_v63 = vpop.eup %1964  ;;  %v617_v5 = vsub.f32 0.0, %v616_v51  ;;  %v709_v6 = vsel %vm705_vm15, %v2536_v20, 0.0  ;;  %vm707_vm0 = vcmp.eq.s32.totalorder %v2485_v2, %v1935_v43  ;;  %vm708_vm1 = vcmp.eq.s32.totalorder %v2488_v3, %v1935_v43 }
 0x10b   : > { %v682_v7 = vrot.slane %v681_v61, 2  ;;  %v713_v8 = vadd.f32 %v710_v58, %v709_v6  ;;  %v409_v11 = vadd.f32 1.0, %v2732_v47  ;;  %v579_v12 = vmin.f32 %v2721_v24, 0.0 }
 0x10c   : > { %1972 = vpow2.f32 %v582_v57  ;;  %v2750_v14 = vmin.f32 %v614_v40, 0.0  ;;  %v2752_v16 = vpop.eup %1966  ;;  %v413_v17 = vadd.f32 1.0, %v412_v59  ;;  %v444_v21 = vadd.f32 1.0, %v1965_v63 }
 0x10d   : > { %v447_v22 = vmul.f32 -0.5, %v1965_v63  ;;  %v650_v23 = vsub.f32 0.0, %v2741_v60  ;;  %v415_v27 = vand.u32 2147483647, %v2732_v47  ;;  %v2756_v28 = vmul.f32 1.442695, %v617_v5 }
 0x10e   : > { %v711_v18 = vsel %vm707_vm0, %v2570_v25, 0.0  ;;  %v712_v29 = vsel %vm708_vm1, %v2648_v50, 0.0  ;;  %v2760_v30 = vpop.eup %1968  ;;  %v450_v31 = vand.u32 2147483647, %v1965_v63  ;;  %v683_v32 = vadd.f32 %v682_v7, %v681_v61 }
 0x10f   : > { %v714_v33 = vadd.f32 %v713_v8, %v711_v18  ;;  %vm741_vm2 = vcmp.eq.s32.totalorder %v2482_v1, %v1936_v10  ;;  %v2763_v34 = vpop.eup %1970  ;;  %1974 = vlog2.f32 %v409_v11  ;;  %v479_v35 = vadd.f32 1.0, %v2752_v16 }
 0x110   : > { %v482_v36 = vmul.f32 -0.5, %v2752_v16  ;;  %vm742_vm3 = vcmp.eq.s32.totalorder %v2491_v4, %v1936_v10  ;;  %v2769_v19 = vmul.f32 %v2732_v47, %v413_v17  ;;  %1976 = vlog2.f32 %v444_v21  ;;  %v1938_v21 = vld [vmem:[%s2468_s10 + $0xc] ss:$0 sm:$0xff] }
 0x111   : > { %v448_v37 = vadd.f32 1.0, %v447_v22  ;;  %v715_v38 = vadd.f32 %v714_v33, %v712_v29  ;;  %vm743_vm6 = vcmp.eq.s32.totalorder %v2485_v2, %v1936_v10  ;;  %vm744_vm10 = vcmp.eq.s32.totalorder %v2488_v3, %v1936_v10 }
 0x112   : > { %v2771_v39 = vpop.eup %1972  ;;  %v745_v40 = vsel %vm741_vm2, %v2536_v20, 0.0  ;;  %v746_v41 = vsel %vm742_vm3, %v2572_v26, 0.0  ;;  %v514_v43 = vadd.f32 1.0, %v2760_v30  ;;  %v684_v44 = vrot.slane %v683_v32, 1 }
 0x113   : > { %v716_v45 = vrot.slane %v715_v38, 4  ;;  %v749_v46 = vadd.f32 %v746_v41, %v745_v40  ;;  %1978 = vlog2.f32 %v479_v35  ;;  %v483_v47 = vadd.f32 1.0, %v482_v36 }
 0x114   : > { %v485_v49 = vand.u32 2147483647, %v2752_v16  ;;  %v517_v51 = vmul.f32 -0.5, %v2760_v30  ;;  %vm2781_vm8 = vcmp.lt.f32.partialorder %v415_v27, 0.0004427343  ;;  %v449_v57 = vmul.f32 %v1965_v63, %v448_v37 }
 0x115   : > { %v717_v58 = vadd.f32 %v716_v45, %v715_v38  ;;  %v747_v59 = vsel %vm743_vm6, %v2570_v25, 0.0  ;;  %v748_v61 = vsel %vm744_vm10, %v2648_v50, 0.0  ;;  %v1975_v5 = vpop.eup %1974  ;;  %vm2791_vm13 = vcmp.lt.f32.partialorder %v450_v31, 0.0004427343 }
 0x116   : > { %v549_v7 = vadd.f32 1.0, %v2763_v34  ;;  %v750_v8 = vadd.f32 %v749_v46, %v747_v59  ;;  %vm777_vm4 = vcmp.eq.s32.totalorder %v2482_v1, %v1937_v42  ;;  %vm778_vm5 = vcmp.eq.s32.totalorder %v2491_v4, %v1937_v42  ;;  %v1977_v63 = vpop.eup %1976 }
 0x117   : > { %1980 = vlog2.f32 %v514_v43  ;;  %v520_v11 = vand.u32 2147483647, %v2760_v30  ;;  %v552_v17 = vmul.f32 -0.5, %v2763_v34  ;;  %v2800_v10 = vadd.f32 %v684_v44, %v683_v32 }
 0x118   : > { %v2804_v22 = vmul.f32 %v2752_v16, %v483_v47  ;;  %v518_v27 = vadd.f32 1.0, %v517_v51  ;;  %v718_v18 = vrot.slane %v717_v58, 2  ;;  %v751_v29 = vadd.f32 %v750_v8, %v748_v61 }
 0x119   : > { %vm779_vm7 = vcmp.eq.s32.totalorder %v2485_v2, %v1937_v42  ;;  %vm780_vm9 = vcmp.eq.s32.totalorder %v2488_v3, %v1937_v42  ;;  %v781_v31 = vsel %vm777_vm4, %v2536_v20, 0.0  ;;  %v782_v33 = vsel %vm778_vm5, %v2572_v26, 0.0  ;;  %v1979_v35 = vpop.eup %1978 }
 0x11a   : > { %v411_v36 = vmul.f32 0.6931472, %v1975_v5  ;;  %v446_v37 = vmul.f32 0.6931472, %v1977_v63  ;;  %1982 = vlog2.f32 %v549_v7  ;;  %v785_v32 = vadd.f32 %v782_v33, %v781_v31 }
 0x11b   : > { %v652_v38 = vand.u32 2147483647, %v650_v23  ;;  %v686_v40 = vsub.f32 0.0, %v2800_v10  ;;  %vm813_vm11 = vcmp.eq.s32.totalorder %v2482_v1, %v1938_v21  ;;  %vm814_vm12 = vcmp.eq.s32.totalorder %v2491_v4, %v1938_v21 }
 0x11c   : > { %v719_v41 = vadd.f32 %v718_v18, %v717_v58  ;;  %v752_v42 = vrot.slane %v751_v29, 4  ;;  %v783_v43 = vsel %vm779_vm7, %v2570_v25, 0.0  ;;  %v784_v44 = vsel %vm780_vm9, %v2648_v50, 0.0 }
 0x11d   : > { %v1981_v45 = vpop.eup %1980  ;;  %v786_v46 = vadd.f32 %v785_v32, %v783_v43  ;;  %vm815_vm14 = vcmp.eq.s32.totalorder %v2485_v2, %v1938_v21  ;;  %vm816_vm15 = vcmp.eq.s32.totalorder %v2488_v3, %v1938_v21  ;;  %v818_v47 = vsel %vm814_vm12, %v2572_v26, 0.0 }
 0x11e   : > { %v417_v51 = vsel %vm2781_vm8, %v2769_v19, %v411_v36  ;;  %v584_v59 = vadd.f32 1.0, %v2771_v39  ;;  %1984 = vpow2.f32 %v2756_v28  ;;  %v817_v58 = vsel %vm813_vm11, %v2536_v20, 0.0 }
 0x11f   : > { %v452_v61 = vsel %vm2791_vm13, %v449_v57, %v446_v37  ;;  %v653_v5 = vsub.f32 0.0, %v652_v38  ;;  %v787_v7 = vadd.f32 %v786_v46, %v784_v44  ;;  %v821_v8 = vadd.f32 %v818_v47, %v817_v58  ;;  %v1939_v46 = vld [vmem:[%s2468_s10 + $0xd] ss:$0 sm:$0xff] }
 0x120   : > { %v1983_v63 = vpop.eup %1982  ;;  %v481_v21 = vmul.f32 0.6931472, %v1979_v35  ;;  %v720_v18 = vrot.slane %v719_v41, 1  ;;  %v819_v31 = vsel %vm815_vm14, %v2570_v25, 0.0  ;;  %v820_v54 = vsel %vm816_vm15, %v2648_v50, 0.0 }
 0x121   : > { %v555_v19 = vand.u32 2147483647, %v2763_v34  ;;  %v688_v28 = vand.u32 2147483647, %v686_v40  ;;  %v753_v33 = vadd.f32 %v752_v42, %v751_v29  ;;  %v822_v36 = vadd.f32 %v821_v8, %v819_v31 }
 0x122   : > { %v418_v57 = vsub.f32 %v404_v48, %v417_v51  ;;  %v453_v6 = vsub.f32 %v439_v52, %v452_v61  ;;  %1986 = vlog2.f32 %v584_v59  ;;  %v587_v35 = vmul.f32 -0.5, %v2771_v39 }
 0x123   : > { %vm2840_vm0 = vcmp.lt.f32.partialorder %v485_v49, 0.0004427343  ;;  %v654_v32 = vmul.f32 1.442695, %v653_v5  ;;  %v788_v38 = vrot.slane %v787_v7, 4  ;;  %v823_v29 = vadd.f32 %v822_v36, %v820_v54 }
 0x124   : > { %v2844_v42 = vpop.eup %1984  ;;  %v487_v53 = vsel %vm2840_vm0, %v2804_v22, %v481_v21  ;;  %vm2849_vm1 = vcmp.lt.f32.partialorder %v520_v11, 0.0004427343  ;;  %v553_v48 = vadd.f32 1.0, %v552_v17  ;;  %v2853_v52 = vadd.f32 %v720_v18, %v719_v41 }
 0x125   : > { %v516_v16 = vmul.f32 0.6931472, %v1981_v45  ;;  %v519_v49 = vmul.f32 %v2760_v30, %v518_v27  ;;  %v689_v43 = vsub.f32 0.0, %v688_v28  ;;  %v754_v44 = vrot.slane %v753_v33, 2 }
 0x126   : > { %v454_v47 = vadd.f32 %v453_v6, %v418_v57  ;;  %vm2857_vm2 = vcmp.lt.f32.partialorder %v555_v19, 0.0004427343  ;;  %v588_v59 = vadd.f32 1.0, %v587_v35  ;;  %v590_v11 = vand.u32 2147483647, %v2771_v39 }
 0x127   : > { %v488_v22 = vsub.f32 %v474_v55, %v487_v53  ;;  %1988 = vpow2.f32 %v654_v32  ;;  %v789_v17 = vadd.f32 %v788_v38, %v787_v7  ;;  %v824_v41 = vrot.slane %v823_v29, 4  ;;  %v1940_v6 = vld [vmem:[%s2468_s10 + $0xe] ss:$0 sm:$0xff] }
 0x128   : > { %v1987_v45 = vpop.eup %1986  ;;  %v551_v58 = vmul.f32 0.6931472, %v1983_v63  ;;  %v620_v30 = vadd.f32 1.0, %v2844_v42  ;;  %v722_v27 = vsub.f32 0.0, %v2853_v52  ;;  %vm850_vm3 = vcmp.eq.s32.totalorder %v2491_v4, %v1939_v46 }
 0x129   : > { %v522_v61 = vsel %vm2849_vm1, %v519_v49, %v516_v16  ;;  %v554_v5 = vmul.f32 %v2763_v34, %v553_v48  ;;  %v690_v8 = vmul.f32 1.442695, %v689_v43  ;;  %v755_v21 = vadd.f32 %v754_v44, %v753_v33 }
 0x12a   : > { %v489_v9 = vadd.f32 %v488_v22, %v454_v47  ;;  %v589_v55 = vmul.f32 %v2771_v39, %v588_v59  ;;  %vm2871_vm6 = vcmp.lt.f32.partialorder %v590_v11, 0.0004427343  ;;  %vm849_vm10 = vcmp.eq.s32.totalorder %v2482_v1, %v1939_v46 }
 0x12b   : > { %v586_v63 = vmul.f32 0.6931472, %v1987_v45  ;;  %v790_v18 = vrot.slane %v789_v17, 2  ;;  %v825_v31 = vadd.f32 %v824_v41, %v823_v29  ;;  %v854_v54 = vsel %vm850_vm3, %v2572_v26, 0.0  ;;  %v1941_v41 = vld [vmem:[%s2468_s10 + $0xf] ss:$0 sm:$0xff] }
 0x12c   : > { %v523_v34 = vsub.f32 %v509_v56, %v522_v61  ;;  %v557_v19 = vsel %vm2857_vm2, %v554_v5, %v551_v58  ;;  %1990 = vlog2.f32 %v620_v30  ;;  %v724_v39 = vand.u32 2147483647, %v722_v27 }
 0x12d   : > { %v2883_v28 = vpop.eup %1988  ;;  %v623_v33 = vmul.f32 -0.5, %v2844_v42  ;;  %1992 = vpow2.f32 %v690_v8  ;;  %v756_v36 = vrot.slane %v755_v21, 1  ;;  %v853_v57 = vsel %vm849_vm10, %v2536_v20, 0.0 }
 0x12e   : > { %v524_v35 = vadd.f32 %v523_v34, %v489_v9  ;;  %vm851_vm8 = vcmp.eq.s32.totalorder %v2485_v2, %v1939_v46  ;;  %vm852_vm13 = vcmp.eq.s32.totalorder %v2488_v3, %v1939_v46  ;;  %v857_v13 = vadd.f32 %v854_v54, %v853_v57 }
 0x12f   : > { %v592_v56 = vsel %vm2871_vm6, %v589_v55, %v586_v63  ;;  %v791_v37 = vadd.f32 %v790_v18, %v789_v17  ;;  %v826_v32 = vrot.slane %v825_v31, 2  ;;  %vm886_vm4 = vcmp.eq.s32.totalorder %v2491_v4, %v1940_v6 }
 0x130   : > { %v558_v38 = vsub.f32 %v544_v0, %v557_v19  ;;  %v2897_v29 = vmin.f32 %v650_v23, 0.0  ;;  %v656_v53 = vadd.f32 1.0, %v2883_v28  ;;  %v725_v62 = vsub.f32 0.0, %v724_v39 }
 0x131   : > { %v2900_v48 = vadd.f32 %v756_v36, %v755_v21  ;;  %v855_v16 = vsel %vm851_vm8, %v2570_v25, 0.0  ;;  %v856_v49 = vsel %vm852_vm13, %v2648_v50, 0.0  ;;  %vm885_vm5 = vcmp.eq.s32.totalorder %v2482_v1, %v1940_v6 }
 0x132   : > { %v1991_v43 = vpop.eup %1990  ;;  %v593_v15 = vsub.f32 %v579_v12, %v592_v56  ;;  %v626_v0 = vand.u32 2147483647, %v2844_v42  ;;  %v858_v60 = vadd.f32 %v857_v13, %v855_v16  ;;  %v890_v23 = vsel %vm886_vm4, %v2572_v26, 0.0 }
 0x133   : > { %v2909_v44 = vpop.eup %1992  ;;  %v559_v46 = vadd.f32 %v558_v38, %v524_v35  ;;  %v624_v47 = vadd.f32 1.0, %v623_v33  ;;  %v792_v51 = vrot.slane %v791_v37, 1  ;;  %v827_v59 = vadd.f32 %v826_v32, %v825_v31 }
 0x134   : > { %1994 = vlog2.f32 %v656_v53  ;;  %v726_v11 = vmul.f32 1.442695, %v725_v62  ;;  %v859_v22 = vadd.f32 %v858_v60, %v856_v49  ;;  %v889_v17 = vsel %vm885_vm5, %v2536_v20, 0.0  ;;  %v1942_v49 = vld [vmem:[%s2468_s10 + $0x10] ss:$0 sm:$0xff] }
 0x135   : > { %v758_v24 = vsub.f32 0.0, %v2900_v48  ;;  %vm887_vm7 = vcmp.eq.s32.totalorder %v2485_v2, %v1940_v6  ;;  %vm888_vm9 = vcmp.eq.s32.totalorder %v2488_v3, %v1940_v6  ;;  %v893_v12 = vadd.f32 %v890_v23, %v889_v17 }
 0x136   : > { %v622_v45 = vmul.f32 0.6931472, %v1991_v43  ;;  %vm2916_vm11 = vcmp.lt.f32.partialorder %v626_v0, 0.0004427343  ;;  %v659_v30 = vmul.f32 -0.5, %v2883_v28  ;;  %v692_v61 = vadd.f32 1.0, %v2909_v44 }
 0x137   : > { %v625_v5 = vmul.f32 %v2844_v42, %v624_v47  ;;  %v662_v8 = vand.u32 2147483647, %v2883_v28  ;;  %v2924_v21 = vadd.f32 %v792_v51, %v791_v37  ;;  %v828_v9 = vrot.slane %v827_v59, 1 }
 0x138   : > { %v860_v55 = vrot.slane %v859_v22, 4  ;;  %v891_v7 = vsel %vm887_vm7, %v2570_v25, 0.0  ;;  %v892_v63 = vsel %vm888_vm9, %v2648_v50, 0.0  ;;  %vm922_vm12 = vcmp.eq.s32.totalorder %v2491_v4, %v1941_v41 }
 0x139   : > { %v594_v18 = vadd.f32 %v593_v15, %v559_v46  ;;  %1996 = vpow2.f32 %v726_v11  ;;  %v760_v31 = vand.u32 2147483647, %v758_v24  ;;  %v894_v54 = vadd.f32 %v893_v12, %v891_v7 }
 0x13a   : > { %v1995_v34 = vpop.eup %1994  ;;  %v628_v42 = vsel %vm2916_vm11, %v625_v5, %v622_v45  ;;  %v660_v19 = vadd.f32 1.0, %v659_v30  ;;  %1998 = vlog2.f32 %v692_v61  ;;  %vm921_vm14 = vcmp.eq.s32.totalorder %v2482_v1, %v1941_v41  ;;  %v1943_v61 = vld [vmem:[%s2468_s10 + $0x11] ss:$0 sm:$0xff] }
 0x13b   : > { %v794_v39 = vsub.f32 0.0, %v2924_v21  ;;  %v2935_v33 = vadd.f32 %v828_v9, %v827_v59  ;;  %v895_v36 = vadd.f32 %v894_v54, %v892_v63  ;;  %v926_v57 = vsel %vm922_vm12, %v2572_v26, 0.0 }
 0x13c   : > { %vm2938_vm15 = vcmp.lt.f32.partialorder %v662_v8, 0.0004427343  ;;  %v2944_v35 = vmin.f32 %v686_v40, 0.0  ;;  %v695_v13 = vmul.f32 -0.5, %v2909_v44  ;;  %v861_v56 = vadd.f32 %v860_v55, %v859_v22 }
 0x13d   : > { %v629_v37 = vsub.f32 %v2750_v14, %v628_v42  ;;  %v658_v32 = vmul.f32 0.6931472, %v1995_v34  ;;  %v761_v38 = vsub.f32 0.0, %v760_v31  ;;  %v925_v53 = vsel %vm921_vm14, %v2536_v20, 0.0 }
 0x13e   : > { %v698_v62 = vand.u32 2147483647, %v2909_v44  ;;  %vm923_vm0 = vcmp.eq.s32.totalorder %v2485_v2, %v1941_v41  ;;  %vm924_vm1 = vcmp.eq.s32.totalorder %v2488_v3, %v1941_v41  ;;  %v929_v16 = vadd.f32 %v926_v57, %v925_v53 }
 0x13f   : > { %v2953_v10 = vpop.eup %1996  ;;  %v661_v40 = vmul.f32 %v2883_v28, %v660_v19  ;;  %v796_v43 = vand.u32 2147483647, %v794_v39  ;;  %v830_v14 = vsub.f32 0.0, %v2935_v33  ;;  %v896_v15 = vrot.slane %v895_v36, 4 }
 0x140   : > { %v1999_v0 = vpop.eup %1998  ;;  %v630_v60 = vadd.f32 %v629_v37, %v594_v18  ;;  %v696_v23 = vadd.f32 1.0, %v695_v13  ;;  %v862_v46 = vrot.slane %v861_v56, 2  ;;  %vm958_vm2 = vcmp.eq.s32.totalorder %v2491_v4, %v1942_v49 }
 0x141   : > { %v664_v47 = vsel %vm2938_vm15, %v661_v40, %v658_v32  ;;  %v762_v51 = vmul.f32 1.442695, %v761_v38  ;;  %v927_v28 = vsel %vm923_vm0, %v2570_v25, 0.0  ;;  %v928_v59 = vsel %vm924_vm1, %v2648_v50, 0.0 }
 0x142   : > { %vm2968_vm3 = vcmp.lt.f32.partialorder %v698_v62, 0.0004427343  ;;  %v728_v22 = vadd.f32 1.0, %v2953_v10  ;;  %v930_v17 = vadd.f32 %v929_v16, %v927_v28  ;;  %vm957_vm6 = vcmp.eq.s32.totalorder %v2482_v1, %v1942_v49 }
 0x143   : > { %v797_v12 = vsub.f32 0.0, %v796_v43  ;;  %v832_v45 = vand.u32 2147483647, %v830_v14  ;;  %v897_v58 = vadd.f32 %v896_v15, %v895_v36  ;;  %v962_v30 = vsel %vm958_vm2, %v2572_v26, 0.0  ;;  %v1944_v15 = vld [vmem:[%s2468_s10 + $0x12] ss:$0 sm:$0xff] }
 0x144   : > { %v694_v5 = vmul.f32 0.6931472, %v1999_v0  ;;  %v697_v41 = vmul.f32 %v2909_v44, %v696_v23  ;;  %v863_v8 = vadd.f32 %v862_v46, %v861_v56  ;;  %v931_v9 = vadd.f32 %v930_v17, %v928_v59 }
 0x145   : > { %2000 = vpow2.f32 %v762_v51  ;;  %vm959_vm10 = vcmp.eq.s32.totalorder %v2485_v2, %v1942_v49  ;;  %vm960_vm8 = vcmp.eq.s32.totalorder %v2488_v3, %v1942_v49  ;;  %v961_v55 = vsel %vm957_vm6, %v2536_v20, 0.0 }
 0x146   : > { %2002 = vlog2.f32 %v728_v22  ;;  %v731_v7 = vmul.f32 -0.5, %v2953_v10  ;;  %v965_v63 = vadd.f32 %v962_v30, %v961_v55  ;;  %vm994_vm13 = vcmp.eq.s32.totalorder %v2491_v4, %v1943_v61 }
 0x147   : > { %v798_v18 = vmul.f32 1.442695, %v797_v12  ;;  %v833_v31 = vsub.f32 0.0, %v832_v45  ;;  %v898_v54 = vrot.slane %v897_v58, 2  ;;  %vm993_vm4 = vcmp.eq.s32.totalorder %v2482_v1, %v1943_v61 }
 0x148   : > { %v864_v44 = vrot.slane %v863_v8, 1  ;;  %v932_v34 = vrot.slane %v931_v9, 4  ;;  %v963_v42 = vsel %vm959_vm10, %v2570_v25, 0.0  ;;  %v964_v19 = vsel %vm960_vm8, %v2648_v50, 0.0 }
 0x149   : > { %v966_v36 = vadd.f32 %v965_v63, %v963_v42  ;;  %vm995_vm5 = vcmp.eq.s32.totalorder %v2485_v2, %v1943_v61  ;;  %vm996_vm7 = vcmp.eq.s32.totalorder %v2488_v3, %v1943_v61  ;;  %v998_v57 = vsel %vm994_vm13, %v2572_v26, 0.0 }
 0x14a   : > { %v665_v6 = vsub.f32 %v2897_v29, %v664_v47  ;;  %v700_v13 = vsel %vm2968_vm3, %v697_v41, %v694_v5  ;;  %v734_v56 = vand.u32 2147483647, %v2953_v10  ;;  %v997_v37 = vsel %vm993_vm4, %v2536_v20, 0.0 }
 0x14b   : > { %v2995_v32 = vpop.eup %2000  ;;  %v732_v38 = vadd.f32 1.0, %v731_v7  ;;  %v899_v53 = vadd.f32 %v898_v54, %v897_v58  ;;  %v967_v62 = vadd.f32 %v966_v36, %v964_v19  ;;  %v1001_v16 = vadd.f32 %v998_v57, %v997_v37  ;;  %v1945_v54 = vld [vmem:[%s2468_s10 + $0x13] ss:$0 sm:$0xff] }
 0x14c   : > { %v2003_v49 = vpop.eup %2002  ;;  %v723_v40 = vmin.f32 %v722_v27, 0.0  ;;  %2004 = vpow2.f32 %v798_v18  ;;  %v999_v29 = vsel %vm995_vm5, %v2570_v25, 0.0  ;;  %v1000_v43 = vsel %vm996_vm7, %v2648_v50, 0.0 }
 0x14d   : > { %v834_v0 = vmul.f32 1.442695, %v833_v31  ;;  %v3002_v23 = vadd.f32 %v864_v44, %v863_v8  ;;  %v933_v46 = vadd.f32 %v932_v34, %v931_v9  ;;  %v1002_v47 = vadd.f32 %v1001_v16, %v999_v29 }
 0x14e   : > { %v666_v51 = vadd.f32 %v665_v6, %v630_v60  ;;  %v701_v28 = vsub.f32 %v2944_v35, %v700_v13  ;;  %vm3005_vm9 = vcmp.lt.f32.partialorder %v734_v56, 0.0004427343  ;;  %v3011_v52 = vmin.f32 %v758_v24, 0.0 }
 0x14f   : > { %v733_v27 = vmul.f32 %v2953_v10, %v732_v38  ;;  %v900_v11 = vrot.slane %v899_v53, 1  ;;  %v968_v22 = vrot.slane %v967_v62, 4  ;;  %v1003_v17 = vadd.f32 %v1002_v47, %v1000_v43 }
 0x150   : > { %v730_v12 = vmul.f32 0.6931472, %v2003_v49  ;;  %v764_v45 = vadd.f32 1.0, %v2995_v32  ;;  %vm1029_vm11 = vcmp.eq.s32.totalorder %v2482_v1, %v1944_v15  ;;  %vm1030_vm12 = vcmp.eq.s32.totalorder %v2491_v4, %v1944_v15 }
 0x151   : > { %2006 = vpow2.f32 %v834_v0  ;;  %v866_v35 = vsub.f32 0.0, %v3002_v23  ;;  %v934_v60 = vrot.slane %v933_v46, 2  ;;  %vm1031_vm14 = vcmp.eq.s32.totalorder %v2485_v2, %v1944_v15 }
 0x152   : > { %v3019_v48 = vpop.eup %2004  ;;  %v1004_v24 = vrot.slane %v1003_v17, 4  ;;  %vm1032_vm15 = vcmp.eq.s32.totalorder %v2488_v3, %v1944_v15  ;;  %v1033_v10 = vsel %vm1029_vm11, %v2536_v20, 0.0  ;;  %v1034_v58 = vsel %vm1030_vm12, %v2572_v26, 0.0 }
 0x153   : > { %v767_v30 = vmul.f32 -0.5, %v2995_v32  ;;  %v3025_v61 = vadd.f32 %v900_v11, %v899_v53  ;;  %v969_v5 = vadd.f32 %v968_v22, %v967_v62  ;;  %v1037_v41 = vadd.f32 %v1034_v58, %v1033_v10  ;;  %v1946_v22 = vld [vmem:[%s2468_s10 + $0x14] ss:$0 sm:$0xff] }
 0x154   : > { %v736_v8 = vsel %vm3005_vm9, %v733_v27, %v730_v12  ;;  %2008 = vlog2.f32 %v764_v45  ;;  %v770_v9 = vand.u32 2147483647, %v2995_v32  ;;  %v3032_v55 = vmin.f32 %v794_v39, 0.0 }
 0x155   : > { %v800_v7 = vadd.f32 1.0, %v3019_v48  ;;  %v935_v63 = vadd.f32 %v934_v60, %v933_v46  ;;  %v1035_v18 = vsel %vm1031_vm14, %v2570_v25, 0.0  ;;  %v1036_v31 = vsel %vm1032_vm15, %v2648_v50, 0.0 }
 0x156   : > { %v702_v44 = vadd.f32 %v701_v28, %v666_v51  ;;  %v868_v34 = vand.u32 2147483647, %v866_v35  ;;  %v1005_v42 = vadd.f32 %v1004_v24, %v1003_v17  ;;  %v1038_v19 = vadd.f32 %v1037_v41, %v1035_v18 }
 0x157   : > { %v3042_v36 = vpop.eup %2006  ;;  %v768_v21 = vadd.f32 1.0, %v767_v30  ;;  %v902_v39 = vsub.f32 0.0, %v3025_v61  ;;  %v970_v57 = vrot.slane %v969_v5, 2  ;;  %vm1066_vm0 = vcmp.eq.s32.totalorder %v2491_v4, %v1945_v54 }
 0x158   : > { %v737_v6 = vsub.f32 %v723_v40, %v736_v8  ;;  %vm3046_vm1 = vcmp.lt.f32.partialorder %v770_v9, 0.0004427343  ;;  %v803_v56 = vmul.f32 -0.5, %v3019_v48  ;;  %v1039_v37 = vadd.f32 %v1038_v19, %v1036_v31 }
 0x159   : > { %2010 = vlog2.f32 %v800_v7  ;;  %v806_v38 = vand.u32 2147483647, %v3019_v48  ;;  %v936_v53 = vrot.slane %v935_v63, 1  ;;  %vm1065_vm2 = vcmp.eq.s32.totalorder %v2482_v1, %v1945_v54 }
 0x15a   : > { %v2009_v62 = vpop.eup %2008  ;;  %v869_v16 = vsub.f32 0.0, %v868_v34  ;;  %v1006_v49 = vrot.slane %v1005_v42, 2  ;;  %v1040_v29 = vrot.slane %v1039_v37, 4  ;;  %v1070_v40 = vsel %vm1066_vm0, %v2572_v26, 0.0 }
 0x15b   : > { %v769_v43 = vmul.f32 %v2995_v32, %v768_v21  ;;  %v836_v15 = vadd.f32 1.0, %v3042_v36  ;;  %v904_v0 = vand.u32 2147483647, %v902_v39  ;;  %v971_v46 = vadd.f32 %v970_v57, %v969_v5 }
 0x15c   : > { %v1041_v47 = vadd.f32 %v1040_v29, %v1039_v37  ;;  %vm1067_vm3 = vcmp.eq.s32.totalorder %v2485_v2, %v1945_v54  ;;  %vm1068_vm6 = vcmp.eq.s32.totalorder %v2488_v3, %v1945_v54  ;;  %v1069_v51 = vsel %vm1065_vm2, %v2536_v20, 0.0 }
 0x15d   : > { %v738_v28 = vadd.f32 %v737_v6, %v702_v44  ;;  %v766_v59 = vmul.f32 0.6931472, %v2009_v62  ;;  %v3061_v27 = vadd.f32 %v936_v53, %v935_v63  ;;  %v1073_v11 = vadd.f32 %v1070_v40, %v1069_v51 }
 0x15e   : > { %v804_v32 = vadd.f32 1.0, %v803_v56  ;;  %vm3064_vm10 = vcmp.lt.f32.partialorder %v806_v38, 0.0004427343  ;;  %v870_v12 = vmul.f32 1.442695, %v869_v16  ;;  %v1007_v45 = vadd.f32 %v1006_v49, %v1005_v42 }
 0x15f   : > { %v2011_v60 = vpop.eup %2010  ;;  %2012 = vlog2.f32 %v836_v15  ;;  %v972_v24 = vrot.slane %v971_v46, 1  ;;  %v1071_v10 = vsel %vm1067_vm3, %v2570_v25, 0.0  ;;  %v1072_v58 = vsel %vm1068_vm6, %v2648_v50, 0.0 }
 0x160   : > { %v839_v30 = vmul.f32 -0.5, %v3042_v36  ;;  %v905_v5 = vsub.f32 0.0, %v904_v0  ;;  %v1042_v41 = vrot.slane %v1041_v47, 2  ;;  %v1074_v8 = vadd.f32 %v1073_v11, %v1071_v10 }
 0x161   : > { %v772_v9 = vsel %vm3046_vm1, %v769_v43, %v766_v59  ;;  %v938_v7 = vsub.f32 0.0, %v3061_v27  ;;  %vm1101_vm8 = vcmp.eq.s32.totalorder %v2482_v1, %v1946_v22  ;;  %vm1102_vm13 = vcmp.eq.s32.totalorder %v2491_v4, %v1946_v22  ;;  %v1947_v43 = vld [vmem:[%s2468_s10 + $0x15] ss:$0 sm:$0xff]  ;;  %v1950_v27 = vld [vmem:[%s2468_s10 + $0x18] ss:$0 sm:$0xff] }
 0x162   : > { %v802_v63 = vmul.f32 0.6931472, %v2011_v60  ;;  %2014 = vpow2.f32 %v870_v12  ;;  %v1008_v18 = vrot.slane %v1007_v45, 1  ;;  %v1075_v31 = vadd.f32 %v1074_v8, %v1072_v58 }
 0x163   : > { %v3076_v54 = vadd.f32 %v972_v24, %v971_v46  ;;  %vm1103_vm4 = vcmp.eq.s32.totalorder %v2485_v2, %v1946_v22  ;;  %vm1104_vm5 = vcmp.eq.s32.totalorder %v2488_v3, %v1946_v22  ;;  %v1106_v44 = vsel %vm1102_vm13, %v2572_v26, 0.0 }
 0x164   : > { %v906_v34 = vmul.f32 1.442695, %v905_v5  ;;  %v1043_v42 = vadd.f32 %v1042_v41, %v1041_v47  ;;  %v1076_v19 = vrot.slane %v1075_v31, 4  ;;  %v1105_v21 = vsel %vm1101_vm8, %v2536_v20, 0.0 }
 0x165   : > { %v2013_v57 = vpop.eup %2012  ;;  %v805_v6 = vmul.f32 %v3019_v48, %v804_v32  ;;  %v842_v13 = vand.u32 2147483647, %v3042_v36  ;;  %v940_v56 = vand.u32 2147483647, %v938_v7  ;;  %v1109_v37 = vadd.f32 %v1106_v44, %v1105_v21 }
 0x166   : > { %v840_v38 = vadd.f32 1.0, %v839_v30  ;;  %v3086_v53 = vadd.f32 %v1008_v18, %v1007_v45  ;;  %v1107_v62 = vsel %vm1103_vm4, %v2570_v25, 0.0  ;;  %v1108_v16 = vsel %vm1104_vm5, %v2648_v50, 0.0 }
 0x167   : > { %v773_v49 = vsub.f32 %v3011_v52, %v772_v9  ;;  %v808_v29 = vsel %vm3064_vm10, %v805_v6, %v802_v63  ;;  %v974_v48 = vsub.f32 0.0, %v3076_v54  ;;  %v1110_v40 = vadd.f32 %v1109_v37, %v1107_v62  ;;  %v1948_v9 = vld [vmem:[%s2468_s10 + $0x16] ss:$0 sm:$0xff] }
 0x168   : > { %v3095_v15 = vpop.eup %2014  ;;  %v838_v0 = vmul.f32 0.6931472, %v2013_v57  ;;  %2016 = vpow2.f32 %v906_v34  ;;  %v1044_v46 = vrot.slane %v1043_v42, 1  ;;  %v1077_v47 = vadd.f32 %v1076_v19, %v1075_v31 }
 0x169   : > { %v774_v51 = vadd.f32 %v773_v49, %v738_v28  ;;  %v941_v59 = vsub.f32 0.0, %v940_v56  ;;  %v1111_v11 = vadd.f32 %v1110_v40, %v1108_v16  ;;  %vm1138_vm7 = vcmp.eq.s32.totalorder %v2491_v4, %v1947_v43 }
 0x16a   : > { %v841_v52 = vmul.f32 %v3042_v36, %v840_v38  ;;  %vm3099_vm9 = vcmp.lt.f32.partialorder %v842_v13, 0.0004427343  ;;  %v1010_v32 = vsub.f32 0.0, %v3086_v53  ;;  %v809_v17 = vsub.f32 %v3032_v55, %v808_v29 }
 0x16b   : > { %v976_v12 = vand.u32 2147483647, %v974_v48  ;;  %v1112_v45 = vrot.slane %v1111_v11, 4  ;;  %vm1137_vm11 = vcmp.eq.s32.totalorder %v2482_v1, %v1947_v43  ;;  %v3110_v60 = vadd.f32 %v1044_v46, %v1043_v42  ;;  %v1949_v46 = vld [vmem:[%s2468_s10 + $0x17] ss:$0 sm:$0xff] }
 0x16c   : > { %v844_v28 = vsel %vm3099_vm9, %v841_v52, %v838_v0  ;;  %v1078_v36 = vrot.slane %v1077_v47, 2  ;;  %v1142_v24 = vsel %vm1138_vm7, %v2572_v26, 0.0  ;;  %v810_v10 = vadd.f32 %v809_v17, %v774_v51 }
 0x16d   : > { %v831_v58 = vmin.f32 %v830_v14, 0.0  ;;  %v872_v55 = vadd.f32 1.0, %v3095_v15  ;;  %v942_v30 = vmul.f32 1.442695, %v941_v59  ;;  %v1012_v41 = vand.u32 2147483647, %v1010_v32 }
 0x16e   : > { %v3116_v5 = vpop.eup %2016  ;;  %vm1139_vm12 = vcmp.eq.s32.totalorder %v2485_v2, %v1947_v43  ;;  %vm1140_vm14 = vcmp.eq.s32.totalorder %v2488_v3, %v1947_v43  ;;  %v1141_v8 = vsel %vm1137_vm11, %v2536_v20, 0.0  ;;  %v977_v18 = vsub.f32 0.0, %v976_v12 }
 0x16f   : > { %v845_v63 = vsub.f32 %v831_v58, %v844_v28  ;;  %v1113_v31 = vadd.f32 %v1112_v45, %v1111_v11  ;;  %v1145_v33 = vadd.f32 %v1142_v24, %v1141_v8  ;;  %v875_v14 = vmul.f32 -0.5, %v3095_v15 }
 0x170   : > { %v1046_v44 = vsub.f32 0.0, %v3110_v60  ;;  %v1079_v34 = vadd.f32 %v1078_v36, %v1077_v47  ;;  %vm1174_vm15 = vcmp.eq.s32.totalorder %v2491_v4, %v1948_v9  ;;  %v908_v42 = vadd.f32 1.0, %v3116_v5 }
 0x171   : > { %2018 = vpow2.f32 %v942_v30  ;;  %v1143_v19 = vsel %vm1139_vm12, %v2570_v25, 0.0  ;;  %v1144_v21 = vsel %vm1140_vm14, %v2648_v50, 0.0  ;;  %v1013_v57 = vsub.f32 0.0, %v1012_v41 }
 0x172   : > { %2020 = vlog2.f32 %v872_v55  ;;  %v1146_v6 = vadd.f32 %v1145_v33, %v1143_v19  ;;  %vm1173_vm0 = vcmp.eq.s32.totalorder %v2482_v1, %v1948_v9  ;;  %v878_v13 = vand.u32 2147483647, %v3095_v15 }
 0x173   : > { %v978_v56 = vmul.f32 1.442695, %v977_v18  ;;  %v1114_v37 = vrot.slane %v1113_v31, 2  ;;  %v1178_v38 = vsel %vm1174_vm15, %v2572_v26, 0.0  ;;  %v876_v62 = vadd.f32 1.0, %v875_v14 }
 0x174   : > { %v1048_v16 = vand.u32 2147483647, %v1046_v44  ;;  %v1080_v49 = vrot.slane %v1079_v34, 1  ;;  %v1147_v29 = vadd.f32 %v1146_v6, %v1144_v21  ;;  %v3135_v40 = vadd.f32 %v845_v63, %v810_v10 }
 0x175   : > { %v867_v43 = vmin.f32 %v866_v35, 0.0  ;;  %2022 = vlog2.f32 %v908_v42  ;;  %v1177_v0 = vsel %vm1173_vm0, %v2536_v20, 0.0  ;;  %v1014_v47 = vmul.f32 1.442695, %v1013_v57 }
 0x176   : > { %vm1175_vm1 = vcmp.eq.s32.totalorder %v2485_v2, %v1948_v9  ;;  %vm1176_vm2 = vcmp.eq.s32.totalorder %v2488_v3, %v1948_v9  ;;  %v1181_v51 = vadd.f32 %v1178_v38, %v1177_v0  ;;  %vm3145_vm3 = vcmp.lt.f32.partialorder %v878_v13, 0.0004427343 }
 0x177   : > { %v3143_v59 = vpop.eup %2018  ;;  %2024 = vpow2.f32 %v978_v56  ;;  %v1115_v52 = vadd.f32 %v1114_v37, %v1113_v31  ;;  %v1148_v23 = vrot.slane %v1147_v29, 4  ;;  %v877_v22 = vmul.f32 %v3095_v15, %v876_v62 }
 0x178   : > { %v2021_v35 = vpop.eup %2020  ;;  %v911_v17 = vmul.f32 -0.5, %v3116_v5  ;;  %v1049_v12 = vsub.f32 0.0, %v1048_v16  ;;  %v3151_v45 = vadd.f32 %v1080_v49, %v1079_v34  ;;  %v1179_v36 = vsel %vm1175_vm1, %v2570_v25, 0.0 }
 0x179   : > { %v1149_v28 = vadd.f32 %v1148_v23, %v1147_v29  ;;  %v1180_v24 = vsel %vm1176_vm2, %v2648_v50, 0.0  ;;  %vm1209_vm6 = vcmp.eq.s32.totalorder %v2482_v1, %v1949_v46  ;;  %v944_v10 = vadd.f32 1.0, %v3143_v59 }
 0x17a   : > { %2026 = vpow2.f32 %v1014_v47  ;;  %v1182_v58 = vadd.f32 %v1181_v51, %v1179_v36  ;;  %vm1210_vm10 = vcmp.eq.s32.totalorder %v2491_v4, %v1949_v46  ;;  %v874_v15 = vmul.f32 0.6931472, %v2021_v35 }
 0x17b   : > { %v2023_v55 = vpop.eup %2022  ;;  %v1116_v30 = vrot.slane %v1115_v52, 1  ;;  %vm1211_vm8 = vcmp.eq.s32.totalorder %v2485_v2, %v1949_v46  ;;  %vm1212_vm13 = vcmp.eq.s32.totalorder %v2488_v3, %v1949_v46  ;;  %v1150_v41 = vrot.slane %v1149_v28, 2 }
 0x17c   : > { %v1183_v8 = vadd.f32 %v1182_v58, %v1180_v24  ;;  %v1213_v9 = vsel %vm1209_vm6, %v2536_v20, 0.0  ;;  %v1214_v63 = vsel %vm1210_vm10, %v2572_v26, 0.0  ;;  %v914_v31 = vand.u32 2147483647, %v3116_v5 }
 0x17d   : > { %v3162_v18 = vpop.eup %2024  ;;  %v1050_v33 = vmul.f32 1.442695, %v1049_v12  ;;  %v1082_v14 = vsub.f32 0.0, %v3151_v45  ;;  %v1217_v34 = vadd.f32 %v1214_v63, %v1213_v9  ;;  %2028 = vlog2.f32 %v944_v10 }
 0x17e   : > { %v1184_v42 = vrot.slane %v1183_v8, 4  ;;  %v1215_v19 = vsel %vm1211_vm8, %v2570_v25, 0.0  ;;  %v1216_v21 = vsel %vm1212_vm13, %v2648_v50, 0.0  ;;  %v880_v57 = vsel %vm3145_vm3, %v877_v22, %v874_v15 }
 0x17f   : > { %v912_v6 = vadd.f32 1.0, %v911_v17  ;;  %v3170_v13 = vadd.f32 %v1116_v30, %v1115_v52  ;;  %v1218_v56 = vadd.f32 %v1217_v34, %v1215_v19  ;;  %v910_v38 = vmul.f32 0.6931472, %v2023_v55 }
 0x180   : > { %v3172_v37 = vpop.eup %2026  ;;  %v947_v62 = vmul.f32 -0.5, %v3143_v59  ;;  %v980_v16 = vadd.f32 1.0, %v3162_v18  ;;  %v1151_v49 = vadd.f32 %v1150_v41, %v1149_v28  ;;  %2030 = vpow2.f32 %v1050_v33 }
 0x181   : > { %v1084_v29 = vand.u32 2147483647, %v1082_v14  ;;  %v1185_v0 = vadd.f32 %v1184_v42, %v1183_v8  ;;  %v1219_v46 = vadd.f32 %v1218_v56, %v1216_v21  ;;  %v881_v47 = vsub.f32 %v867_v43, %v880_v57 }
 0x182   : > { %v903_v51 = vmin.f32 %v902_v39, 0.0  ;;  %v939_v11 = vmin.f32 %v938_v7, 0.0  ;;  %v950_v52 = vand.u32 2147483647, %v3143_v59  ;;  %v913_v23 = vmul.f32 %v3116_v5, %v912_v6 }
 0x183   : > { %vm3184_vm4 = vcmp.lt.f32.partialorder %v914_v31, 0.0004427343  ;;  %v1016_v22 = vadd.f32 1.0, %v3172_v37  ;;  %v1118_v17 = vsub.f32 0.0, %v3170_v13  ;;  %v2029_v12 = vpop.eup %2028  ;;  %v882_v43 = vadd.f32 %v881_v47, %v3135_v40  ;;  %v1951_v47 = vld [vmem:[%s2468_s10 + $0x19] ss:$0 sm:$0xff] }
 0x184   : > { %v948_v61 = vadd.f32 1.0, %v947_v62  ;;  %2032 = vlog2.f32 %v980_v16  ;;  %v1152_v39 = vrot.slane %v1151_v49, 1  ;;  %v916_v7 = vsel %vm3184_vm4, %v913_v23, %v910_v38 }
 0x185   : > { %v1085_v28 = vsub.f32 0.0, %v1084_v29  ;;  %v1186_v5 = vrot.slane %v1185_v0, 2  ;;  %v1220_v36 = vrot.slane %v1219_v46, 4  ;;  %vm3194_vm5 = vcmp.lt.f32.partialorder %v950_v52, 0.0004427343 }
 0x186   : > { %v975_v10 = vmin.f32 %v974_v48, 0.0  ;;  %v983_v58 = vmul.f32 -0.5, %v3162_v18  ;;  %vm1246_vm7 = vcmp.eq.s32.totalorder %v2491_v4, %v1950_v27  ;;  %v3202_v40 = vpop.eup %2030  ;;  %v946_v55 = vmul.f32 0.6931472, %v2029_v12 }
 0x187   : > { %v3206_v15 = vmin.f32 %v1010_v32, 0.0  ;;  %2034 = vlog2.f32 %v1016_v22  ;;  %v1120_v30 = vand.u32 2147483647, %v1118_v17  ;;  %v917_v41 = vsub.f32 %v903_v51, %v916_v7 }
 0x188   : > { %v949_v8 = vmul.f32 %v3143_v59, %v948_v61  ;;  %v3211_v54 = vadd.f32 %v1152_v39, %v1151_v49  ;;  %vm1245_vm9 = vcmp.eq.s32.totalorder %v2482_v1, %v1950_v27  ;;  %v1086_v48 = vmul.f32 1.442695, %v1085_v28 }
 0x189   : > { %v1187_v9 = vadd.f32 %v1186_v5, %v1185_v0  ;;  %v1221_v63 = vadd.f32 %v1220_v36, %v1219_v46  ;;  %v1250_v31 = vsel %vm1246_vm7, %v2572_v26, 0.0  ;;  %v918_v53 = vadd.f32 %v917_v41, %v882_v43 }
 0x18a   : > { %v2033_v33 = vpop.eup %2032  ;;  %v984_v32 = vadd.f32 1.0, %v983_v58  ;;  %v1019_v34 = vmul.f32 -0.5, %v3172_v37  ;;  %v1052_v42 = vadd.f32 1.0, %v3202_v40  ;;  %v952_v19 = vsel %vm3194_vm5, %v949_v8, %v946_v55 }
 0x18b   : > { %v986_v59 = vand.u32 2147483647, %v3162_v18  ;;  %v1121_v21 = vsub.f32 0.0, %v1120_v30  ;;  %v1249_v57 = vsel %vm1245_vm9, %v2536_v20, 0.0  ;;  %v1154_v6 = vsub.f32 0.0, %v3211_v54 }
 0x18c   : > { %vm1247_vm11 = vcmp.eq.s32.totalorder %v2485_v2, %v1950_v27  ;;  %vm1248_vm12 = vcmp.eq.s32.totalorder %v2488_v3, %v1950_v27  ;;  %v1253_v56 = vadd.f32 %v1250_v31, %v1249_v57  ;;  %v982_v62 = vmul.f32 0.6931472, %v2033_v33 }
 0x18d   : > { %v2035_v38 = vpop.eup %2034  ;;  %2036 = vpow2.f32 %v1086_v48  ;;  %v1188_v16 = vrot.slane %v1187_v9, 1  ;;  %v1222_v49 = vrot.slane %v1221_v63, 2  ;;  %v953_v29 = vsub.f32 %v939_v11, %v952_v19  ;;  %v1952_v19 = vld [vmem:[%s2468_s10 + $0x1a] ss:$0 sm:$0xff] }
 0x18e   : > { %v985_v0 = vmul.f32 %v3162_v18, %v984_v32  ;;  %v1020_v46 = vadd.f32 1.0, %v1019_v34  ;;  %2038 = vlog2.f32 %v1052_v42  ;;  %v1022_v51 = vand.u32 2147483647, %v3172_v37 }
 0x18f   : > { %v1122_v52 = vmul.f32 1.442695, %v1121_v21  ;;  %v1251_v23 = vsel %vm1247_vm11, %v2570_v25, 0.0  ;;  %v1252_v35 = vsel %vm1248_vm12, %v2648_v50, 0.0  ;;  %vm3229_vm14 = vcmp.lt.f32.partialorder %v986_v59, 0.0004427343 }
 0x190   : > { %v1018_v12 = vmul.f32 0.6931472, %v2035_v38  ;;  %v1156_v11 = vand.u32 2147483647, %v1154_v6  ;;  %v1254_v43 = vadd.f32 %v1253_v56, %v1251_v23  ;;  %v954_v18 = vadd.f32 %v953_v29, %v918_v53 }
 0x191   : > { %v988_v61 = vsel %vm3229_vm14, %v985_v0, %v982_v62  ;;  %v3237_v39 = vadd.f32 %v1188_v16, %v1187_v9  ;;  %v1223_v27 = vadd.f32 %v1222_v49, %v1221_v63  ;;  %v1021_v7 = vmul.f32 %v3172_v37, %v1020_v46 }
 0x192   : > { %v1055_v28 = vmul.f32 -0.5, %v3202_v40  ;;  %v1255_v5 = vadd.f32 %v1254_v43, %v1252_v35  ;;  %vm1282_vm15 = vcmp.eq.s32.totalorder %v2491_v4, %v1951_v47  ;;  %vm3242_vm0 = vcmp.lt.f32.partialorder %v1022_v51, 0.0004427343 }
 0x193   : > { %v2037_v36 = vpop.eup %2036  ;;  %v1047_v58 = vmin.f32 %v1046_v44, 0.0  ;;  %v3250_v55 = vmin.f32 %v1082_v14, 0.0  ;;  %2040 = vpow2.f32 %v1122_v52  ;;  %v989_v37 = vsub.f32 %v975_v10, %v988_v61 }
 0x194   : > { %v2039_v30 = vpop.eup %2038  ;;  %v1024_v41 = vsel %vm3242_vm0, %v1021_v7, %v1018_v12  ;;  %v1157_v8 = vsub.f32 0.0, %v1156_v11  ;;  %vm1281_vm1 = vcmp.eq.s32.totalorder %v2482_v1, %v1951_v47  ;;  %v1058_v48 = vand.u32 2147483647, %v3202_v40 }
 0x195   : > { %v1190_v9 = vsub.f32 0.0, %v3237_v39  ;;  %v1224_v60 = vrot.slane %v1223_v27, 1  ;;  %v1286_v44 = vsel %vm1282_vm15, %v2572_v26, 0.0  ;;  %v990_v45 = vadd.f32 %v989_v37, %v954_v18 }
 0x196   : > { %v1056_v14 = vadd.f32 1.0, %v1055_v28  ;;  %v1088_v63 = vadd.f32 1.0, %v2037_v36  ;;  %v1256_v31 = vrot.slane %v1255_v5, 4  ;;  %v1025_v10 = vsub.f32 %v3206_v15, %v1024_v41  ;;  %v1954_v28 = vld [vmem:[%s2468_s10 + $0x1c] ss:$0 sm:$0xff] }
 0x197   : > { %v1054_v33 = vmul.f32 0.6931472, %v2039_v30  ;;  %v1091_v53 = vmul.f32 -0.5, %v2037_v36  ;;  %v1285_v32 = vsel %vm1281_vm1, %v2536_v20, 0.0  ;;  %v1158_v34 = vmul.f32 1.442695, %v1157_v8 }
 0x198   : > { %vm1283_vm2 = vcmp.eq.s32.totalorder %v2485_v2, %v1951_v47  ;;  %vm1284_vm3 = vcmp.eq.s32.totalorder %v2488_v3, %v1951_v47  ;;  %v1289_v42 = vadd.f32 %v1286_v44, %v1285_v32  ;;  %vm3265_vm6 = vcmp.lt.f32.partialorder %v1058_v48, 0.0004427343  ;;  %v1953_v47 = vld [vmem:[%s2468_s10 + $0x1b] ss:$0 sm:$0xff] }
 0x199   : > { %v3263_v59 = vpop.eup %2040  ;;  %v3271_v15 = vmin.f32 %v1118_v17, 0.0  ;;  %v1192_v57 = vand.u32 2147483647, %v1190_v9  ;;  %v3275_v56 = vadd.f32 %v1224_v60, %v1223_v27  ;;  %v1057_v38 = vmul.f32 %v3202_v40, %v1056_v14 }
 0x19a   : > { %2042 = vlog2.f32 %v1088_v63  ;;  %v1094_v62 = vand.u32 2147483647, %v2037_v36  ;;  %v1257_v16 = vadd.f32 %v1256_v31, %v1255_v5  ;;  %v1092_v49 = vadd.f32 1.0, %v1091_v53 }
 0x19b   : > { %v1287_v29 = vsel %vm1283_vm2, %v2570_v25, 0.0  ;;  %v1288_v0 = vsel %vm1284_vm3, %v2648_v50, 0.0  ;;  %vm1318_vm10 = vcmp.eq.s32.totalorder %v2491_v4, %v1952_v19  ;;  %v1060_v13 = vsel %vm3265_vm6, %v1057_v38, %v1054_v33 }
 0x19c   : > { %v1124_v17 = vadd.f32 1.0, %v3263_v59  ;;  %2044 = vpow2.f32 %v1158_v34  ;;  %v1290_v46 = vadd.f32 %v1289_v42, %v1287_v29  ;;  %v1127_v40 = vmul.f32 -0.5, %v3263_v59 }
 0x19d   : > { %v1193_v51 = vsub.f32 0.0, %v1192_v57  ;;  %v1226_v52 = vsub.f32 0.0, %v3275_v56  ;;  %vm1317_vm8 = vcmp.eq.s32.totalorder %v2482_v1, %v1952_v19  ;;  %v1258_v23 = vrot.slane %v1257_v16, 2 }
 0x19e   : > { %v1291_v35 = vadd.f32 %v1290_v46, %v1288_v0  ;;  %v1322_v22 = vsel %vm1318_vm10, %v2572_v26, 0.0  ;;  %vm1354_vm13 = vcmp.eq.s32.totalorder %v2491_v4, %v1953_v47  ;;  %v1026_v12 = vadd.f32 %v1025_v10, %v990_v45 }
 0x19f   : > { %v1061_v11 = vsub.f32 %v1047_v58, %v1060_v13  ;;  %v1093_v43 = vmul.f32 %v2037_v36, %v1092_v49  ;;  %v1130_v18 = vand.u32 2147483647, %v3263_v59  ;;  %vm3291_vm4 = vcmp.lt.f32.partialorder %v1094_v62, 0.0004427343  ;;  %v1955_v13 = vld [vmem:[%s2468_s10 + $0x1d] ss:$0 sm:$0xff] }
 0x1a0   : > { %v2043_v61 = vpop.eup %2042  ;;  %vm1319_vm5 = vcmp.eq.s32.totalorder %v2485_v2, %v1952_v19  ;;  %vm1320_vm7 = vcmp.eq.s32.totalorder %v2488_v3, %v1952_v19  ;;  %v1321_v7 = vsel %vm1317_vm8, %v2536_v20, 0.0  ;;  %vm1353_vm9 = vcmp.eq.s32.totalorder %v2482_v1, %v1953_v47 }
 0x1a1   : > { %2046 = vlog2.f32 %v1124_v17  ;;  %v1228_v5 = vand.u32 2147483647, %v1226_v52  ;;  %v1325_v36 = vadd.f32 %v1322_v22, %v1321_v7  ;;  %v1358_v24 = vsel %vm1354_vm13, %v2572_v26, 0.0 }
 0x1a2   : > { %v3303_v58 = vpop.eup %2044  ;;  %v1128_v30 = vadd.f32 1.0, %v1127_v40  ;;  %v1194_v37 = vmul.f32 1.442695, %v1193_v51  ;;  %v1259_v41 = vadd.f32 %v1258_v23, %v1257_v16  ;;  %v1292_v8 = vrot.slane %v1291_v35, 4 }
 0x1a3   : > { %v1323_v48 = vsel %vm1319_vm5, %v2570_v25, 0.0  ;;  %v1324_v60 = vsel %vm1320_vm7, %v2648_v50, 0.0  ;;  %vm1355_vm11 = vcmp.eq.s32.totalorder %v2485_v2, %v1953_v47  ;;  %v1357_v44 = vsel %vm1353_vm9, %v2536_v20, 0.0 }
 0x1a4   : > { %vm1356_vm12 = vcmp.eq.s32.totalorder %v2488_v3, %v1953_v47  ;;  %v1361_v45 = vadd.f32 %v1358_v24, %v1357_v44  ;;  %vm1389_vm14 = vcmp.eq.s32.totalorder %v2482_v1, %v1954_v28  ;;  %vm1390_vm15 = vcmp.eq.s32.totalorder %v2491_v4, %v1954_v28 }
 0x1a5   : > { %v1090_v14 = vmul.f32 0.6931472, %v2043_v61  ;;  %v1160_v63 = vadd.f32 1.0, %v3303_v58  ;;  %v1229_v31 = vsub.f32 0.0, %v1228_v5  ;;  %v1326_v10 = vadd.f32 %v1325_v36, %v1323_v48 }
 0x1a6   : > { %2048 = vpow2.f32 %v1194_v37  ;;  %v1260_v33 = vrot.slane %v1259_v41, 1  ;;  %v1293_v53 = vadd.f32 %v1292_v8, %v1291_v35  ;;  %v1394_v32 = vsel %vm1390_vm15, %v2572_v26, 0.0 }
 0x1a7   : > { %v2047_v34 = vpop.eup %2046  ;;  %v1327_v42 = vadd.f32 %v1326_v10, %v1324_v60  ;;  %v1359_v19 = vsel %vm1355_vm11, %v2570_v25, 0.0  ;;  %v1360_v21 = vsel %vm1356_vm12, %v2648_v50, 0.0  ;;  %v1393_v57 = vsel %vm1389_vm14, %v2536_v20, 0.0 }
 0x1a8   : > { %v1362_v38 = vadd.f32 %v1361_v45, %v1359_v19  ;;  %vm1391_vm0 = vcmp.eq.s32.totalorder %v2485_v2, %v1954_v28  ;;  %vm1392_vm1 = vcmp.eq.s32.totalorder %v2488_v3, %v1954_v28  ;;  %v1397_v62 = vadd.f32 %v1394_v32, %v1393_v57 }
 0x1a9   : > { %v1062_v16 = vadd.f32 %v1061_v11, %v1026_v12  ;;  %v1096_v49 = vsel %vm3291_vm4, %v1093_v43, %v1090_v14  ;;  %v3325_v29 = vmin.f32 %v1154_v6, 0.0  ;;  %v1230_v0 = vmul.f32 1.442695, %v1229_v31 }
 0x1aa   : > { %v1126_v17 = vmul.f32 0.6931472, %v2047_v34  ;;  %v1163_v46 = vmul.f32 -0.5, %v3303_v58  ;;  %v3329_v47 = vadd.f32 %v1260_v33, %v1259_v41  ;;  %v1363_v40 = vadd.f32 %v1362_v38, %v1360_v21  ;;  %v1956_v41 = vld [vmem:[%s2468_s10 + $0x1e] ss:$0 sm:$0xff] }
 0x1ab   : > { %v1294_v51 = vrot.slane %v1293_v53, 2  ;;  %v1328_v23 = vrot.slane %v1327_v42, 4  ;;  %v1395_v35 = vsel %vm1391_vm0, %v2570_v25, 0.0  ;;  %v1396_v22 = vsel %vm1392_vm1, %v2648_v50, 0.0 }
 0x1ac   : > { %v3333_v12 = vpop.eup %2048  ;;  %v1129_v54 = vmul.f32 %v3263_v59, %v1128_v30  ;;  %vm3336_vm2 = vcmp.lt.f32.partialorder %v1130_v18, 0.0004427343  ;;  %2050 = vlog2.f32 %v1160_v63  ;;  %v1398_v11 = vadd.f32 %v1397_v62, %v1395_v35 }
 0x1ad   : > { %v1097_v43 = vsub.f32 %v3250_v55, %v1096_v49  ;;  %v3343_v61 = vmin.f32 %v1190_v9, 0.0  ;;  %2052 = vpow2.f32 %v1230_v0  ;;  %vm1425_vm3 = vcmp.eq.s32.totalorder %v2482_v1, %v1955_v13 }
 0x1ae   : > { %v1262_v27 = vsub.f32 0.0, %v3329_v47  ;;  %v1364_v7 = vrot.slane %v1363_v40, 4  ;;  %v1399_v59 = vadd.f32 %v1398_v11, %v1396_v22  ;;  %vm1426_vm6 = vcmp.eq.s32.totalorder %v2491_v4, %v1955_v13 }
 0x1af   : > { %v1132_v18 = vsel %vm3336_vm2, %v1129_v54, %v1126_v17  ;;  %v1164_v28 = vadd.f32 1.0, %v1163_v46  ;;  %v1295_v5 = vadd.f32 %v1294_v51, %v1293_v53  ;;  %v1329_v55 = vadd.f32 %v1328_v23, %v1327_v42 }
 0x1b0   : > { %vm1427_vm10 = vcmp.eq.s32.totalorder %v2485_v2, %v1955_v13  ;;  %vm1428_vm8 = vcmp.eq.s32.totalorder %v2488_v3, %v1955_v13  ;;  %v1429_v39 = vsel %vm1425_vm3, %v2536_v20, 0.0  ;;  %v1430_v9 = vsel %vm1426_vm6, %v2572_v26, 0.0 }
 0x1b1   : > { %v1098_v36 = vadd.f32 %v1097_v43, %v1062_v16  ;;  %v1196_v24 = vadd.f32 1.0, %v3333_v12  ;;  %v3357_v30 = vmin.f32 %v1226_v52, 0.0  ;;  %v1433_v37 = vadd.f32 %v1430_v9, %v1429_v39  ;;  %v1957_v43 = vld [vmem:[%s2468_s10 + $0x1f] ss:$0 sm:$0xff] }
 0x1b2   : > { %v2051_v8 = vpop.eup %2050  ;;  %v1133_v48 = vsub.f32 %v3271_v15, %v1132_v18  ;;  %v1264_v60 = vand.u32 2147483647, %v1262_v27  ;;  %v1365_v44 = vadd.f32 %v1364_v7, %v1363_v40  ;;  %v1400_v45 = vrot.slane %v1399_v59, 4 }
 0x1b3   : > { %v3363_v14 = vpop.eup %2052  ;;  %v1296_v63 = vrot.slane %v1295_v5, 1  ;;  %v1330_v31 = vrot.slane %v1329_v55, 2  ;;  %v1431_v56 = vsel %vm1427_vm10, %v2570_v25, 0.0  ;;  %v1432_v52 = vsel %vm1428_vm8, %v2648_v50, 0.0 }
 0x1b4   : > { %v1165_v10 = vmul.f32 %v3303_v58, %v1164_v28  ;;  %v1166_v15 = vand.u32 2147483647, %v3303_v58  ;;  %v1199_v33 = vmul.f32 -0.5, %v3333_v12  ;;  %v1434_v53 = vadd.f32 %v1433_v37, %v1431_v56 }
 0x1b5   : > { %v1162_v32 = vmul.f32 0.6931472, %v2051_v8  ;;  %2054 = vlog2.f32 %v1196_v24  ;;  %vm1461_vm13 = vcmp.eq.s32.totalorder %v2482_v1, %v1956_v41  ;;  %vm1462_vm4 = vcmp.eq.s32.totalorder %v2491_v4, %v1956_v41 }
 0x1b6   : > { %v1232_v34 = vadd.f32 1.0, %v3363_v14  ;;  %v1366_v42 = vrot.slane %v1365_v44, 2  ;;  %v1401_v19 = vadd.f32 %v1400_v45, %v1399_v59  ;;  %v1435_v21 = vadd.f32 %v1434_v53, %v1432_v52 }
 0x1b7   : > { %v1265_v57 = vsub.f32 0.0, %v1264_v60  ;;  %v3377_v38 = vadd.f32 %v1296_v63, %v1295_v5  ;;  %v1331_v62 = vadd.f32 %v1330_v31, %v1329_v55  ;;  %vm1463_vm5 = vcmp.eq.s32.totalorder %v2485_v2, %v1956_v41 }
 0x1b8   : > { %v1436_v58 = vrot.slane %v1435_v21, 4  ;;  %vm1464_vm7 = vcmp.eq.s32.totalorder %v2488_v3, %v1956_v41  ;;  %v1465_v16 = vsel %vm1461_vm13, %v2536_v20, 0.0  ;;  %v1466_v49 = vsel %vm1462_vm4, %v2572_v26, 0.0 }
 0x1b9   : > { %vm3383_vm9 = vcmp.lt.f32.partialorder %v1166_v15, 0.0004427343  ;;  %v1200_v13 = vadd.f32 1.0, %v1199_v33  ;;  %v1202_v17 = vand.u32 2147483647, %v3333_v12  ;;  %v1469_v46 = vadd.f32 %v1466_v49, %v1465_v16 }
 0x1ba   : > { %v1134_v40 = vadd.f32 %v1133_v48, %v1098_v36  ;;  %v1168_v51 = vsel %vm3383_vm9, %v1165_v10, %v1162_v32  ;;  %v1367_v23 = vadd.f32 %v1366_v42, %v1365_v44  ;;  %v1402_v35 = vrot.slane %v1401_v19, 2 }
 0x1bb   : > { %v2055_v22 = vpop.eup %2054  ;;  %2056 = vlog2.f32 %v1232_v34  ;;  %v1437_v54 = vadd.f32 %v1436_v58, %v1435_v21  ;;  %v1467_v6 = vsel %vm1463_vm5, %v2570_v25, 0.0  ;;  %v1468_v11 = vsel %vm1464_vm7, %v2648_v50, 0.0 }
 0x1bc   : > { %v1266_v7 = vmul.f32 1.442695, %v1265_v57  ;;  %v1298_v59 = vsub.f32 0.0, %v3377_v38  ;;  %v1332_v18 = vrot.slane %v1331_v62, 1  ;;  %v1470_v28 = vadd.f32 %v1469_v46, %v1467_v6  ;;  %v1958_v57 = vld [vmem:[%s2468_s10 + $0x20] ss:$0 sm:$0xff] }
 0x1bd   : > { %v1169_v5 = vsub.f32 %v3325_v29, %v1168_v51  ;;  %v1201_v55 = vmul.f32 %v3333_v12, %v1200_v13  ;;  %vm3398_vm11 = vcmp.lt.f32.partialorder %v1202_v17, 0.0004427343  ;;  %v1235_v9 = vmul.f32 -0.5, %v3363_v14 }
 0x1be   : > { %v1238_v36 = vand.u32 2147483647, %v3363_v14  ;;  %v1368_v24 = vrot.slane %v1367_v23, 1  ;;  %v1403_v37 = vadd.f32 %v1402_v35, %v1401_v19  ;;  %v1471_v41 = vadd.f32 %v1470_v28, %v1468_v11 }
 0x1bf   : > { %v1198_v8 = vmul.f32 0.6931472, %v2055_v22  ;;  %v1438_v48 = vrot.slane %v1437_v54, 2  ;;  %vm1497_vm12 = vcmp.eq.s32.totalorder %v2482_v1, %v1957_v43  ;;  %vm1498_vm14 = vcmp.eq.s32.totalorder %v2491_v4, %v1957_v43 }
 0x1c0   : > { %2058 = vpow2.f32 %v1266_v7  ;;  %v1300_v29 = vand.u32 2147483647, %v1298_v59  ;;  %v3408_v12 = vadd.f32 %v1332_v18, %v1331_v62  ;;  %v1472_v60 = vrot.slane %v1471_v41, 4 }
 0x1c1   : > { %v2057_v44 = vpop.eup %2056  ;;  %vm1499_vm15 = vcmp.eq.s32.totalorder %v2485_v2, %v1957_v43  ;;  %vm1500_vm0 = vcmp.eq.s32.totalorder %v2488_v3, %v1957_v43  ;;  %v1501_v45 = vsel %vm1497_vm12, %v2536_v20, 0.0  ;;  %v1502_v63 = vsel %vm1498_vm14, %v2572_v26, 0.0 }
 0x1c2   : > { %v3414_v31 = vadd.f32 %v1368_v24, %v1367_v23  ;;  %v1404_v56 = vrot.slane %v1403_v37, 1  ;;  %v1473_v52 = vadd.f32 %v1472_v60, %v1471_v41  ;;  %v1505_v10 = vadd.f32 %v1502_v63, %v1501_v45 }
 0x1c3   : > { %v1170_v15 = vadd.f32 %v1169_v5, %v1134_v40  ;;  %v1204_v33 = vsel %vm3398_vm11, %v1201_v55, %v1198_v8  ;;  %v1236_v53 = vadd.f32 1.0, %v1235_v9  ;;  %v1439_v32 = vadd.f32 %v1438_v48, %v1437_v54  ;;  %v1959_v9 = vld [vmem:[%s2468_s10 + $0x21] ss:$0 sm:$0xff] }
 0x1c4   : > { %v1301_v34 = vsub.f32 0.0, %v1300_v29  ;;  %v1334_v42 = vsub.f32 0.0, %v3408_v12  ;;  %v1503_v19 = vsel %vm1499_vm15, %v2570_v25, 0.0  ;;  %v1504_v21 = vsel %vm1500_vm0, %v2648_v50, 0.0 }
 0x1c5   : > { %v1234_v62 = vmul.f32 0.6931472, %v2057_v44  ;;  %vm3422_vm1 = vcmp.lt.f32.partialorder %v1238_v36, 0.0004427343  ;;  %v1474_v16 = vrot.slane %v1473_v52, 2  ;;  %v1506_v49 = vadd.f32 %v1505_v10, %v1503_v19 }
 0x1c6   : > { %v3426_v0 = vpop.eup %2058  ;;  %v1205_v13 = vsub.f32 %v3343_v61, %v1204_v33  ;;  %v1370_v17 = vsub.f32 0.0, %v3414_v31  ;;  %v3430_v46 = vadd.f32 %v1404_v56, %v1403_v37  ;;  %vm1534_vm2 = vcmp.eq.s32.totalorder %v2491_v4, %v1958_v57 }
 0x1c7   : > { %v1237_v40 = vmul.f32 %v3363_v14, %v1236_v53  ;;  %v1440_v51 = vrot.slane %v1439_v32, 1  ;;  %v1475_v23 = vadd.f32 %v1474_v16, %v1473_v52  ;;  %v1507_v35 = vadd.f32 %v1506_v49, %v1504_v21 }
 0x1c8   : > { %v3434_v22 = vadd.f32 %v1205_v13, %v1170_v15  ;;  %v1302_v54 = vmul.f32 1.442695, %v1301_v34  ;;  %v1336_v6 = vand.u32 2147483647, %v1334_v42  ;;  %vm1533_vm3 = vcmp.eq.s32.totalorder %v2482_v1, %v1958_v57 }
 0x1c9   : > { %v1240_v61 = vsel %vm3422_vm1, %v1237_v40, %v1234_v62  ;;  %v1268_v11 = vadd.f32 1.0, %v3426_v0  ;;  %v1508_v43 = vrot.slane %v1507_v35, 4  ;;  %v1538_v14 = vsel %vm1534_vm2, %v2572_v26, 0.0 }
 0x1ca   : > { %v1372_v7 = vand.u32 2147483647, %v1370_v17  ;;  %v1406_v18 = vsub.f32 0.0, %v3430_v46  ;;  %vm1535_vm6 = vcmp.eq.s32.totalorder %v2485_v2, %v1958_v57  ;;  %vm1536_vm10 = vcmp.eq.s32.totalorder %v2488_v3, %v1958_v57 }
 0x1cb   : > { %v3448_v28 = vadd.f32 %v1440_v51, %v1439_v32  ;;  %v1476_v5 = vrot.slane %v1475_v23, 1  ;;  %v1509_v55 = vadd.f32 %v1508_v43, %v1507_v35  ;;  %v1537_v39 = vsel %vm1533_vm3, %v2536_v20, 0.0 }
 0x1cc   : > { %v1271_v36 = vmul.f32 -0.5, %v3426_v0  ;;  %2060 = vpow2.f32 %v1302_v54  ;;  %v1337_v24 = vsub.f32 0.0, %v1336_v6  ;;  %v1541_v37 = vadd.f32 %v1538_v14, %v1537_v39  ;;  %v1960_v54 = vld [vmem:[%s2468_s10 + $0x22] ss:$0 sm:$0xff] }
 0x1cd   : > { %2062 = vlog2.f32 %v1268_v11  ;;  %v1510_v41 = vrot.slane %v1509_v55, 2  ;;  %v1539_v8 = vsel %vm1535_vm6, %v2570_v25, 0.0  ;;  %v1540_v48 = vsel %vm1536_vm10, %v2648_v50, 0.0 }
 0x1ce   : > { %v1373_v29 = vsub.f32 0.0, %v1372_v7  ;;  %v1408_v60 = vand.u32 2147483647, %v1406_v18  ;;  %v1542_v44 = vadd.f32 %v1541_v37, %v1539_v8  ;;  %vm1570_vm8 = vcmp.eq.s32.totalorder %v2491_v4, %v1959_v9 }
 0x1cf   : > { %v1442_v45 = vsub.f32 0.0, %v3448_v28  ;;  %v3459_v63 = vadd.f32 %v1476_v5, %v1475_v23  ;;  %v1511_v56 = vadd.f32 %v1510_v41, %v1509_v55  ;;  %vm1569_vm13 = vcmp.eq.s32.totalorder %v2482_v1, %v1959_v9 }
 0x1d0   : > { %v3463_v52 = vsub.f32 %v3357_v30, %v1240_v61  ;;  %v1274_v10 = vand.u32 2147483647, %v3426_v0  ;;  %v1338_v15 = vmul.f32 1.442695, %v1337_v24  ;;  %v1543_v33 = vadd.f32 %v1542_v44, %v1540_v48 }
 0x1d1   : > { %v1512_v53 = vrot.slane %v1511_v56, 1  ;;  %vm1571_vm4 = vcmp.eq.s32.totalorder %v2485_v2, %v1959_v9  ;;  %vm1572_vm5 = vcmp.eq.s32.totalorder %v2488_v3, %v1959_v9  ;;  %v1574_v32 = vsel %vm1570_vm8, %v2572_v26, 0.0 }
 0x1d2   : > { %v3469_v34 = vpop.eup %2060  ;;  %v1272_v19 = vadd.f32 1.0, %v1271_v36  ;;  %v1374_v21 = vmul.f32 1.442695, %v1373_v29  ;;  %v1544_v57 = vrot.slane %v1543_v33, 4  ;;  %v1573_v30 = vsel %vm1569_vm13, %v2536_v20, 0.0 }
 0x1d3   : > { %v2063_v62 = vpop.eup %2062  ;;  %v1409_v58 = vsub.f32 0.0, %v1408_v60  ;;  %v1444_v16 = vand.u32 2147483647, %v1442_v45  ;;  %v1478_v49 = vsub.f32 0.0, %v3459_v63  ;;  %v1577_v13 = vadd.f32 %v1574_v32, %v1573_v30 }
 0x1d4   : > { %v3475_v40 = vadd.f32 %v1512_v53, %v1511_v56  ;;  %v1545_v51 = vadd.f32 %v1544_v57, %v1543_v33  ;;  %v1575_v23 = vsel %vm1571_vm4, %v2570_v25, 0.0  ;;  %v1576_v35 = vsel %vm1572_vm5, %v2648_v50, 0.0 }
 0x1d5   : > { %vm3480_vm7 = vcmp.lt.f32.partialorder %v1274_v10, 0.0004427343  ;;  %v1304_v61 = vadd.f32 1.0, %v3469_v34  ;;  %2064 = vpow2.f32 %v1338_v15  ;;  %v1578_v11 = vadd.f32 %v1577_v13, %v1575_v23 }
 0x1d6   : > { %v1270_v43 = vmul.f32 0.6931472, %v2063_v62  ;;  %v1273_v14 = vmul.f32 %v3426_v0, %v1272_v19  ;;  %v1307_v7 = vmul.f32 -0.5, %v3469_v34  ;;  %2066 = vpow2.f32 %v1374_v21 }
 0x1d7   : > { %v1410_v5 = vmul.f32 1.442695, %v1409_v58  ;;  %v1445_v55 = vsub.f32 0.0, %v1444_v16  ;;  %v1546_v39 = vrot.slane %v1545_v51, 2  ;;  %v1579_v9 = vadd.f32 %v1578_v11, %v1576_v35 }
 0x1d8   : > { %v1480_v36 = vand.u32 2147483647, %v1478_v49  ;;  %v1514_v24 = vsub.f32 0.0, %v3475_v40  ;;  %vm1605_vm9 = vcmp.eq.s32.totalorder %v2482_v1, %v1960_v54  ;;  %vm1606_vm11 = vcmp.eq.s32.totalorder %v2491_v4, %v1960_v54 }
 0x1d9   : > { %2068 = vlog2.f32 %v1304_v61  ;;  %v1310_v37 = vand.u32 2147483647, %v3469_v34  ;;  %v1547_v0 = vadd.f32 %v1546_v39, %v1545_v51  ;;  %v1580_v41 = vrot.slane %v1579_v9, 4 }
 0x1da   : > { %v1276_v8 = vsel %vm3480_vm7, %v1273_v14, %v1270_v43  ;;  %vm1607_vm12 = vcmp.eq.s32.totalorder %v2485_v2, %v1960_v54  ;;  %vm1608_vm14 = vcmp.eq.s32.totalorder %v2488_v3, %v1960_v54  ;;  %v1610_v48 = vsel %vm1606_vm11, %v2572_v26, 0.0  ;;  %v1961_v43 = vld [vmem:[%s2468_s10 + $0x23] ss:$0 sm:$0xff] }
 0x1db   : > { %v3498_v29 = vpop.eup %2064  ;;  %2070 = vpow2.f32 %v1410_v5  ;;  %v1548_v60 = vrot.slane %v1547_v0, 1  ;;  %v1581_v44 = vadd.f32 %v1580_v41, %v1579_v9  ;;  %v1609_v56 = vsel %vm1605_vm9, %v2536_v20, 0.0 }
 0x1dc   : > { %v3501_v10 = vpop.eup %2066  ;;  %v1446_v15 = vmul.f32 1.442695, %v1445_v55  ;;  %v1481_v33 = vsub.f32 0.0, %v1480_v36  ;;  %v1516_v53 = vand.u32 2147483647, %v1514_v24  ;;  %v1613_v32 = vadd.f32 %v1610_v48, %v1609_v56 }
 0x1dd   : > { %v3505_v19 = vadd.f32 %v1548_v60, %v1547_v0  ;;  %v1582_v21 = vrot.slane %v1581_v44, 2  ;;  %v1611_v57 = vsel %vm1607_vm12, %v2570_v25, 0.0  ;;  %v1612_v30 = vsel %vm1608_vm14, %v2648_v50, 0.0 }
 0x1de   : > { %v1263_v62 = vmin.f32 %v1262_v27, 0.0  ;;  %v1308_v58 = vadd.f32 1.0, %v1307_v7  ;;  %v1340_v16 = vadd.f32 1.0, %v3498_v29  ;;  %v1614_v13 = vadd.f32 %v1613_v32, %v1611_v57 }
 0x1df   : > { %v2069_v51 = vpop.eup %2068  ;;  %v1242_v23 = vadd.f32 %v3463_v52, %v3434_v22  ;;  %vm3514_vm15 = vcmp.lt.f32.partialorder %v1310_v37, 0.0004427343  ;;  %v1550_v54 = vsub.f32 0.0, %v3505_v19  ;;  %v1583_v6 = vadd.f32 %v1582_v21, %v1581_v44 }
 0x1e0   : > { %v1277_v61 = vsub.f32 %v1263_v62, %v1276_v8  ;;  %v1376_v11 = vadd.f32 1.0, %v3501_v10  ;;  %v1517_v47 = vsub.f32 0.0, %v1516_v53  ;;  %v1615_v27 = vadd.f32 %v1614_v13, %v1612_v30 }
 0x1e1   : > { %v3521_v14 = vpop.eup %2070  ;;  %2072 = vpow2.f32 %v1446_v15  ;;  %v1482_v7 = vmul.f32 1.442695, %v1481_v33  ;;  %v1552_v22 = vand.u32 2147483647, %v1550_v54  ;;  %v1584_v52 = vrot.slane %v1583_v6, 1 }
 0x1e2   : > { %v1309_v5 = vmul.f32 %v3469_v34, %v1308_v58  ;;  %2074 = vlog2.f32 %v1340_v16  ;;  %v1616_v55 = vrot.slane %v1615_v27, 4  ;;  %vm1642_vm0 = vcmp.eq.s32.totalorder %v2491_v4, %v1961_v43 }
 0x1e3   : > { %v1306_v39 = vmul.f32 0.6931472, %v2069_v51  ;;  %v1343_v9 = vmul.f32 -0.5, %v3498_v29  ;;  %v1346_v36 = vand.u32 2147483647, %v3498_v29  ;;  %v3529_v37 = vadd.f32 %v1584_v52, %v1583_v6 }
 0x1e4   : > { %2076 = vlog2.f32 %v1376_v11  ;;  %v1518_v0 = vmul.f32 1.442695, %v1517_v47  ;;  %v1617_v41 = vadd.f32 %v1616_v55, %v1615_v27  ;;  %vm1641_vm1 = vcmp.eq.s32.totalorder %v2482_v1, %v1961_v43 }
 0x1e5   : > { %2078 = vpow2.f32 %v1482_v7  ;;  %v1553_v8 = vsub.f32 0.0, %v1552_v22  ;;  %v1586_v34 = vsub.f32 0.0, %v3529_v37  ;;  %v1646_v48 = vsel %vm1642_vm0, %v2572_v26, 0.0 }
 0x1e6   : > { %v1412_v4 = vadd.f32 1.0, %v3521_v14  ;;  %v1618_v60 = vrot.slane %v1617_v41, 2  ;;  %vm1643_vm2 = vcmp.eq.s32.totalorder %v2485_v2, %v1961_v43  ;;  %vm1644_vm3 = vcmp.eq.s32.totalorder %v2488_v3, %v1961_v43 }
 0x1e7   : > { %v3537_v44 = vpop.eup %2072  ;;  %v1312_v56 = vsel %vm3514_vm15, %v1309_v5, %v1306_v39  ;;  %v1344_v15 = vadd.f32 1.0, %v1343_v9  ;;  %v1588_v1 = vand.u32 2147483647, %v1586_v34  ;;  %v1645_v33 = vsel %vm1641_vm1, %v2536_v20, 0.0 }
 0x1e8   : > { %v2075_v53 = vpop.eup %2074  ;;  %v1379_v26 = vmul.f32 -0.5, %v3501_v10  ;;  %2080 = vpow2.f32 %v1518_v0  ;;  %v1619_v32 = vadd.f32 %v1618_v60, %v1617_v41  ;;  %v1649_v21 = vadd.f32 %v1646_v48, %v1645_v33 }
 0x1e9   : > { %v1554_v2 = vmul.f32 1.442695, %v1553_v8  ;;  %v1589_v57 = vsub.f32 0.0, %v1588_v1  ;;  %v1647_v3 = vsel %vm1643_vm2, %v2570_v25, 0.0  ;;  %v1648_v30 = vsel %vm1644_vm3, %v2648_v50, 0.0 }
 0x1ea   : > { %v2077_v62 = vpop.eup %2076  ;;  %2082 = vlog2.f32 %v1412_v4  ;;  %v1448_v58 = vadd.f32 1.0, %v3537_v44  ;;  %v1620_v16 = vrot.slane %v1619_v32, 1  ;;  %v1650_v13 = vadd.f32 %v1649_v21, %v1647_v3 }
 0x1eb   : > { %v3548_v51 = vpop.eup %2078  ;;  %v1278_v20 = vadd.f32 %v1277_v61, %v1242_v23  ;;  %v1299_v35 = vmin.f32 %v1298_v59, 0.0  ;;  %v1342_v6 = vmul.f32 0.6931472, %v2075_v53  ;;  %vm3552_vm6 = vcmp.lt.f32.partialorder %v1346_v36, 0.0004427343 }
 0x1ec   : > { %v1380_v25 = vadd.f32 1.0, %v1379_v26  ;;  %v1415_v50 = vmul.f32 -0.5, %v3521_v14  ;;  %v3557_v47 = vadd.f32 %v1620_v16, %v1619_v32  ;;  %v1651_v27 = vadd.f32 %v1650_v13, %v1648_v30 }
 0x1ed   : > { %v1313_v43 = vsub.f32 %v1299_v35, %v1312_v56  ;;  %v1345_v7 = vmul.f32 %v3498_v29, %v1344_v15  ;;  %2084 = vpow2.f32 %v1554_v2  ;;  %v1590_v22 = vmul.f32 1.442695, %v1589_v57 }
 0x1ee   : > { %v3560_v23 = vpop.eup %2080  ;;  %v1382_v38 = vand.u32 2147483647, %v3501_v10  ;;  %2086 = vlog2.f32 %v1448_v58  ;;  %v1484_v59 = vadd.f32 1.0, %v3548_v51  ;;  %v1622_v61 = vsub.f32 0.0, %v3557_v47 }
 0x1ef   : > { %v1335_v52 = vmin.f32 %v1334_v42, 0.0  ;;  %v1348_v5 = vsel %vm3552_vm6, %v1345_v7, %v1342_v6  ;;  %v1378_v55 = vmul.f32 0.6931472, %v2077_v62  ;;  %v1652_v39 = vrot.slane %v1651_v27, 4 }
 0x1f0   : > { %v2083_v29 = vpop.eup %2082  ;;  %v1314_v9 = vadd.f32 %v1313_v43, %v1278_v20  ;;  %v1381_v36 = vmul.f32 %v3501_v10, %v1380_v25  ;;  %v1416_v0 = vadd.f32 1.0, %v1415_v50  ;;  %v1418_v41 = vand.u32 2147483647, %v3521_v14 }
 0x1f1   : > { %v1451_v8 = vmul.f32 -0.5, %v3537_v44  ;;  %2088 = vpow2.f32 %v1590_v22  ;;  %v1624_v48 = vand.u32 2147483647, %v1622_v61  ;;  %v1653_v12 = vadd.f32 %v1652_v39, %v1651_v27 }
 0x1f2   : > { %v1349_v42 = vsub.f32 %v1335_v52, %v1348_v5  ;;  %vm3574_vm10 = vcmp.lt.f32.partialorder %v1382_v38, 0.0004427343  ;;  %2090 = vlog2.f32 %v1484_v59  ;;  %v1520_v60 = vadd.f32 1.0, %v3560_v23 }
 0x1f3   : > { %v3579_v56 = vpop.eup %2084  ;;  %v1384_v10 = vsel %vm3574_vm10, %v1381_v36, %v1378_v55  ;;  %v1414_v15 = vmul.f32 0.6931472, %v2083_v29  ;;  %v1625_v1 = vsub.f32 0.0, %v1624_v48  ;;  %v1654_v33 = vrot.slane %v1653_v12, 2 }
 0x1f4   : > { %v2087_v53 = vpop.eup %2086  ;;  %v1350_v26 = vadd.f32 %v1349_v42, %v1314_v9  ;;  %v1371_v32 = vmin.f32 %v1370_v17, 0.0  ;;  %v1417_v21 = vmul.f32 %v3521_v14, %v1416_v0  ;;  %vm3586_vm8 = vcmp.lt.f32.partialorder %v1418_v41, 0.0004427343 }
 0x1f5   : > { %v1452_v57 = vadd.f32 1.0, %v1451_v8  ;;  %v1487_v3 = vmul.f32 -0.5, %v3548_v51  ;;  %v1626_v30 = vmul.f32 1.442695, %v1625_v1  ;;  %v1655_v62 = vadd.f32 %v1654_v33, %v1653_v12 }
 0x1f6   : > { %v1385_v58 = vsub.f32 %v1371_v32, %v1384_v10  ;;  %v1454_v16 = vand.u32 2147483647, %v3537_v44  ;;  %2092 = vlog2.f32 %v1520_v60  ;;  %v1556_v13 = vadd.f32 1.0, %v3579_v56 }
 0x1f7   : > { %v3593_v20 = vpop.eup %2088  ;;  %v1420_v31 = vsel %vm3586_vm8, %v1417_v21, %v1414_v15  ;;  %v1450_v17 = vmul.f32 0.6931472, %v2087_v53  ;;  %2094 = vpow2.f32 %v1626_v30  ;;  %v1656_v14 = vrot.slane %v1655_v62, 1 }
 0x1f8   : > { %v2091_v35 = vpop.eup %2090  ;;  %v1386_v6 = vadd.f32 %v1385_v58, %v1350_v26  ;;  %v1407_v11 = vmin.f32 %v1406_v18, 0.0  ;;  %v1490_v25 = vand.u32 2147483647, %v3548_v51  ;;  %v1453_v50 = vmul.f32 %v3537_v44, %v1452_v57 }
 0x1f9   : > { %v1488_v27 = vadd.f32 1.0, %v1487_v3  ;;  %v1523_v43 = vmul.f32 -0.5, %v3560_v23  ;;  %v3602_v7 = vadd.f32 %v1656_v14, %v1655_v62  ;;  %vm1455_vm13 = vcmp.lt.f32.partialorder %v1454_v16, 0.0004427343 }
 0x1fa   : > { %v1421_v22 = vsub.f32 %v1407_v11, %v1420_v31  ;;  %2096 = vlog2.f32 %v1556_v13  ;;  %v1592_v38 = vadd.f32 1.0, %v3593_v20  ;;  %v1456_v59 = vsel %vm1455_vm13, %v1453_v50, %v1450_v17 }
 0x1fb   : > { %v1486_v52 = vmul.f32 0.6931472, %v2091_v35  ;;  %v1658_v5 = vsub.f32 0.0, %v3602_v7  ;;  %v1443_v55 = vmin.f32 %v1442_v45, 0.0  ;;  %vm3608_vm4 = vcmp.lt.f32.partialorder %v1490_v25, 0.0004427343 }
 0x1fc   : > { %v2093_v46 = vpop.eup %2092  ;;  %v1422_v18 = vadd.f32 %v1421_v22, %v1386_v6  ;;  %v1489_v29 = vmul.f32 %v3548_v51, %v1488_v27  ;;  %v1524_v9 = vadd.f32 1.0, %v1523_v43  ;;  %v1559_v36 = vmul.f32 -0.5, %v3579_v56 }
 0x1fd   : > { %v2095_v39 = vpop.eup %2094  ;;  %v1660_v0 = vand.u32 2147483647, %v1658_v5  ;;  %v1457_v41 = vsub.f32 %v1443_v55, %v1456_v59  ;;  %v1526_v8 = vand.u32 2147483647, %v3560_v23  ;;  %2098 = vlog2.f32 %v1592_v38 }
 0x1fe   : > { %v1628_v48 = vadd.f32 1.0, %v2095_v39  ;;  %v1492_v28 = vsel %vm3608_vm4, %v1489_v29, %v1486_v52  ;;  %v1522_v45 = vmul.f32 0.6931472, %v2093_v46  ;;  %v1479_v51 = vmin.f32 %v1478_v49, 0.0 }
 0x1ff   : > { %v1661_v12 = vsub.f32 0.0, %v1660_v0  ;;  %v1458_v4 = vadd.f32 %v1457_v41, %v1422_v18  ;;  %v1525_v60 = vmul.f32 %v3560_v23, %v1524_v9  ;;  %v1560_v10 = vadd.f32 1.0, %v1559_v36 }
 0x200   : > { %v2097_v42 = vpop.eup %2096  ;;  %v1595_v15 = vmul.f32 -0.5, %v3593_v20  ;;  %v1493_v33 = vsub.f32 %v1479_v51, %v1492_v28  ;;  %vm1527_vm5 = vcmp.lt.f32.partialorder %v1526_v8, 0.0004427343  ;;  %v1562_v53 = vand.u32 2147483647, %v3579_v56 }
 0x201   : > { %v1662_v1 = vmul.f32 1.442695, %v1661_v12  ;;  %2100 = vlog2.f32 %v1628_v48  ;;  %v1528_v26 = vsel %vm1527_vm5, %v1525_v60, %v1522_v45  ;;  %v1558_v32 = vmul.f32 0.6931472, %v2097_v42 }
 0x202   : > { %v1494_v2 = vadd.f32 %v1493_v33, %v1458_v4  ;;  %v1515_v63 = vmin.f32 %v1514_v24, 0.0  ;;  %v1561_v49 = vmul.f32 %v3579_v56, %v1560_v10  ;;  %v1596_v23 = vadd.f32 1.0, %v1595_v15 }
 0x203   : > { %2102 = vpow2.f32 %v1662_v1  ;;  %v2099_v21 = vpop.eup %2098  ;;  %v1631_v57 = vmul.f32 -0.5, %v2095_v39  ;;  %vm1563_vm7 = vcmp.lt.f32.partialorder %v1562_v53, 0.0004427343  ;;  %v1598_v30 = vand.u32 2147483647, %v3593_v20 }
 0x204   : > { %v1529_v3 = vsub.f32 %v1515_v63, %v1528_v26  ;;  %v1564_v62 = vsel %vm1563_vm7, %v1561_v49, %v1558_v32  ;;  %v1594_v58 = vmul.f32 0.6931472, %v2099_v21  ;;  %v1551_v31 = vmin.f32 %v1550_v54, 0.0 }
 0x205   : > { %v1597_v14 = vmul.f32 %v3593_v20, %v1596_v23  ;;  %v1632_v40 = vadd.f32 1.0, %v1631_v57  ;;  %vm1599_vm9 = vcmp.lt.f32.partialorder %v1598_v30, 0.0004427343  ;;  %v1634_v56 = vand.u32 2147483647, %v2095_v39 }
 0x206   : > { %v1530_v13 = vadd.f32 %v1529_v3, %v1494_v2  ;;  %v1565_v24 = vsub.f32 %v1551_v31, %v1564_v62  ;;  %v1587_v27 = vmin.f32 %v1586_v34, 0.0  ;;  %v1623_v38 = vmin.f32 %v1622_v61, 0.0 }
 0x207   : > { %v2101_v16 = vpop.eup %2100  ;;  %v1600_v6 = vsel %vm1599_vm9, %v1597_v14, %v1594_v58  ;;  %v1633_v43 = vmul.f32 %v2095_v39, %v1632_v40  ;;  %vm1635_vm11 = vcmp.lt.f32.partialorder %v1634_v56, 0.0004427343  ;;  %v1659_v34 = vmin.f32 %v1658_v5, 0.0 }
 0x208   : > { %v1630_v11 = vmul.f32 0.6931472, %v2101_v16  ;;  %v1566_v50 = vadd.f32 %v1565_v24, %v1530_v13  ;;  %v1601_v19 = vsub.f32 %v1587_v27, %v1600_v6 }
 0x209   : > { %v2103_v17 = vpop.eup %2102 }
 0x20a   : > { %v1664_v35 = vadd.f32 1.0, %v2103_v17  ;;  %v1667_v25 = vmul.f32 -0.5, %v2103_v17  ;;  %v1636_v54 = vsel %vm1635_vm11, %v1633_v43, %v1630_v11  ;;  %v1602_v22 = vadd.f32 %v1601_v19, %v1566_v50 }
 0x20b   : > { %v1670_v59 = vand.u32 2147483647, %v2103_v17  ;;  %v1637_v46 = vsub.f32 %v1623_v38, %v1636_v54 }
 0x20c   : > { %2104 = vlog2.f32 %v1664_v35  ;;  %v1668_v20 = vadd.f32 1.0, %v1667_v25 }
 0x20d   : > { %v1638_v37 = vadd.f32 %v1637_v46, %v1602_v22  ;;  %vm1671_vm12 = vcmp.lt.f32.partialorder %v1670_v59, 0.0004427343 }
 0x20e   : > { %v1669_v55 = vmul.f32 %v2103_v17, %v1668_v20 }
 0x212   : > { %v2105_v52 = vpop.eup %2104 }
 0x213   : > { %v1666_v18 = vmul.f32 0.6931472, %v2105_v52 }
 0x215   : > { %v1672_v44 = vsel %vm1671_vm12, %v1669_v55, %v1666_v18 }
 0x216   : > { %v1673_v39 = vsub.f32 %v1659_v34, %v1672_v44 }
 0x218   : > { %v1674_v47 = vadd.f32 %v1673_v39, %v1638_v37 }
 0x21a   : > { %v1675_v61 = vsub.f32 0.0, %v1674_v47 }
 0x21c   : > { %1676 = vst [vmem:[%s283_s9] sm:$0x1] %v1675_v61 }
 0x21d   : > { %2253 = shalt.err (!%p2250_p8)
}
 0x21e   : > { %1859 = dma.vmem_to_hbm [thread:$0]  (%p2408_p4), %s1689_s21, 16, %s1691_s27, %s1678_s28  }
 0x21f PF: > { %s1702_s25 = sand.u32 1, %s2292_s15   ;;  %p3757_p10 = scmp.ge.s32.totalorder %s2304_s18, 2 }
 0x220   : > { %s1703_s14 = scalar_lea.sflag [#allocation4], %s1702_s25 }
 0x221   : > { %p1876_p13 = pnand %p3757_p10, %p2412_p6 }
 0x223   : > { %p1877_p11 = pneg %p1876_p13 }
 0x225   : > { %2287 = dma.done.wait (%p1877_p11), %s1703_s14, 16  }
 0x226   : > { %2289 = vsyncadd (%p1877_p11), %s1703_s14, 4294967280  ;;  %s3758_s26 = sld [smem:[#allocation16_spill]]  ;;  %p21_p0 = scmp.ge.s32.totalorder %s2382_s8, 4  }
 0x227   : > { %s3759_s15 = smov %s2296_s16  ;;  %s3760_s16 = smov %s2300_s17 }
 0x228   : > { %s3762_s18 = smov %s2382_s8  ;;  %23 = sbr.rel (!%p21_p0) target bundleno = 11 (0xb), region = 102 }
 0x22c   : > { %s3761_s17 = smov %s3758_s26 }
 0x22d   :  { %1708 = vsyncpa [#allocation3], 1 }
 0x22e   :  { %1710 = vsyncpa [#allocation3 + $0x1], 1 }
 0x22f   :  { %1711 = vsyncpa [#allocation6], 1 }
 0x230   :  { %1713 = vsyncpa [#allocation6 + $0x1], 1 }
 0x231   :  { %1714 = vsyncpa [#allocation9], 1 }
 0x232   :  { %1715 = vsyncpa [#allocation4], 1 }
 0x233   :  { %1717 = vsyncpa [#allocation4 + $0x1], 1 }

</bundles_post_ra>
